<compile_context>
chip_gen: v7x
topology: tpu7x:2x2x1
jax: 0.10.0
libtpu: 0.0.40
codegen_flags: <defaults>
</compile_context>

<pallas_src>
import functools

import jax
import jax.numpy as jnp
from jax.experimental import pallas as pl
from jax.experimental.pallas import tpu as pltpu


# Padded-original-image row/col offsets read by output phase 0 / 1.
_PHASE_OFFSETS = ((0, 1), (1, 2))


def _upsample_conv_kernel(x_ref, w_ref, b_ref, o_ref, *, band_h, W, Cin, Cout):
    """One (batch, row-band) grid step.

    x_ref: (H+2, W+2, Cin) bf16   zero-padded ORIGINAL image, resident per batch
    w_ref: (16, Cin, Cout) bf16   folded 2x2-footprint weights,
                                  index = ((a*2 + b)*2 + dy)*2 + dx
    b_ref: (1, Cout)       f32    conv bias
    o_ref: (band_h, 2, W, 2*Cout) f32
           element [i, a, j, b*Cout + c]  ==  NHWC out[2*(row0+i)+a, 2*j+b, c]
    """
    r = pl.program_id(1)
    row0 = pl.multiple_of(r * band_h, band_h)
    M = band_h * W
    bias = b_ref[...]                                    # (1, Cout) f32

    for a in range(2):                                   # output row phase
        # Only the two original rows feeding this row phase are touched
        # (dy-sparsity): six shifted pl.ds loads, no im2col / lane concat.
        slabs = {}
        for i_dy, dy in enumerate(_PHASE_OFFSETS[a]):
            for dx in range(3):
                slabs[(i_dy, dx)] = x_ref[
                    pl.ds(row0 + dy, band_h), pl.ds(dx, W), :
                ].reshape(M, Cin)

        for b in range(2):                               # output column phase
            base = (a * 2 + b) * 2
            acc = None
            for i_dy in range(2):
                for i_dx, dx in enumerate(_PHASE_OFFSETS[b]):   # dx-sparsity
                    part = jnp.dot(slabs[(i_dy, dx)],
                                   w_ref[(base + i_dy) * 2 + i_dx],
                                   preferred_element_type=jnp.float32)
                    acc = part if acc is None else acc + part
            acc = acc + bias                             # (M, Cout) f32
            # Production layers have Cout >= 128 so this store is 128-aligned
            # and lane-dense; the C=32 demo path is merely a masked store.
            o_ref[:, a, :, b * Cout:(b + 1) * Cout] = (
                acc.reshape(band_h, W, Cout).astype(o_ref.dtype))


def _fold_upsample_into_weights(weight):
    """Fold nearest-2x upsampling into the 3x3 conv weights (single einsum).

    Returns (16, Cin, Cout) with index ((a*2 + b)*2 + dy)*2 + dx: for output
    phase a (rows) / b (cols), tap (dy, dx) multiplies the padded original
    pixel at offset (_PHASE_OFFSETS[a][dy], _PHASE_OFFSETS[b][dx]).
    """
    Cout, Cin, _, _ = weight.shape
    w_t = jnp.transpose(weight, (2, 3, 1, 0))                  # (ky, kx, ci, co)
    # fold[a, d, k] == 1 iff conv tap k of phase a reads padded offset
    # _PHASE_OFFSETS[a][d];  phase-0 taps read offsets (0,1,1), phase-1 (1,1,2).
    fold = jnp.asarray([[[1, 0, 0], [0, 1, 1]],
                        [[1, 1, 0], [0, 0, 1]]], dtype=w_t.dtype)
    wf = jnp.einsum("aik,bjl,klcd->abijcd", fold, fold, w_t)   # (2,2,2,2,ci,co)
    return wf.reshape(16, Cin, Cout)


def _band_rows(H, W, C):
    """Row-band height: M = band_h*W in ~[256, 2048], f32 out block <= ~4 MiB."""
    target_m = max(256, min(2048, (4 * 1024 * 1024) // (16 * max(C, 1))))
    band_h = max(1, min(H, target_m // max(W, 1)))
    if H % band_h != 0:
        band_h = H                        # single band for irregular sizes
    return band_h


@jax.jit
def upsample_forward_nhwc(x_nhwc, weight, bias):
    """Nearest-2x upsample + Conv2d(3x3, padding=1); NHWC in -> NHWC out."""
    B, H, W, C = x_nhwc.shape
    Cout = weight.shape[0]

    x_pad = jnp.pad(x_nhwc, ((0, 0), (1, 1), (1, 1), (0, 0)))
    x_pad = x_pad.astype(jnp.bfloat16)            # MXU input
    # TODO(synk): keep f32 activations (bf16 weights only) if the decoder turns
    # out to be precision sensitive to bf16 MXU inputs.

    w_fold = _fold_upsample_into_weights(weight).astype(jnp.bfloat16)
    b_row = bias.astype(jnp.float32).reshape(1, Cout)

    band_h = _band_rows(H, W, C)
    n_bands = H // band_h

    kernel = functools.partial(
        _upsample_conv_kernel, band_h=band_h, W=W, Cin=C, Cout=Cout)

    out_flat = pl.pallas_call(
        kernel,
        out_shape=jax.ShapeDtypeStruct((B, H, 2, W, 2 * Cout), jnp.float32),
        grid=(B, n_bands),
        in_specs=[
            # whole padded image per batch item, resident across the band axis
            pl.BlockSpec((None, H + 2, W + 2, C), lambda b, r: (b, 0, 0, 0)),
            # folded weights / bias: constant index map -> DMA'd once per call.
            # TODO(synk): pipeline_mode=pl.Buffered(1) here would also drop the
            # unused second weight buffer on VMEM-tight chips (v7x, C=512).
            pl.BlockSpec((16, C, Cout), lambda b, r: (0, 0, 0)),
            pl.BlockSpec((1, Cout), lambda b, r: (0, 0)),
        ],
        # Row-major (B, H, 2, W, 2C) IS NHWC (B, 2H, 2W, C): depth-to-space is
        # folded into the output indexing, so the reshape below is free.
        out_specs=pl.BlockSpec((None, band_h, 2, W, 2 * Cout),
                               lambda b, r: (b, r, 0, 0, 0)),
        compiler_params=pltpu.CompilerParams(
            dimension_semantics=("parallel", "parallel"),
            vmem_limit_bytes=48 * 1024 * 1024,
        ),
        # TODO(synk): on v7x with B=1, mark the band axis CORE_PARALLEL if
        # xprof shows the second TensorCore idle.
    )(x_pad, w_fold, b_row)

    return out_flat.reshape(B, 2 * H, 2 * W, Cout)


@jax.jit
def upsample_forward(x_nchw, weight, bias):
    """PyTorch-module-compatible entry point: NCHW in -> NCHW out.

    The NCHW<->NHWC transposes are module-boundary costs only; a full decoder
    should stay in NHWC and call upsample_forward_nhwc directly (no extra HBM
    pass over the 4x-inflated output).
    """
    x_nhwc = jnp.transpose(x_nchw, (0, 2, 3, 1))
    out_nhwc = upsample_forward_nhwc(x_nhwc, weight, bias)
    return jnp.transpose(out_nhwc, (0, 3, 1, 2)).astype(x_nchw.dtype)


def _reference_forward(x_nchw, weight, bias):
    """Pure-JAX f32 reference (same semantics as the PyTorch module)."""
    x_up = jnp.repeat(jnp.repeat(x_nchw, 2, axis=2), 2, axis=3)
    out = jax.lax.conv_general_dilated(
        x_up, weight,
        window_strides=(1, 1), padding=((1, 1), (1, 1)),
        dimension_numbers=("NCHW", "OIHW", "NCHW"),
    )
    return out + bias[None, :, None, None]


if __name__ == "__main__":
    # Module config: log2_count = 5  ->  n = 32 channels
    log2_count = 5
    n = 2 ** log2_count
    B, H, W = 2, 16, 16

    key = jax.random.PRNGKey(0)
    kx, kw, kb = jax.random.split(key, 3)

    x = jax.random.normal(kx, (B, n, H, W), dtype=jnp.float32)

    # Deterministic Conv2d-style init (uniform in +/- 1/sqrt(fan_in)).
    fan_in = n * 3 * 3
    bound = 1.0 / (fan_in ** 0.5)
    weight = jax.random.uniform(kw, (n, n, 3, 3), jnp.float32, -bound, bound)
    bias = jax.random.uniform(kb, (n,), jnp.float32, -bound, bound)

    out = upsample_forward(x, weight, bias)
    out = jax.block_until_ready(out)

    ref = _reference_forward(x, weight, bias)
    assert out.shape == (B, n, 2 * H, 2 * W), out.shape
    # bf16 MXU inputs with f32 accumulation -> loosened tolerance vs f32 ref.
    max_err = float(jnp.max(jnp.abs(out - ref)))
    assert jnp.allclose(out, ref, atol=5e-2, rtol=5e-2), max_err

    print("KERNEL_OK")
</pallas_src>

<mosaic_0001>
module attributes {stable_mosaic.version = 11 : i64} {
  func.func @_upsample_conv_kernel(%arg0: i32, %arg1: i32, %arg2: memref<1x18x18x32xbf16, #tpu.memory_space<vmem>>, %arg3: memref<16x32x32xbf16, #tpu.memory_space<vmem>>, %arg4: memref<1x32xf32, #tpu.memory_space<vmem>>, %arg5: memref<1x16x2x16x64xf32, #tpu.memory_space<vmem>>) attributes {dimension_semantics = [#tpu.dimension_semantics<parallel>, #tpu.dimension_semantics<parallel>], iteration_bounds = array<i64: 2, 1>, scalar_prefetch = 0 : i64, scratch_operands = 0 : i64, tpu.core_type = #tpu.core_type<tc>, window_params = [{transform_indices = @transform_0, window_bounds = array<i64: 1, 18, 18, 32>}, {pipeline_mode = #tpu.pipeline_mode<synchronous>, transform_indices = @transform_1, window_bounds = array<i64: 16, 32, 32>}, {pipeline_mode = #tpu.pipeline_mode<synchronous>, transform_indices = @transform_2, window_bounds = array<i64: 1, 32>}, {transform_indices = @transform_3, window_bounds = array<i64: 1, 16, 2, 16, 64>}]} {
    %c16_i32 = arith.constant 16 : i32
    %0 = arith.muli %arg1, %c16_i32 : i32
    %1 = tpu.assume_multiple %0, 16 : i32
    %c0 = arith.constant 0 : index
    %c0_0 = arith.constant 0 : index
    %2 = vector.load %arg4[%c0, %c0_0] : memref<1x32xf32, #tpu.memory_space<vmem>>, vector<1x32xf32>
    %c0_i32 = arith.constant 0 : i32
    %3 = arith.addi %1, %c0_i32 : i32
    %c0_1 = arith.constant 0 : index
    %4 = arith.index_cast %3 : i32 to index
    %c0_2 = arith.constant 0 : index
    %c0_3 = arith.constant 0 : index
    %5 = vector.load %arg2[%c0_1, %4, %c0_2, %c0_3] : memref<1x18x18x32xbf16, #tpu.memory_space<vmem>>, vector<1x16x16x32xbf16>
    %6 = vector.shape_cast %5 : vector<1x16x16x32xbf16> to vector<16x16x32xbf16>
    %7 = vector.shape_cast %6 : vector<16x16x32xbf16> to vector<256x32xbf16>
    %c0_i32_4 = arith.constant 0 : i32
    %8 = arith.addi %1, %c0_i32_4 : i32
    %c0_5 = arith.constant 0 : index
    %9 = arith.index_cast %8 : i32 to index
    %c1 = arith.constant 1 : index
    %c0_6 = arith.constant 0 : index
    %10 = vector.load %arg2[%c0_5, %9, %c1, %c0_6] : memref<1x18x18x32xbf16, #tpu.memory_space<vmem>>, vector<1x16x16x32xbf16>
    %11 = vector.shape_cast %10 : vector<1x16x16x32xbf16> to vector<16x16x32xbf16>
    %12 = vector.shape_cast %11 : vector<16x16x32xbf16> to vector<256x32xbf16>
    %c0_i32_7 = arith.constant 0 : i32
    %13 = arith.addi %1, %c0_i32_7 : i32
    %c0_8 = arith.constant 0 : index
    %14 = arith.index_cast %13 : i32 to index
    %c2 = arith.constant 2 : index
    %c0_9 = arith.constant 0 : index
    %15 = vector.load %arg2[%c0_8, %14, %c2, %c0_9] : memref<1x18x18x32xbf16, #tpu.memory_space<vmem>>, vector<1x16x16x32xbf16>
    %16 = vector.shape_cast %15 : vector<1x16x16x32xbf16> to vector<16x16x32xbf16>
    %17 = vector.shape_cast %16 : vector<16x16x32xbf16> to vector<256x32xbf16>
    %c1_i32 = arith.constant 1 : i32
    %18 = arith.addi %1, %c1_i32 : i32
    %c0_10 = arith.constant 0 : index
    %19 = arith.index_cast %18 : i32 to index
    %c0_11 = arith.constant 0 : index
    %c0_12 = arith.constant 0 : index
    %20 = vector.load %arg2[%c0_10, %19, %c0_11, %c0_12] : memref<1x18x18x32xbf16, #tpu.memory_space<vmem>>, vector<1x16x16x32xbf16>
    %21 = vector.shape_cast %20 : vector<1x16x16x32xbf16> to vector<16x16x32xbf16>
    %22 = vector.shape_cast %21 : vector<16x16x32xbf16> to vector<256x32xbf16>
    %c1_i32_13 = arith.constant 1 : i32
    %23 = arith.addi %1, %c1_i32_13 : i32
    %c0_14 = arith.constant 0 : index
    %24 = arith.index_cast %23 : i32 to index
    %c1_15 = arith.constant 1 : index
    %c0_16 = arith.constant 0 : index
    %25 = vector.load %arg2[%c0_14, %24, %c1_15, %c0_16] : memref<1x18x18x32xbf16, #tpu.memory_space<vmem>>, vector<1x16x16x32xbf16>
    %26 = vector.shape_cast %25 : vector<1x16x16x32xbf16> to vector<16x16x32xbf16>
    %27 = vector.shape_cast %26 : vector<16x16x32xbf16> to vector<256x32xbf16>
    %c1_i32_17 = arith.constant 1 : i32
    %28 = arith.addi %1, %c1_i32_17 : i32
    %c0_18 = arith.constant 0 : index
    %29 = arith.index_cast %28 : i32 to index
    %c2_19 = arith.constant 2 : index
    %c0_20 = arith.constant 0 : index
    %30 = vector.load %arg2[%c0_18, %29, %c2_19, %c0_20] : memref<1x18x18x32xbf16, #tpu.memory_space<vmem>>, vector<1x16x16x32xbf16>
    %31 = vector.shape_cast %30 : vector<1x16x16x32xbf16> to vector<16x16x32xbf16>
    %32 = vector.shape_cast %31 : vector<16x16x32xbf16> to vector<256x32xbf16>
    %c0_21 = arith.constant 0 : index
    %c0_22 = arith.constant 0 : index
    %c0_23 = arith.constant 0 : index
    %33 = vector.load %arg3[%c0_21, %c0_22, %c0_23] : memref<16x32x32xbf16, #tpu.memory_space<vmem>>, vector<1x32x32xbf16>
    %34 = vector.shape_cast %33 : vector<1x32x32xbf16> to vector<32x32xbf16>
    %cst = arith.constant dense<0.000000e+00> : vector<256x32xf32>
    %35 = tpu.matmul %7, %34, %cst {dimension_numbers = #tpu.dot_dimension_numbers<[1], [0], [0], [1], [0, 0, 1, 1], [], []>} : vector<256x32xbf16>, vector<32x32xbf16>, vector<256x32xf32> -> vector<256x32xf32>
    %c1_24 = arith.constant 1 : index
    %c0_25 = arith.constant 0 : index
    %c0_26 = arith.constant 0 : index
    %36 = vector.load %arg3[%c1_24, %c0_25, %c0_26] : memref<16x32x32xbf16, #tpu.memory_space<vmem>>, vector<1x32x32xbf16>
    %37 = vector.shape_cast %36 : vector<1x32x32xbf16> to vector<32x32xbf16>
    %cst_27 = arith.constant dense<0.000000e+00> : vector<256x32xf32>
    %38 = tpu.matmul %12, %37, %cst_27 {dimension_numbers = #tpu.dot_dimension_numbers<[1], [0], [0], [1], [0, 0, 1, 1], [], []>} : vector<256x32xbf16>, vector<32x32xbf16>, vector<256x32xf32> -> vector<256x32xf32>
    %39 = arith.addf %35, %38 : vector<256x32xf32>
    %c2_28 = arith.constant 2 : index
    %c0_29 = arith.constant 0 : index
    %c0_30 = arith.constant 0 : index
    %40 = vector.load %arg3[%c2_28, %c0_29, %c0_30] : memref<16x32x32xbf16, #tpu.memory_space<vmem>>, vector<1x32x32xbf16>
    %41 = vector.shape_cast %40 : vector<1x32x32xbf16> to vector<32x32xbf16>
    %cst_31 = arith.constant dense<0.000000e+00> : vector<256x32xf32>
    %42 = tpu.matmul %22, %41, %cst_31 {dimension_numbers = #tpu.dot_dimension_numbers<[1], [0], [0], [1], [0, 0, 1, 1], [], []>} : vector<256x32xbf16>, vector<32x32xbf16>, vector<256x32xf32> -> vector<256x32xf32>
    %43 = arith.addf %39, %42 : vector<256x32xf32>
    %c3 = arith.constant 3 : index
    %c0_32 = arith.constant 0 : index
    %c0_33 = arith.constant 0 : index
    %44 = vector.load %arg3[%c3, %c0_32, %c0_33] : memref<16x32x32xbf16, #tpu.memory_space<vmem>>, vector<1x32x32xbf16>
    %45 = vector.shape_cast %44 : vector<1x32x32xbf16> to vector<32x32xbf16>
    %cst_34 = arith.constant dense<0.000000e+00> : vector<256x32xf32>
    %46 = tpu.matmul %27, %45, %cst_34 {dimension_numbers = #tpu.dot_dimension_numbers<[1], [0], [0], [1], [0, 0, 1, 1], [], []>} : vector<256x32xbf16>, vector<32x32xbf16>, vector<256x32xf32> -> vector<256x32xf32>
    %47 = arith.addf %43, %46 : vector<256x32xf32>
    %48 = vector.broadcast %2 : vector<1x32xf32> to vector<256x32xf32>
    %49 = arith.addf %47, %48 : vector<256x32xf32>
    %50 = vector.shape_cast %49 : vector<256x32xf32> to vector<16x16x32xf32>
    %c0_35 = arith.constant 0 : index
    %c0_36 = arith.constant 0 : index
    %c0_37 = arith.constant 0 : index
    %c0_38 = arith.constant 0 : index
    %c0_39 = arith.constant 0 : index
    %51 = vector.load %arg5[%c0_35, %c0_36, %c0_37, %c0_38, %c0_39] : memref<1x16x2x16x64xf32, #tpu.memory_space<vmem>>, vector<1x16x1x16x32xf32>
    %52 = vector.shape_cast %51 : vector<1x16x1x16x32xf32> to vector<16x16x32xf32>
    %53 = vector.shape_cast %50 : vector<16x16x32xf32> to vector<1x16x1x16x32xf32>
    tpu.vector_store %arg5[%c0_35, %c0_36, %c0_37, %c0_38, %c0_39], %53 {strides = array<i32>} : memref<1x16x2x16x64xf32, #tpu.memory_space<vmem>>, vector<1x16x1x16x32xf32>,
    %c4 = arith.constant 4 : index
    %c0_40 = arith.constant 0 : index
    %c0_41 = arith.constant 0 : index
    %54 = vector.load %arg3[%c4, %c0_40, %c0_41] : memref<16x32x32xbf16, #tpu.memory_space<vmem>>, vector<1x32x32xbf16>
    %55 = vector.shape_cast %54 : vector<1x32x32xbf16> to vector<32x32xbf16>
    %cst_42 = arith.constant dense<0.000000e+00> : vector<256x32xf32>
    %56 = tpu.matmul %12, %55, %cst_42 {dimension_numbers = #tpu.dot_dimension_numbers<[1], [0], [0], [1], [0, 0, 1, 1], [], []>} : vector<256x32xbf16>, vector<32x32xbf16>, vector<256x32xf32> -> vector<256x32xf32>
    %c5 = arith.constant 5 : index
    %c0_43 = arith.constant 0 : index
    %c0_44 = arith.constant 0 : index
    %57 = vector.load %arg3[%c5, %c0_43, %c0_44] : memref<16x32x32xbf16, #tpu.memory_space<vmem>>, vector<1x32x32xbf16>
    %58 = vector.shape_cast %57 : vector<1x32x32xbf16> to vector<32x32xbf16>
    %cst_45 = arith.constant dense<0.000000e+00> : vector<256x32xf32>
    %59 = tpu.matmul %17, %58, %cst_45 {dimension_numbers = #tpu.dot_dimension_numbers<[1], [0], [0], [1], [0, 0, 1, 1], [], []>} : vector<256x32xbf16>, vector<32x32xbf16>, vector<256x32xf32> -> vector<256x32xf32>
    %60 = arith.addf %56, %59 : vector<256x32xf32>
    %c6 = arith.constant 6 : index
    %c0_46 = arith.constant 0 : index
    %c0_47 = arith.constant 0 : index
    %61 = vector.load %arg3[%c6, %c0_46, %c0_47] : memref<16x32x32xbf16, #tpu.memory_space<vmem>>, vector<1x32x32xbf16>
    %62 = vector.shape_cast %61 : vector<1x32x32xbf16> to vector<32x32xbf16>
    %cst_48 = arith.constant dense<0.000000e+00> : vector<256x32xf32>
    %63 = tpu.matmul %27, %62, %cst_48 {dimension_numbers = #tpu.dot_dimension_numbers<[1], [0], [0], [1], [0, 0, 1, 1], [], []>} : vector<256x32xbf16>, vector<32x32xbf16>, vector<256x32xf32> -> vector<256x32xf32>
    %64 = arith.addf %60, %63 : vector<256x32xf32>
    %c7 = arith.constant 7 : index
    %c0_49 = arith.constant 0 : index
    %c0_50 = arith.constant 0 : index
    %65 = vector.load %arg3[%c7, %c0_49, %c0_50] : memref<16x32x32xbf16, #tpu.memory_space<vmem>>, vector<1x32x32xbf16>
    %66 = vector.shape_cast %65 : vector<1x32x32xbf16> to vector<32x32xbf16>
    %cst_51 = arith.constant dense<0.000000e+00> : vector<256x32xf32>
    %67 = tpu.matmul %32, %66, %cst_51 {dimension_numbers = #tpu.dot_dimension_numbers<[1], [0], [0], [1], [0, 0, 1, 1], [], []>} : vector<256x32xbf16>, vector<32x32xbf16>, vector<256x32xf32> -> vector<256x32xf32>
    %68 = arith.addf %64, %67 : vector<256x32xf32>
    %69 = vector.broadcast %2 : vector<1x32xf32> to vector<256x32xf32>
    %70 = arith.addf %68, %69 : vector<256x32xf32>
    %71 = vector.shape_cast %70 : vector<256x32xf32> to vector<16x16x32xf32>
    %c0_52 = arith.constant 0 : index
    %c0_53 = arith.constant 0 : index
    %c0_54 = arith.constant 0 : index
    %c0_55 = arith.constant 0 : index
    %c32 = arith.constant 32 : index
    %72 = vector.load %arg5[%c0_52, %c0_53, %c0_54, %c0_55, %c32] : memref<1x16x2x16x64xf32, #tpu.memory_space<vmem>>, vector<1x16x1x16x32xf32>
    %73 = vector.shape_cast %72 : vector<1x16x1x16x32xf32> to vector<16x16x32xf32>
    %74 = vector.shape_cast %71 : vector<16x16x32xf32> to vector<1x16x1x16x32xf32>
    tpu.vector_store %arg5[%c0_52, %c0_53, %c0_54, %c0_55, %c32], %74 {strides = array<i32>} : memref<1x16x2x16x64xf32, #tpu.memory_space<vmem>>, vector<1x16x1x16x32xf32>,
    %c1_i32_56 = arith.constant 1 : i32
    %75 = arith.addi %1, %c1_i32_56 : i32
    %c0_57 = arith.constant 0 : index
    %76 = arith.index_cast %75 : i32 to index
    %c0_58 = arith.constant 0 : index
    %c0_59 = arith.constant 0 : index
    %77 = vector.load %arg2[%c0_57, %76, %c0_58, %c0_59] : memref<1x18x18x32xbf16, #tpu.memory_space<vmem>>, vector<1x16x16x32xbf16>
    %78 = vector.shape_cast %77 : vector<1x16x16x32xbf16> to vector<16x16x32xbf16>
    %79 = vector.shape_cast %78 : vector<16x16x32xbf16> to vector<256x32xbf16>
    %c1_i32_60 = arith.constant 1 : i32
    %80 = arith.addi %1, %c1_i32_60 : i32
    %c0_61 = arith.constant 0 : index
    %81 = arith.index_cast %80 : i32 to index
    %c1_62 = arith.constant 1 : index
    %c0_63 = arith.constant 0 : index
    %82 = vector.load %arg2[%c0_61, %81, %c1_62, %c0_63] : memref<1x18x18x32xbf16, #tpu.memory_space<vmem>>, vector<1x16x16x32xbf16>
    %83 = vector.shape_cast %82 : vector<1x16x16x32xbf16> to vector<16x16x32xbf16>
    %84 = vector.shape_cast %83 : vector<16x16x32xbf16> to vector<256x32xbf16>
    %c1_i32_64 = arith.constant 1 : i32
    %85 = arith.addi %1, %c1_i32_64 : i32
    %c0_65 = arith.constant 0 : index
    %86 = arith.index_cast %85 : i32 to index
    %c2_66 = arith.constant 2 : index
    %c0_67 = arith.constant 0 : index
    %87 = vector.load %arg2[%c0_65, %86, %c2_66, %c0_67] : memref<1x18x18x32xbf16, #tpu.memory_space<vmem>>, vector<1x16x16x32xbf16>
    %88 = vector.shape_cast %87 : vector<1x16x16x32xbf16> to vector<16x16x32xbf16>
    %89 = vector.shape_cast %88 : vector<16x16x32xbf16> to vector<256x32xbf16>
    %c2_i32 = arith.constant 2 : i32
    %90 = arith.addi %1, %c2_i32 : i32
    %c0_68 = arith.constant 0 : index
    %91 = arith.index_cast %90 : i32 to index
    %c0_69 = arith.constant 0 : index
    %c0_70 = arith.constant 0 : index
    %92 = vector.load %arg2[%c0_68, %91, %c0_69, %c0_70] : memref<1x18x18x32xbf16, #tpu.memory_space<vmem>>, vector<1x16x16x32xbf16>
    %93 = vector.shape_cast %92 : vector<1x16x16x32xbf16> to vector<16x16x32xbf16>
    %94 = vector.shape_cast %93 : vector<16x16x32xbf16> to vector<256x32xbf16>
    %c2_i32_71 = arith.constant 2 : i32
    %95 = arith.addi %1, %c2_i32_71 : i32
    %c0_72 = arith.constant 0 : index
    %96 = arith.index_cast %95 : i32 to index
    %c1_73 = arith.constant 1 : index
    %c0_74 = arith.constant 0 : index
    %97 = vector.load %arg2[%c0_72, %96, %c1_73, %c0_74] : memref<1x18x18x32xbf16, #tpu.memory_space<vmem>>, vector<1x16x16x32xbf16>
    %98 = vector.shape_cast %97 : vector<1x16x16x32xbf16> to vector<16x16x32xbf16>
    %99 = vector.shape_cast %98 : vector<16x16x32xbf16> to vector<256x32xbf16>
    %c2_i32_75 = arith.constant 2 : i32
    %100 = arith.addi %1, %c2_i32_75 : i32
    %c0_76 = arith.constant 0 : index
    %101 = arith.index_cast %100 : i32 to index
    %c2_77 = arith.constant 2 : index
    %c0_78 = arith.constant 0 : index
    %102 = vector.load %arg2[%c0_76, %101, %c2_77, %c0_78] : memref<1x18x18x32xbf16, #tpu.memory_space<vmem>>, vector<1x16x16x32xbf16>
    %103 = vector.shape_cast %102 : vector<1x16x16x32xbf16> to vector<16x16x32xbf16>
    %104 = vector.shape_cast %103 : vector<16x16x32xbf16> to vector<256x32xbf16>
    %c8 = arith.constant 8 : index
    %c0_79 = arith.constant 0 : index
    %c0_80 = arith.constant 0 : index
    %105 = vector.load %arg3[%c8, %c0_79, %c0_80] : memref<16x32x32xbf16, #tpu.memory_space<vmem>>, vector<1x32x32xbf16>
    %106 = vector.shape_cast %105 : vector<1x32x32xbf16> to vector<32x32xbf16>
    %cst_81 = arith.constant dense<0.000000e+00> : vector<256x32xf32>
    %107 = tpu.matmul %79, %106, %cst_81 {dimension_numbers = #tpu.dot_dimension_numbers<[1], [0], [0], [1], [0, 0, 1, 1], [], []>} : vector<256x32xbf16>, vector<32x32xbf16>, vector<256x32xf32> -> vector<256x32xf32>
    %c9 = arith.constant 9 : index
    %c0_82 = arith.constant 0 : index
    %c0_83 = arith.constant 0 : index
    %108 = vector.load %arg3[%c9, %c0_82, %c0_83] : memref<16x32x32xbf16, #tpu.memory_space<vmem>>, vector<1x32x32xbf16>
    %109 = vector.shape_cast %108 : vector<1x32x32xbf16> to vector<32x32xbf16>
    %cst_84 = arith.constant dense<0.000000e+00> : vector<256x32xf32>
    %110 = tpu.matmul %84, %109, %cst_84 {dimension_numbers = #tpu.dot_dimension_numbers<[1], [0], [0], [1], [0, 0, 1, 1], [], []>} : vector<256x32xbf16>, vector<32x32xbf16>, vector<256x32xf32> -> vector<256x32xf32>
    %111 = arith.addf %107, %110 : vector<256x32xf32>
    %c10 = arith.constant 10 : index
    %c0_85 = arith.constant 0 : index
    %c0_86 = arith.constant 0 : index
    %112 = vector.load %arg3[%c10, %c0_85, %c0_86] : memref<16x32x32xbf16, #tpu.memory_space<vmem>>, vector<1x32x32xbf16>
    %113 = vector.shape_cast %112 : vector<1x32x32xbf16> to vector<32x32xbf16>
    %cst_87 = arith.constant dense<0.000000e+00> : vector<256x32xf32>
    %114 = tpu.matmul %94, %113, %cst_87 {dimension_numbers = #tpu.dot_dimension_numbers<[1], [0], [0], [1], [0, 0, 1, 1], [], []>} : vector<256x32xbf16>, vector<32x32xbf16>, vector<256x32xf32> -> vector<256x32xf32>
    %115 = arith.addf %111, %114 : vector<256x32xf32>
    %c11 = arith.constant 11 : index
    %c0_88 = arith.constant 0 : index
    %c0_89 = arith.constant 0 : index
    %116 = vector.load %arg3[%c11, %c0_88, %c0_89] : memref<16x32x32xbf16, #tpu.memory_space<vmem>>, vector<1x32x32xbf16>
    %117 = vector.shape_cast %116 : vector<1x32x32xbf16> to vector<32x32xbf16>
    %cst_90 = arith.constant dense<0.000000e+00> : vector<256x32xf32>
    %118 = tpu.matmul %99, %117, %cst_90 {dimension_numbers = #tpu.dot_dimension_numbers<[1], [0], [0], [1], [0, 0, 1, 1], [], []>} : vector<256x32xbf16>, vector<32x32xbf16>, vector<256x32xf32> -> vector<256x32xf32>
    %119 = arith.addf %115, %118 : vector<256x32xf32>
    %120 = vector.broadcast %2 : vector<1x32xf32> to vector<256x32xf32>
    %121 = arith.addf %119, %120 : vector<256x32xf32>
    %122 = vector.shape_cast %121 : vector<256x32xf32> to vector<16x16x32xf32>
    %c0_91 = arith.constant 0 : index
    %c0_92 = arith.constant 0 : index
    %c1_93 = arith.constant 1 : index
    %c0_94 = arith.constant 0 : index
    %c0_95 = arith.constant 0 : index
    %123 = vector.load %arg5[%c0_91, %c0_92, %c1_93, %c0_94, %c0_95] : memref<1x16x2x16x64xf32, #tpu.memory_space<vmem>>, vector<1x16x1x16x32xf32>
    %124 = vector.shape_cast %123 : vector<1x16x1x16x32xf32> to vector<16x16x32xf32>
    %125 = vector.shape_cast %122 : vector<16x16x32xf32> to vector<1x16x1x16x32xf32>
    tpu.vector_store %arg5[%c0_91, %c0_92, %c1_93, %c0_94, %c0_95], %125 {strides = array<i32>} : memref<1x16x2x16x64xf32, #tpu.memory_space<vmem>>, vector<1x16x1x16x32xf32>,
    %c12 = arith.constant 12 : index
    %c0_96 = arith.constant 0 : index
    %c0_97 = arith.constant 0 : index
    %126 = vector.load %arg3[%c12, %c0_96, %c0_97] : memref<16x32x32xbf16, #tpu.memory_space<vmem>>, vector<1x32x32xbf16>
    %127 = vector.shape_cast %126 : vector<1x32x32xbf16> to vector<32x32xbf16>
    %cst_98 = arith.constant dense<0.000000e+00> : vector<256x32xf32>
    %128 = tpu.matmul %84, %127, %cst_98 {dimension_numbers = #tpu.dot_dimension_numbers<[1], [0], [0], [1], [0, 0, 1, 1], [], []>} : vector<256x32xbf16>, vector<32x32xbf16>, vector<256x32xf32> -> vector<256x32xf32>
    %c13 = arith.constant 13 : index
    %c0_99 = arith.constant 0 : index
    %c0_100 = arith.constant 0 : index
    %129 = vector.load %arg3[%c13, %c0_99, %c0_100] : memref<16x32x32xbf16, #tpu.memory_space<vmem>>, vector<1x32x32xbf16>
    %130 = vector.shape_cast %129 : vector<1x32x32xbf16> to vector<32x32xbf16>
    %cst_101 = arith.constant dense<0.000000e+00> : vector<256x32xf32>
    %131 = tpu.matmul %89, %130, %cst_101 {dimension_numbers = #tpu.dot_dimension_numbers<[1], [0], [0], [1], [0, 0, 1, 1], [], []>} : vector<256x32xbf16>, vector<32x32xbf16>, vector<256x32xf32> -> vector<256x32xf32>
    %132 = arith.addf %128, %131 : vector<256x32xf32>
    %c14 = arith.constant 14 : index
    %c0_102 = arith.constant 0 : index
    %c0_103 = arith.constant 0 : index
    %133 = vector.load %arg3[%c14, %c0_102, %c0_103] : memref<16x32x32xbf16, #tpu.memory_space<vmem>>, vector<1x32x32xbf16>
    %134 = vector.shape_cast %133 : vector<1x32x32xbf16> to vector<32x32xbf16>
    %cst_104 = arith.constant dense<0.000000e+00> : vector<256x32xf32>
    %135 = tpu.matmul %99, %134, %cst_104 {dimension_numbers = #tpu.dot_dimension_numbers<[1], [0], [0], [1], [0, 0, 1, 1], [], []>} : vector<256x32xbf16>, vector<32x32xbf16>, vector<256x32xf32> -> vector<256x32xf32>
    %136 = arith.addf %132, %135 : vector<256x32xf32>
    %c15 = arith.constant 15 : index
    %c0_105 = arith.constant 0 : index
    %c0_106 = arith.constant 0 : index
    %137 = vector.load %arg3[%c15, %c0_105, %c0_106] : memref<16x32x32xbf16, #tpu.memory_space<vmem>>, vector<1x32x32xbf16>
    %138 = vector.shape_cast %137 : vector<1x32x32xbf16> to vector<32x32xbf16>
    %cst_107 = arith.constant dense<0.000000e+00> : vector<256x32xf32>
    %139 = tpu.matmul %104, %138, %cst_107 {dimension_numbers = #tpu.dot_dimension_numbers<[1], [0], [0], [1], [0, 0, 1, 1], [], []>} : vector<256x32xbf16>, vector<32x32xbf16>, vector<256x32xf32> -> vector<256x32xf32>
    %140 = arith.addf %136, %139 : vector<256x32xf32>
    %141 = vector.broadcast %2 : vector<1x32xf32> to vector<256x32xf32>
    %142 = arith.addf %140, %141 : vector<256x32xf32>
    %143 = vector.shape_cast %142 : vector<256x32xf32> to vector<16x16x32xf32>
    %c0_108 = arith.constant 0 : index
    %c0_109 = arith.constant 0 : index
    %c1_110 = arith.constant 1 : index
    %c0_111 = arith.constant 0 : index
    %c32_112 = arith.constant 32 : index
    %144 = vector.load %arg5[%c0_108, %c0_109, %c1_110, %c0_111, %c32_112] : memref<1x16x2x16x64xf32, #tpu.memory_space<vmem>>, vector<1x16x1x16x32xf32>
    %145 = vector.shape_cast %144 : vector<1x16x1x16x32xf32> to vector<16x16x32xf32>
    %146 = vector.shape_cast %143 : vector<16x16x32xf32> to vector<1x16x1x16x32xf32>
    tpu.vector_store %arg5[%c0_108, %c0_109, %c1_110, %c0_111, %c32_112], %146 {strides = array<i32>} : memref<1x16x2x16x64xf32, #tpu.memory_space<vmem>>, vector<1x16x1x16x32xf32>,
    return
  }
  func.func @transform_0(%arg0: i32, %arg1: i32) -> (i32, i32, i32, i32) {
    %c0_i32 = arith.constant 0 : i32
    %c0_i32_0 = arith.constant 0 : i32
    %c0_i32_1 = arith.constant 0 : i32
    %c0_i32_2 = arith.constant 0 : i32
    return %arg0, %c0_i32, %c0_i32_0, %c0_i32_1 : i32, i32, i32, i32
  }
  func.func @transform_1(%arg0: i32, %arg1: i32) -> (i32, i32, i32) {
    %c0_i32 = arith.constant 0 : i32
    %c0_i32_0 = arith.constant 0 : i32
    %c0_i32_1 = arith.constant 0 : i32
    %c0_i32_2 = arith.constant 0 : i32
    return %c0_i32, %c0_i32_0, %c0_i32_1 : i32, i32, i32
  }
  func.func @transform_2(%arg0: i32, %arg1: i32) -> (i32, i32) {
    %c0_i32 = arith.constant 0 : i32
    %c0_i32_0 = arith.constant 0 : i32
    %c0_i32_1 = arith.constant 0 : i32
    return %c0_i32, %c0_i32_0 : i32, i32
  }
  func.func @transform_3(%arg0: i32, %arg1: i32) -> (i32, i32, i32, i32, i32) {
    %c0_i32 = arith.constant 0 : i32
    %c0_i32_0 = arith.constant 0 : i32
    %c0_i32_1 = arith.constant 0 : i32
    %c0_i32_2 = arith.constant 0 : i32
    return %arg0, %arg1, %c0_i32, %c0_i32_0, %c0_i32_1 : i32, i32, i32, i32, i32
  }
}

</mosaic_0001>

<bundles_post_ra>
// kernel: upsample_forward_nhwc.1
= control target key start
LH: loop header
LB: loop body
LE: loop exit
PB: predicated region body
PF: predicated region fallthrough
CT: control target
= control target key end

     0   :  { %s9887_s12 = smov 0   ;;  %s9889_s13 = smov 0   ;;  %s13499_s0 = inlined_call_operand.vmem [shape: bf16[2,18,18,32], index: 0, kind: input, shape index: {}]   ;;  %s13500_s1 = inlined_call_operand.vmem [shape: bf16[16,32,32], index: 1, kind: input, shape index: {}]   ;;  %s13501_s2 = inlined_call_operand.vmem [shape: f32[1,32], index: 2, kind: input, shape index: {}]   ;;  %s13502_s3 = inlined_call_operand.vmem [shape: f32[2,16,2,16,64], index: 3, kind: output, shape index: {}]  }
   0x1   :  { %s9891_s14 = smov 0  }
   0x2 LB: > { %s25_s15 = sadd.s32 1, %s9860_s13  ;;  %p7589_p0 = scmp.ge.s32.totalorder %s9864_s14, 1  ;;  %s9864_s14 = sphi %s9891_s14, %s13_s14   ;;  %s9860_s13 = sphi %s9889_s13, %s13896_s13   ;;  %s9856_s12 = sphi %s9887_s12, %s13895_s12  }
   0x3   : > { %p27_p1 = scmp.ge.s32.totalorder %s25_s15, 2  ;;  %p151_p2 = scmp.lt.s32.totalorder %s9864_s14, 3 }
   0x5   : > { %s13898_s15 = smov (%p27_p1, %s25_s15), 0  ;;  %p152_p3 = pnand %p7589_p0, %p151_p2 }
   0x7   : > { %155 = sbr.rel (%p152_p3) target bundleno = 898 (0x382), region = 32 }
   0xe   : > { %v9731_v0 = vld [vmem:[%s13500_s1 + $0x50] sm:$0xff]   ;;  %p180_p4 = scmp.lt.s32.totalorder %s9856_s12, 1  ;;  %v9732_v1 = vld [vmem:[%s13500_s1 + $0x58] sm:$0xff]   ;;  %vm701_vm0 = vcmask 1042432   ;;  %vm702_vm1 = vcmask 1046532   ;;  %v9920_v3 = vld [vmem:[%s13500_s1 + $0x40] sm:$0xff]  }
   0xf   : > { %8889 = vmatprep.subr.bf16.mxu1 %v9731_v0  ;;  %v9733_v2 = vld [vmem:[%s13500_s1 + $0x10] sm:$0xff]   ;;  %vm1497_vm2 = vcmask 261120   ;;  %v9735_v4 = vld [vmem:[%s13500_s1 + $0x18] sm:$0xff]   ;;  %vm250_vm3 = vsmask.f32 3328  ;;  %vm9930_vm4 = vmor %vm701_vm0, %vm702_vm1  ;;  %v13609_v5 = vmov 0 }
  0x10   : > { %s13900_s12 = smov (!%p180_p4, %s9856_s12), 1  ;;  %8890 = vmatpush3.bf16.msra.mxu1 %v9731_v0  ;;  %8745 = vmatprep.subr.bf16.mxu0 %v9733_v2  ;;  %v13610_v5 = vsel %vm9930_vm4, 4294967295, %v13609_v5  ;;  %vm251_vm5 = vsmask.f32 7440  ;;  %v9949_v23 = vld [vmem:[%s13500_s1] sm:$0xff]   ;;  %v9736_v38 = vld [vmem:[%s13500_s1 + $0x48] sm:$0xff]  }
  0x11   : > { %8891 = vmatprep.subr.bf16.mxu1 %v9732_v1  ;;  %s9705_s22 = smul.u32 216, %s13900_s12  ;;  %8746 = vmatpush3.bf16.msra.mxu0 %v9733_v2  ;;  %13611 = vst [vmem:[#allocation2_spill] sm:$0xff] %v13610_v5  ;;  %vm9974_vm6 = vmor %vm250_vm3, %vm251_vm5  ;;  %v9995_v2 = vld [vmem:[%s13500_s1 + $0x60] sm:$0xff]   ;;  %s9866_s19 = smov 32   ;;  %vm3818_vm7 = vcmask 523520  }
  0x12   : > { %8747 = vmatprep.subr.bf16.mxu0 %v9735_v4  ;;  %s8456_s20 = sshll.u32 %s13900_s12, 9 }
  0x13   : > { %s9928_s29 = scalar_lea.vmem %s13499_s0, %s9705_s22  ;;  %s12849_s22 = scalar_lea.vmem %s13502_s3, %s8456_s20 }
  0x14   : > { %8892 = vmatpush3.bf16.msra.mxu1 %v9732_v1  ;;  %v203_v6 = vld [vmem:[%s9928_s29 + $0x4] sm:$0xf]  ;;  %v234_v7 = vld [vmem:[%s9928_s29 + $0x8] sm:$0x1]  ;;  %v637_v8 = vld [vmem:[%s9928_s29] sm:$0xe] }
  0x15   : > { %v7593_v9 = vrot.slane %v637_v8, 9  ;;  %v706_v10 = vrot.slane %v203_v6, 5  ;;  %v709_v11 = vrot.slane %v234_v7, 5  ;;  %8925 = vmatprep.subr.bf16.mxu1 %v9920_v3  ;;  %v205_v12 = vld [vmem:[%s9928_s29 + $0x10] sm:$0xf]  ;;  %v263_v13 = vshll.u32 %v203_v6, 16  ;;  %8748 = vmatpush3.bf16.msra.mxu0 %v9735_v4 }
  0x16   : > { %v235_v14 = vld [vmem:[%s9928_s29 + $0x14] sm:$0x1]  ;;  %v638_v15 = vld [vmem:[%s9928_s29 + $0xc] sm:$0xe]  ;;  %v713_v16 = vrot.slane %v205_v12, 5  ;;  %v267_v17 = vshrl.u32 %v203_v6, 16  ;;  %8781 = vmatprep.subr.bf16.mxu0 %v9949_v23 }
  0x17   : > { %v707_v18 = vsel %vm9930_vm4, %v7593_v9, %v706_v10  ;;  %v708_v19 = vrot.slane %v706_v10, 4  ;;  %v7594_v20 = vrot.slane %v638_v15, 9  ;;  %v716_v21 = vrot.slane %v235_v14, 5  ;;  %v9944_v22 = vld [vmem:[%s9928_s29] sm:$0xf] }
  0x18   : > { %v715_v24 = vrot.slane %v713_v16, 4  ;;  %v254_v25 = vshrl.u32 %v9944_v22, 16  ;;  %v257_v26 = vshll.u32 %v9944_v22, 16  ;;  %v265_v27 = vrot.slane %v263_v13, 5  ;;  %v204_v28 = vld [vmem:[%s9928_s29 + $0xc] sm:$0xf] }
  0x19   : > { %v710_v29 = vsel %vm9930_vm4, %v708_v19, %v709_v11  ;;  %v714_v30 = vsel %vm9930_vm4, %v7594_v20, %v713_v16  ;;  %v269_v31 = vrot.slane %v267_v17, 4  ;;  %v273_v32 = vshll.u32 %v234_v7, 16  ;;  %v639_v37 = vld [vmem:[%s9928_s29 + $0x18] sm:$0xe]  ;;  %v9966_v43 = vld [vmem:[%s9928_s29 + $0x1c] sm:$0xf] }
  0x1a   : > { %v7846_v33 = vcombine.low %v707_v18, %v710_v29  ;;  %v717_v34 = vsel %vm9930_vm4, %v715_v24, %v716_v21  ;;  %v256_v35 = vrot.slane %v254_v25, 4  ;;  %v259_v36 = vrot.slane %v257_v26, 5  ;;  %v9969_v44 = vld [vmem:[%s9928_s29 + $0x20] sm:$0x1]  ;;  %v9979_v50 = vld [vmem:[%s9928_s29 + $0x28] sm:$0xf] }
  0x1b   : > { %v7847_v39 = vcombine.low %v714_v30, %v717_v34  ;;  %v270_v40 = vor.u32 %v269_v31, %v265_v27  ;;  %v275_v41 = vrot.slane %v273_v32, 5  ;;  %v278_v42 = vshrl.u32 %v204_v28, 16  ;;  %v640_v55 = vld [vmem:[%s9928_s29 + $0x24] sm:$0xe]  ;;  %v9985_v60 = vld [vmem:[%s9928_s29 + $0x2c] sm:$0x1] }
  0x1c   : > { %8893 = vmatprep.mubr.msk.bf16.mxu1 %vm1497_vm2, %v7846_v33  ;;  %v260_v46 = vor.u32 %v259_v36, %v256_v35  ;;  %v281_v47 = vshll.u32 %v204_v28, 16  ;;  %v287_v48 = vshll.u32 %v205_v12, 16  ;;  %v291_v49 = vshrl.u32 %v205_v12, 16  ;;  %v206_v1 = vld [vmem:[%s9928_s29 + $0x18] sm:$0xf]  ;;  %v9739_v32 = vld [vmem:[%s13500_s1 + $0x8] sm:$0xff]  }
  0x1d   : > { %8894 = vmatmul.mubr.msk.bf16.vlgmr.msra.gmra.mrb[0].mxu1 %vm1497_vm2, %v7847_v39  ;;  %v271_v51 = vrot.slane %v270_v40, 4  ;;  %v280_v52 = vrot.slane %v278_v42, 4  ;;  %v297_v53 = vshll.u32 %v235_v14, 16  ;;  %v7595_v54 = vrot.slane %v639_v37, 9  ;;  %v208_v20 = vld [vmem:[%s9928_s29 + $0x24] sm:$0xf] }
  0x1e   : > { %8926 = vmatpush3.bf16.msra.mxu1 %v9920_v3  ;;  %v261_v56 = vrot.slane %v260_v46, 4  ;;  %v283_v57 = vrot.slane %v281_v47, 5  ;;  %v289_v58 = vrot.slane %v287_v48, 5  ;;  %v293_v59 = vrot.slane %v291_v49, 4  ;;  %v10023_v31 = vld [vmem:[%s9928_s29 + $0x34] sm:$0xf] }
  0x1f   : > { %v276_v61 = vsel %vm9974_vm6, %v271_v51, %v275_v41  ;;  %v299_v62 = vrot.slane %v297_v53, 5  ;;  %v720_v63 = vrot.slane %v9966_v43, 5  ;;  %v723_v0 = vrot.slane %v9969_v44, 5  ;;  %8927 = vmatprep.subr.bf16.mxu1 %v9736_v38  ;;  %v10032_v37 = vld [vmem:[%s9928_s29 + $0x38] sm:$0x1] }
  0x20   : > { %v266_v3 = vsel %vm9974_vm6, %v261_v56, %v265_v27  ;;  %v284_v4 = vor.u32 %v283_v57, %v280_v52  ;;  %v294_v6 = vor.u32 %v293_v59, %v289_v58  ;;  %v7596_v7 = vrot.slane %v640_v55, 9  ;;  %v641_v42 = vld [vmem:[%s9928_s29 + $0x30] sm:$0xe]  ;;  %v10041_v48 = vld [vmem:[%s9928_s29 + $0x40] sm:$0xf] }
  0x21   : > { %v9999_v8 = vcombine.low %v266_v3, %v276_v61  ;;  %v721_v9 = vsel %vm9930_vm4, %v7595_v54, %v720_v63  ;;  %v722_v10 = vrot.slane %v720_v63, 4  ;;  %v727_v11 = vrot.slane %v9979_v50, 5  ;;  %v10046_v54 = vld [vmem:[%s9928_s29 + $0x44] sm:$0x1]  ;;  %v642_v59 = vld [vmem:[%s9928_s29 + $0x3c] sm:$0xe] }
  0x22   : > { %v285_v12 = vrot.slane %v284_v4, 4  ;;  %v295_v13 = vrot.slane %v294_v6, 4  ;;  %v730_v14 = vrot.slane %v9985_v60, 5  ;;  %v302_v15 = vshrl.u32 %v206_v1, 16  ;;  %8928 = vmatpush3.bf16.msra.mxu1 %v9736_v38  ;;  %v10054_v63 = vld [vmem:[%s9928_s29 + $0x30] sm:$0xf] }
  0x23   : > { %8749 = vmatprep.mubr.msk.bf16.mxu0 %vm1497_vm2, %v9999_v8  ;;  %v724_v16 = vsel %vm9930_vm4, %v722_v10, %v723_v0  ;;  %v728_v17 = vsel %vm9930_vm4, %v7596_v7, %v727_v11  ;;  %v729_v18 = vrot.slane %v727_v11, 4  ;;  %v305_v19 = vshll.u32 %v206_v1, 16  ;;  %8961 = vmatprep.subr.bf16.mxu1 %v9995_v2  ;;  %v10517_v5 = vld [vmem:[%s9928_s29 + $0x34] sm:$0xf] }
  0x24   : > { %v290_v21 = vsel %vm9974_vm6, %v285_v12, %v289_v58  ;;  %v300_v24 = vsel %vm9974_vm6, %v295_v13, %v299_v62  ;;  %v7848_v25 = vcombine.low %v721_v9, %v724_v16  ;;  %v304_v26 = vrot.slane %v302_v15, 4 }
  0x25   : > { %v10017_v27 = vcombine.low %v290_v21, %v300_v24  ;;  %v731_v28 = vsel %vm9930_vm4, %v729_v18, %v730_v14  ;;  %v307_v29 = vrot.slane %v305_v19, 5  ;;  %v311_v30 = vshll.u32 %v9966_v43, 16  ;;  %v10072_v18 = vld [vmem:[%s9928_s29 + $0x3c] sm:$0xf] }
  0x26   : > { %8897 = vmatprep.mubr.msk.bf16.mxu1 %vm1497_vm2, %v7848_v25  ;;  %v7849_v33 = vcombine.low %v728_v17, %v731_v28  ;;  %v315_v34 = vshrl.u32 %v9966_v43, 16  ;;  %v321_v35 = vshll.u32 %v9969_v44, 16  ;;  %v326_v36 = vshrl.u32 %v208_v20, 16 }
  0x27   : > { %8750 = vmatmul.mubr.msk.bf16.vlgmr.msra.gmra.mrb[0].mxu0 %vm1497_vm2, %v10017_v27  ;;  %v308_v38 = vor.u32 %v307_v29, %v304_v26  ;;  %v313_v39 = vrot.slane %v311_v30, 5  ;;  %v329_v40 = vshll.u32 %v208_v20, 16  ;;  %v335_v41 = vshll.u32 %v9979_v50, 16 }
  0x28   : > { %8898 = vmatmul.mubr.msk.bf16.gmra.mrb[4].mxu1 %vm1497_vm2, %v7849_v33  ;;  %v317_v46 = vrot.slane %v315_v34, 4  ;;  %v323_v43 = vrot.slane %v321_v35, 5  ;;  %v328_v47 = vrot.slane %v326_v36, 4  ;;  %v339_v44 = vshrl.u32 %v9979_v50, 16  ;;  %8782 = vmatpush3.bf16.msra.mxu0 %v9949_v23  ;;  %v643_v35 = vld [vmem:[%s9928_s29 + $0x48] sm:$0xe] }
  0x29   : > { %v309_v49 = vrot.slane %v308_v38, 4  ;;  %v331_v51 = vrot.slane %v329_v40, 5  ;;  %v337_v52 = vrot.slane %v335_v41, 5  ;;  %v345_v53 = vshll.u32 %v9985_v60, 16  ;;  %8783 = vmatprep.subr.bf16.mxu0 %v9739_v32  ;;  %v10093_v40 = vld [vmem:[%s9928_s29 + $0x4c] sm:$0xf] }
  0x2a   : > { %v318_v55 = vor.u32 %v317_v46, %v313_v39  ;;  %v341_v56 = vrot.slane %v339_v44, 4  ;;  %v7597_v57 = vrot.slane %v641_v42, 9  ;;  %v734_v58 = vrot.slane %v10023_v31, 5 }
  0x2b   : > { %v314_v50 = vsel %vm9974_vm6, %v309_v49, %v313_v39  ;;  %v332_v61 = vor.u32 %v331_v51, %v328_v47  ;;  %v347_v23 = vrot.slane %v345_v53, 5  ;;  %v737_v62 = vrot.slane %v10032_v37, 5 }
  0x2c   : > { %v319_v0 = vrot.slane %v318_v55, 4  ;;  %v342_v60 = vor.u32 %v341_v56, %v337_v52  ;;  %v735_v1 = vsel %vm9930_vm4, %v7597_v57, %v734_v58  ;;  %v736_v3 = vrot.slane %v734_v58, 4  ;;  %8784 = vmatpush3.bf16.msra.mxu0 %v9739_v32  ;;  %v644_v58 = vld [vmem:[%s9928_s29 + $0x54] sm:$0xe] }
  0x2d   : > { %v333_v4 = vrot.slane %v332_v61, 4  ;;  %v7598_v6 = vrot.slane %v642_v59, 9  ;;  %v741_v7 = vrot.slane %v10041_v48, 5  ;;  %v744_v9 = vrot.slane %v10046_v54, 5 }
  0x2e   : > { %v324_v10 = vsel %vm9974_vm6, %v319_v0, %v323_v43  ;;  %v343_v11 = vrot.slane %v342_v60, 4  ;;  %v738_v12 = vsel %vm9930_vm4, %v736_v3, %v737_v62  ;;  %v350_v13 = vshrl.u32 %v10054_v63, 16  ;;  %v240_v43 = vld [vmem:[%s9928_s29 + $0x50] sm:$0x1]  ;;  %v241_v62 = vld [vmem:[%s9928_s29 + $0x5c] sm:$0x1] }
  0x2f   : > { %v10065_v14 = vcombine.low %v314_v50, %v324_v10  ;;  %v338_v15 = vsel %vm9974_vm6, %v333_v4, %v337_v52  ;;  %v7850_v16 = vcombine.low %v735_v1, %v738_v12  ;;  %v742_v17 = vsel %vm9930_vm4, %v7598_v6, %v741_v7  ;;  %v10101_v52 = vld [vmem:[%s9928_s29 + $0x58] sm:$0xf] }
  0x30   : > { %v348_v19 = vsel %vm9974_vm6, %v343_v11, %v347_v23  ;;  %v743_v20 = vrot.slane %v741_v7, 4  ;;  %v352_v21 = vrot.slane %v350_v13, 4  ;;  %v353_v24 = vshll.u32 %v10054_v63, 16  ;;  %v10114_v7 = vld [vmem:[%s9928_s29 + $0x48] sm:$0xf] }
  0x31   : > { %8753 = vmatprep.mubr.msk.bf16.mxu0 %vm1497_vm2, %v10065_v14  ;;  %v10079_v25 = vcombine.low %v338_v15, %v348_v19  ;;  %8901 = vmatprep.mubr.msk.bf16.mxu1 %vm1497_vm2, %v7850_v16  ;;  %v359_v26 = vshll.u32 %v10023_v31, 16  ;;  %v363_v28 = vshrl.u32 %v10023_v31, 16  ;;  %v369_v29 = vshll.u32 %v10032_v37, 16  ;;  %v10123_v13 = vld [vmem:[%s9928_s29 + $0x54] sm:$0xf]  ;;  %v10128_v15 = vld [vmem:[%s13500_s1 + $0x20] sm:$0xff]  }
  0x32   : > { %v745_v30 = vsel %vm9930_vm4, %v743_v20, %v744_v9  ;;  %v355_v32 = vrot.slane %v353_v24, 5  ;;  %v374_v33 = vshrl.u32 %v10072_v18, 16  ;;  %v377_v34 = vshll.u32 %v10072_v18, 16  ;;  %8817 = vmatprep.subr.bf16.mxu0 %v10128_v15 }
  0x33   : > { %8754 = vmatmul.mubr.msk.bf16.gmra.mrb[4].mxu0 %vm1497_vm2, %v10079_v25  ;;  %v7851_v36 = vcombine.low %v742_v17, %v745_v30  ;;  %v361_v38 = vrot.slane %v359_v26, 5  ;;  %v365_v39 = vrot.slane %v363_v28, 4  ;;  %v371_v31 = vrot.slane %v369_v29, 5 }
  0x34   : > { %v356_v37 = vor.u32 %v355_v32, %v352_v21  ;;  %v376_v41 = vrot.slane %v374_v33, 4  ;;  %v379_v42 = vrot.slane %v377_v34, 5  ;;  %v383_v46 = vshll.u32 %v10041_v48, 16  ;;  %v10146_v34 = vld [vmem:[%s9928_s29 + $0x64] sm:$0xf] }
  0x35   : > { %8902 = vmatmul.mubr.msk.bf16.gmra.mrb[8].mxu1 %vm1497_vm2, %v7851_v36  ;;  %v366_v47 = vor.u32 %v365_v39, %v361_v38  ;;  %v387_v44 = vshrl.u32 %v10041_v48, 16  ;;  %v393_v49 = vshll.u32 %v10046_v54, 16  ;;  %v7599_v51 = vrot.slane %v643_v35, 9 }
  0x36   : > { %v357_v53 = vrot.slane %v356_v37, 4  ;;  %v380_v55 = vor.u32 %v379_v42, %v376_v41  ;;  %v385_v56 = vrot.slane %v383_v46, 5  ;;  %v748_v57 = vrot.slane %v10093_v40, 5 }
  0x37   : > { %v367_v59 = vrot.slane %v366_v47, 4  ;;  %v389_v50 = vrot.slane %v387_v44, 4  ;;  %v395_v61 = vrot.slane %v393_v49, 5  ;;  %v751_v23 = vrot.slane %v240_v43, 5  ;;  %v10152_v47 = vld [vmem:[%s9928_s29 + $0x68] sm:$0x1] }
  0x38   : > { %v362_v48 = vsel %vm9974_vm6, %v357_v53, %v361_v38  ;;  %v381_v54 = vrot.slane %v380_v55, 4  ;;  %v749_v0 = vsel %vm9930_vm4, %v7599_v51, %v748_v57  ;;  %v750_v60 = vrot.slane %v748_v57, 4  ;;  %v10161_v53 = vld [vmem:[%s9928_s29 + $0x70] sm:$0xf]  ;;  %v10164_v55 = vld [vmem:[%s9928_s29 + $0x74] sm:$0x1] }
  0x39   : > { %v372_v1 = vsel %vm9974_vm6, %v367_v59, %v371_v31  ;;  %v390_v3 = vor.u32 %v389_v50, %v385_v56  ;;  %v7600_v4 = vrot.slane %v644_v58, 9  ;;  %v755_v6 = vrot.slane %v10101_v52, 5  ;;  %v645_v31 = vld [vmem:[%s9928_s29 + $0x60] sm:$0xe] }
  0x3a   : > { %v10116_v9 = vcombine.low %v362_v48, %v372_v1  ;;  %v386_v10 = vsel %vm9974_vm6, %v381_v54, %v385_v56  ;;  %v752_v11 = vsel %vm9930_vm4, %v750_v60, %v751_v23  ;;  %v758_v12 = vrot.slane %v241_v62, 5  ;;  %v646_v56 = vld [vmem:[%s9928_s29 + $0x6c] sm:$0xe] }
  0x3b   : > { %v391_v16 = vrot.slane %v390_v3, 4  ;;  %v7852_v17 = vcombine.low %v749_v0, %v752_v11  ;;  %v756_v19 = vsel %vm9930_vm4, %v7600_v4, %v755_v6  ;;  %v757_v20 = vrot.slane %v755_v6, 4  ;;  %v10169_v0 = vld [vmem:[%s9928_s29 + $0x60] sm:$0xf] }
  0x3c   : > { %8757 = vmatprep.mubr.msk.bf16.mxu0 %vm1497_vm2, %v10116_v9  ;;  %v398_v21 = vshrl.u32 %v10114_v7, 16  ;;  %v401_v24 = vshll.u32 %v10114_v7, 16  ;;  %v407_v26 = vshll.u32 %v10093_v40, 16  ;;  %v411_v28 = vshrl.u32 %v10093_v40, 16 }
  0x3d   : > { %v396_v29 = vsel %vm9974_vm6, %v391_v16, %v395_v61  ;;  %8905 = vmatprep.mubr.msk.bf16.mxu1 %vm1497_vm2, %v7852_v17  ;;  %v759_v30 = vsel %vm9930_vm4, %v757_v20, %v758_v12  ;;  %v417_v32 = vshll.u32 %v240_v43, 16  ;;  %v422_v33 = vshrl.u32 %v10123_v13, 16 }
  0x3e   : > { %v10148_v35 = vcombine.low %v386_v10, %v396_v29  ;;  %v7853_v36 = vcombine.low %v756_v19, %v759_v30  ;;  %v400_v38 = vrot.slane %v398_v21, 4  ;;  %v403_v39 = vrot.slane %v401_v24, 5 }
  0x3f   : > { %v409_v37 = vrot.slane %v407_v26, 5  ;;  %v413_v41 = vrot.slane %v411_v28, 4  ;;  %v419_v42 = vrot.slane %v417_v32, 5  ;;  %v424_v46 = vrot.slane %v422_v33, 4  ;;  %v10188_v33 = vld [vmem:[%s9928_s29 + $0x6c] sm:$0xf] }
  0x40   : > { %8758 = vmatmul.mubr.msk.bf16.gmra.mrb[8].mxu0 %vm1497_vm2, %v10148_v35  ;;  %8906 = vmatmul.mubr.msk.bf16.gmra.mrb[12].mxu1 %vm1497_vm2, %v7853_v36  ;;  %v404_v43 = vor.u32 %v403_v39, %v400_v38  ;;  %v425_v44 = vshll.u32 %v10123_v13, 16  ;;  %v431_v49 = vshll.u32 %v10101_v52, 16  ;;  %v435_v51 = vshrl.u32 %v10101_v52, 16 }
  0x41   : > { %v414_v57 = vor.u32 %v413_v41, %v409_v37  ;;  %v441_v58 = vshll.u32 %v241_v62, 16  ;;  %v7601_v59 = vrot.slane %v645_v31, 9  ;;  %v762_v50 = vrot.slane %v10146_v34, 5 }
  0x42   : > { %v405_v61 = vrot.slane %v404_v43, 4  ;;  %v427_v23 = vrot.slane %v425_v44, 5  ;;  %v433_v48 = vrot.slane %v431_v49, 5  ;;  %v437_v54 = vrot.slane %v435_v51, 4 }
  0x43   : > { %v415_v60 = vrot.slane %v414_v57, 4  ;;  %v443_v1 = vrot.slane %v441_v58, 5  ;;  %v763_v3 = vsel %vm9930_vm4, %v7601_v59, %v762_v50  ;;  %v764_v4 = vrot.slane %v762_v50, 4  ;;  %v10209_v57 = vld [vmem:[%s9928_s29 + $0x80] sm:$0x1] }
  0x44   : > { %v410_v6 = vsel %vm9974_vm6, %v405_v61, %v409_v37  ;;  %v428_v62 = vor.u32 %v427_v23, %v424_v46  ;;  %v438_v10 = vor.u32 %v437_v54, %v433_v48  ;;  %v765_v11 = vrot.slane %v10152_v47, 5  ;;  %v647_v23 = vld [vmem:[%s9928_s29 + $0x78] sm:$0xe] }
  0x45   : > { %v420_v12 = vsel %vm9974_vm6, %v415_v60, %v419_v42  ;;  %v7602_v16 = vrot.slane %v646_v56, 9  ;;  %v769_v17 = vrot.slane %v10161_v53, 5  ;;  %v772_v19 = vrot.slane %v10164_v55, 5  ;;  %v10206_v56 = vld [vmem:[%s9928_s29 + $0x7c] sm:$0xf] }
  0x46   : > { %v10180_v20 = vcombine.low %v410_v6, %v420_v12  ;;  %v429_v21 = vrot.slane %v428_v62, 4  ;;  %v439_v24 = vrot.slane %v438_v10, 4  ;;  %v766_v26 = vsel %vm9930_vm4, %v764_v4, %v765_v11  ;;  %v648_v10 = vld [vmem:[%s9928_s29 + $0x84] sm:$0xe] }
  0x47   : > { %v7854_v28 = vcombine.low %v763_v3, %v766_v26  ;;  %v770_v29 = vsel %vm9930_vm4, %v7602_v16, %v769_v17  ;;  %v771_v30 = vrot.slane %v769_v17, 4  ;;  %v446_v32 = vshrl.u32 %v10169_v0, 16 }
  0x48   : > { %8761 = vmatprep.mubr.msk.bf16.mxu0 %vm1497_vm2, %v10180_v20  ;;  %v434_v36 = vsel %vm9974_vm6, %v429_v21, %v433_v48  ;;  %v444_v38 = vsel %vm9974_vm6, %v439_v24, %v443_v1  ;;  %v449_v39 = vshll.u32 %v10169_v0, 16  ;;  %v455_v31 = vshll.u32 %v10146_v34, 16  ;;  %v10221_v1 = vld [vmem:[%s9928_s29 + $0x88] sm:$0xf] }
  0x49   : > { %v10198_v37 = vcombine.low %v434_v36, %v444_v38  ;;  %8909 = vmatprep.mubr.msk.bf16.mxu1 %vm1497_vm2, %v7854_v28  ;;  %v773_v41 = vsel %vm9930_vm4, %v771_v30, %v772_v19  ;;  %v448_v42 = vrot.slane %v446_v32, 4  ;;  %v459_v46 = vshrl.u32 %v10146_v34, 16  ;;  %v10231_v36 = vld [vmem:[%s9928_s29 + $0x78] sm:$0xf] }
  0x4a   : > { %v7855_v43 = vcombine.low %v770_v29, %v773_v41  ;;  %v451_v44 = vrot.slane %v449_v39, 5  ;;  %v457_v49 = vrot.slane %v455_v31, 5  ;;  %v465_v51 = vshll.u32 %v10152_v47, 16  ;;  %v245_v29 = vld [vmem:[%s9928_s29 + $0x8c] sm:$0x1] }
  0x4b   : > { %8762 = vmatmul.mubr.msk.bf16.gmra.mrb[12].mxu0 %vm1497_vm2, %v10198_v37  ;;  %v461_v58 = vrot.slane %v459_v46, 4  ;;  %v470_v59 = vshrl.u32 %v10188_v33, 16  ;;  %v473_v50 = vshll.u32 %v10188_v33, 16  ;;  %v479_v61 = vshll.u32 %v10161_v53, 16 }
  0x4c   : > { %8910 = vmatmul.mubr.msk.bf16.gmra.mrb[16].mxu1 %vm1497_vm2, %v7855_v43  ;;  %v452_v48 = vor.u32 %v451_v44, %v448_v42  ;;  %v467_v47 = vrot.slane %v465_v51, 5  ;;  %v483_v54 = vshrl.u32 %v10161_v53, 16  ;;  %v489_v60 = vshll.u32 %v10164_v55, 16 }
  0x4d   : > { %v462_v3 = vor.u32 %v461_v58, %v457_v49  ;;  %v472_v4 = vrot.slane %v470_v59, 4  ;;  %v475_v6 = vrot.slane %v473_v50, 5  ;;  %v481_v62 = vrot.slane %v479_v61, 5 }
  0x4e   : > { %v453_v11 = vrot.slane %v452_v48, 4  ;;  %v485_v12 = vrot.slane %v483_v54, 4  ;;  %v491_v16 = vrot.slane %v489_v60, 5  ;;  %v7603_v17 = vrot.slane %v647_v23, 9 }
  0x4f   : > { %v463_v19 = vrot.slane %v462_v3, 4  ;;  %v476_v21 = vor.u32 %v475_v6, %v472_v4  ;;  %v776_v24 = vrot.slane %v10206_v56, 5  ;;  %v779_v26 = vrot.slane %v10209_v57, 5 }
  0x50   : > { %v458_v55 = vsel %vm9974_vm6, %v453_v11, %v457_v49  ;;  %v486_v28 = vor.u32 %v485_v12, %v481_v62  ;;  %v7604_v30 = vrot.slane %v648_v10, 9  ;;  %v783_v32 = vrot.slane %v10221_v1, 5  ;;  %v10263_v12 = vld [vmem:[%s9928_s29 + $0x94] sm:$0xf] }
  0x51   : > { %v468_v38 = vsel %vm9974_vm6, %v463_v19, %v467_v47  ;;  %v477_v39 = vrot.slane %v476_v21, 4  ;;  %v777_v31 = vsel %vm9930_vm4, %v7603_v17, %v776_v24  ;;  %v778_v41 = vrot.slane %v776_v24, 4  ;;  %v10253_v47 = vld [vmem:[%s9928_s29 + $0x84] sm:$0xf] }
  0x52   : > { %v10237_v42 = vcombine.low %v458_v55, %v468_v38  ;;  %v487_v46 = vrot.slane %v486_v28, 4  ;;  %v784_v43 = vsel %vm9930_vm4, %v7604_v30, %v783_v32  ;;  %v785_v44 = vrot.slane %v783_v32, 4  ;;  %v10277_v32 = vld [vmem:[%s9928_s29 + $0xa0] sm:$0xf] }
  0x53   : > { %v482_v49 = vsel %vm9974_vm6, %v477_v39, %v481_v62  ;;  %v780_v51 = vsel %vm9930_vm4, %v778_v41, %v779_v26  ;;  %v786_v58 = vrot.slane %v245_v29, 5  ;;  %v494_v59 = vshrl.u32 %v10231_v36, 16  ;;  %v649_v26 = vld [vmem:[%s9928_s29 + $0x90] sm:$0xe] }
  0x54   : > { %8765 = vmatprep.mubr.msk.bf16.mxu0 %vm1497_vm2, %v10237_v42  ;;  %v492_v50 = vsel %vm9974_vm6, %v487_v46, %v491_v16  ;;  %v7856_v61 = vcombine.low %v777_v31, %v780_v51  ;;  %v497_v23 = vshll.u32 %v10231_v36, 16  ;;  %v503_v48 = vshll.u32 %v10206_v56, 16  ;;  %v10266_v16 = vld [vmem:[%s9928_s29 + $0x98] sm:$0x1]  ;;  %v650_v46 = vld [vmem:[%s9928_s29 + $0x9c] sm:$0xe] }
  0x55   : > { %v10255_v54 = vcombine.low %v482_v49, %v492_v50  ;;  %v787_v60 = vsel %vm9930_vm4, %v785_v44, %v786_v58  ;;  %v496_v3 = vrot.slane %v494_v59, 4  ;;  %v507_v4 = vshrl.u32 %v10206_v56, 16  ;;  %v247_v58 = vld [vmem:[%s9928_s29 + $0xa4] sm:$0x1] }
  0x56   : > { %8913 = vmatprep.mubr.msk.bf16.mxu1 %vm1497_vm2, %v7856_v61  ;;  %v7857_v6 = vcombine.low %v784_v43, %v787_v60  ;;  %v499_v62 = vrot.slane %v497_v23, 5  ;;  %v505_v10 = vrot.slane %v503_v48, 5  ;;  %v513_v11 = vshll.u32 %v10209_v57, 16 }
  0x57   : > { %8766 = vmatmul.mubr.msk.bf16.gmra.mrb[16].mxu0 %vm1497_vm2, %v10255_v54  ;;  %v509_v17 = vrot.slane %v507_v4, 4  ;;  %v518_v19 = vshrl.u32 %v10253_v47, 16  ;;  %v521_v21 = vshll.u32 %v10253_v47, 16  ;;  %v527_v24 = vshll.u32 %v10221_v1, 16 }
  0x58   : > { %8914 = vmatmul.mubr.msk.bf16.gmra.mrb[20].mxu1 %vm1497_vm2, %v7857_v6  ;;  %v500_v57 = vor.u32 %v499_v62, %v496_v3  ;;  %v515_v55 = vrot.slane %v513_v11, 5  ;;  %v531_v28 = vshrl.u32 %v10221_v1, 16  ;;  %v537_v30 = vshll.u32 %v245_v29, 16  ;;  %v10284_v29 = vld [vmem:[%s9928_s29 + $0x90] sm:$0xf] }
  0x59   : > { %v510_v38 = vor.u32 %v509_v17, %v505_v10  ;;  %v520_v39 = vrot.slane %v518_v19, 4  ;;  %v523_v31 = vrot.slane %v521_v21, 5  ;;  %v529_v41 = vrot.slane %v527_v24, 5 }
  0x5a   : > { %v501_v43 = vrot.slane %v500_v57, 4  ;;  %v533_v44 = vrot.slane %v531_v28, 4  ;;  %v539_v49 = vrot.slane %v537_v30, 5  ;;  %v7605_v51 = vrot.slane %v649_v26, 9 }
  0x5b   : > { %v511_v59 = vrot.slane %v510_v38, 4  ;;  %v524_v50 = vor.u32 %v523_v31, %v520_v39  ;;  %v790_v61 = vrot.slane %v10263_v12, 5  ;;  %v793_v23 = vrot.slane %v10266_v16, 5 }
  0x5c   : > { %v506_v48 = vsel %vm9974_vm6, %v501_v43, %v505_v10  ;;  %v534_v60 = vor.u32 %v533_v44, %v529_v41  ;;  %v7606_v3 = vrot.slane %v650_v46, 9  ;;  %v797_v4 = vrot.slane %v10277_v32, 5 }
  0x5d   : > { %v516_v6 = vsel %vm9974_vm6, %v511_v59, %v515_v55  ;;  %v525_v62 = vrot.slane %v524_v50, 4  ;;  %v791_v11 = vsel %vm9930_vm4, %v7605_v51, %v790_v61  ;;  %v792_v17 = vrot.slane %v790_v61, 4 }
  0x5e   : > { %v10293_v19 = vcombine.low %v506_v48, %v516_v6  ;;  %v535_v21 = vrot.slane %v534_v60, 4  ;;  %v798_v24 = vsel %vm9930_vm4, %v7606_v3, %v797_v4  ;;  %v799_v10 = vrot.slane %v797_v4, 4  ;;  %v10322_v48 = vld [vmem:[%s9928_s29 + $0xb0] sm:$0x1] }
  0x5f   : > { %v530_v26 = vsel %vm9974_vm6, %v525_v62, %v529_v41  ;;  %v794_v57 = vsel %vm9930_vm4, %v792_v17, %v793_v23  ;;  %v800_v55 = vrot.slane %v247_v58, 5  ;;  %v542_v28 = vshrl.u32 %v10284_v29, 16  ;;  %v10309_v41 = vld [vmem:[%s9928_s29 + $0x9c] sm:$0xf]  ;;  %v10319_v23 = vld [vmem:[%s9928_s29 + $0xac] sm:$0xf] }
  0x60   : > { %8769 = vmatprep.mubr.msk.bf16.mxu0 %vm1497_vm2, %v10293_v19  ;;  %v540_v30 = vsel %vm9974_vm6, %v535_v21, %v539_v49  ;;  %v7858_v38 = vcombine.low %v791_v11, %v794_v57  ;;  %v545_v39 = vshll.u32 %v10284_v29, 16  ;;  %v551_v31 = vshll.u32 %v10263_v12, 16  ;;  %v651_v62 = vld [vmem:[%s9928_s29 + $0xa8] sm:$0xe] }
  0x61   : > { %v10311_v46 = vcombine.low %v530_v26, %v540_v30  ;;  %v801_v43 = vsel %vm9930_vm4, %v799_v10, %v800_v55  ;;  %v544_v44 = vrot.slane %v542_v28, 4  ;;  %v555_v51 = vshrl.u32 %v10263_v12, 16  ;;  %v652_v28 = vld [vmem:[%s9928_s29 + $0xb4] sm:$0xe] }
  0x62   : > { %8917 = vmatprep.mubr.msk.bf16.mxu1 %vm1497_vm2, %v7858_v38  ;;  %v7859_v59 = vcombine.low %v798_v24, %v801_v43  ;;  %v547_v49 = vrot.slane %v545_v39, 5  ;;  %v553_v50 = vrot.slane %v551_v31, 5  ;;  %v561_v61 = vshll.u32 %v10266_v16, 16  ;;  %v10333_v24 = vld [vmem:[%s9928_s29 + $0xb8] sm:$0xf] }
  0x63   : > { %8770 = vmatmul.mubr.msk.bf16.gmra.mrb[20].mxu0 %vm1497_vm2, %v10311_v46  ;;  %v557_v60 = vrot.slane %v555_v51, 4  ;;  %v566_v3 = vshrl.u32 %v10309_v41, 16  ;;  %v569_v4 = vshll.u32 %v10309_v41, 16  ;;  %v575_v6 = vshll.u32 %v10277_v32, 16  ;;  %13614 = vst [vmem:[#allocation3_spill] sm:$0xff] %v10333_v24 }
  0x64   : > { %8918 = vmatmul.mubr.msk.bf16.gmra.mrb[24].mxu1 %vm1497_vm2, %v7859_v59  ;;  %v548_v16 = vor.u32 %v547_v49, %v544_v44  ;;  %v563_v11 = vrot.slane %v561_v61, 5  ;;  %v579_v17 = vshrl.u32 %v10277_v32, 16  ;;  %v585_v21 = vshll.u32 %v247_v58, 16  ;;  %v249_v43 = vld [vmem:[%s9928_s29 + $0xbc] sm:$0x1] }
  0x65   : > { %v558_v10 = vor.u32 %v557_v60, %v553_v50  ;;  %v568_v26 = vrot.slane %v566_v3, 4  ;;  %v571_v57 = vrot.slane %v569_v4, 5  ;;  %v577_v55 = vrot.slane %v575_v6, 5  ;;  %v10340_v58 = vld [vmem:[%s9928_s29 + $0xa8] sm:$0xf] }
  0x66   : > { %v549_v30 = vrot.slane %v548_v16, 4  ;;  %v581_v38 = vrot.slane %v579_v17, 4  ;;  %v587_v39 = vrot.slane %v585_v21, 5  ;;  %v7607_v31 = vrot.slane %v651_v62, 9 }
  0x67   : > { %v559_v51 = vrot.slane %v558_v10, 4  ;;  %v572_v59 = vor.u32 %v571_v57, %v568_v26  ;;  %v804_v44 = vrot.slane %v10319_v23, 5  ;;  %v807_v49 = vrot.slane %v10322_v48, 5 }
  0x68   : > { %v554_v61 = vsel %vm9974_vm6, %v549_v30, %v553_v50  ;;  %v582_v60 = vor.u32 %v581_v38, %v577_v55  ;;  %v7608_v3 = vrot.slane %v652_v28, 9  ;;  %v811_v4 = vrot.slane %v10333_v24, 5  ;;  %v10359_v38 = vld [vmem:[%s9928_s29 + $0xb4] sm:$0xf] }
  0x69   : > { %v564_v6 = vsel %vm9974_vm6, %v559_v51, %v563_v11  ;;  %v573_v62 = vrot.slane %v572_v59, 4  ;;  %v805_v16 = vsel %vm9930_vm4, %v7607_v31, %v804_v44  ;;  %v806_v17 = vrot.slane %v804_v44, 4  ;;  %13615 = vst [vmem:[#allocation4_spill] sm:$0xff] %v10359_v38 }
  0x6a   : > { %v10349_v21 = vcombine.low %v554_v61, %v564_v6  ;;  %v583_v10 = vrot.slane %v582_v60, 4  ;;  %v812_v26 = vsel %vm9930_vm4, %v7608_v3, %v811_v4  ;;  %v813_v50 = vrot.slane %v811_v4, 4 }
  0x6b   : > { %v578_v57 = vsel %vm9974_vm6, %v573_v62, %v577_v55  ;;  %v808_v28 = vsel %vm9930_vm4, %v806_v17, %v807_v49  ;;  %v814_v30 = vrot.slane %v249_v43, 5  ;;  %v590_v11 = vshrl.u32 %v10340_v58, 16 }
  0x6c   : > { %8773 = vmatprep.mubr.msk.bf16.mxu0 %vm1497_vm2, %v10349_v21  ;;  %v588_v31 = vsel %vm9974_vm6, %v583_v10, %v587_v39  ;;  %v7860_v51 = vcombine.low %v805_v16, %v808_v28  ;;  %v593_v59 = vshll.u32 %v10340_v58, 16  ;;  %v599_v44 = vshll.u32 %v10319_v23, 16 }
  0x6d   : > { %v10367_v55 = vcombine.low %v578_v57, %v588_v31  ;;  %v815_v49 = vsel %vm9930_vm4, %v813_v50, %v814_v30  ;;  %v592_v61 = vrot.slane %v590_v11, 4  ;;  %v603_v60 = vshrl.u32 %v10319_v23, 16 }
  0x6e   : > { %8921 = vmatprep.mubr.msk.bf16.mxu1 %vm1497_vm2, %v7860_v51  ;;  %v7861_v3 = vcombine.low %v812_v26, %v815_v49  ;;  %v595_v4 = vrot.slane %v593_v59, 5  ;;  %v601_v6 = vrot.slane %v599_v44, 5  ;;  %v609_v39 = vshll.u32 %v10322_v48, 16 }
  0x6f   : > { %8774 = vmatmul.mubr.msk.bf16.gmra.mrb[24].mxu0 %vm1497_vm2, %v10367_v55  ;;  %v605_v62 = vrot.slane %v603_v60, 4  ;;  %v614_v16 = vshrl.u32 %v10359_v38, 16  ;;  %v617_v17 = vshll.u32 %v10359_v38, 16  ;;  %v623_v10 = vshll.u32 %v10333_v24, 16 }
  0x70   : > { %8922 = vmatmul.mubr.msk.bf16.gmra.mrb[28].mxu1 %vm1497_vm2, %v7861_v3  ;;  %v596_v50 = vor.u32 %v595_v4, %v592_v61  ;;  %v611_v57 = vrot.slane %v609_v39, 5  ;;  %v627_v26 = vshrl.u32 %v10333_v24, 16  ;;  %v633_v28 = vshll.u32 %v249_v43, 16  ;;  %v9817_v39 = vld [vmem:[%s9928_s29 + $0x4] sm:$0xf] }
  0x71   : > { %v606_v30 = vor.u32 %v605_v62, %v601_v6  ;;  %v616_v48 = vrot.slane %v614_v16, 4  ;;  %v619_v11 = vrot.slane %v617_v17, 5  ;;  %v625_v31 = vrot.slane %v623_v10, 5  ;;  %8929 = vmatprep.mubr.msk.bf16.mxu1 %vm1497_vm2, %v9999_v8 }
  0x72   : > { %v597_v51 = vrot.slane %v596_v50, 4  ;;  %v629_v59 = vrot.slane %v627_v26, 4  ;;  %v635_v60 = vrot.slane %v633_v28, 5  ;;  %v7727_v62 = vcombine.low %v9944_v22, %v9817_v39  ;;  %v9819_v39 = vld [vmem:[%s9928_s29 + $0xc] sm:$0xf] }
  0x73   : > { %v607_v44 = vrot.slane %v606_v30, 4  ;;  %v620_v49 = vor.u32 %v619_v11, %v616_v48  ;;  %v10473_v28 = vld [vmem:[%s9928_s29 + $0x14] sm:$0x1] }
  0x74   : > { %v602_v61 = vsel %vm9974_vm6, %v597_v51, %v601_v6  ;;  %v630_v3 = vor.u32 %v629_v59, %v625_v31  ;;  %v9748_v6 = vld [vmem:[%s13500_s1 + $0x68] sm:$0xff]   ;;  %13621 = vst [vmem:[#allocation10_spill] sm:$0xff] %v10473_v28 }
  0x75   : > { %v612_v4 = vsel %vm9974_vm6, %v607_v44, %v611_v57  ;;  %v621_v43 = vrot.slane %v620_v49, 4  ;;  %v10428_v59 = vld [vmem:[%s9928_s29 + $0xc] sm:$0xf]  ;;  %v10433_v44 = vld [vmem:[%s13500_s1 + $0x70] sm:$0xff]  }
  0x76   : > { %v10391_v8 = vcombine.low %v602_v61, %v612_v4  ;;  %v631_v17 = vrot.slane %v630_v3, 4  ;;  %13616 = vst [vmem:[#allocation5_spill] sm:$0xff] %v10428_v59  ;;  %13617 = vst [vmem:[#allocation6_spill] sm:$0xff] %v10433_v44  ;;  %v869_v49 = vshrl.u32 %v10428_v59, 16  ;;  %v10447_v61 = vld [vmem:[%s9928_s29 + $0x1c] sm:$0xf] }
  0x77   : > { %v626_v22 = vsel %vm9974_vm6, %v621_v43, %v625_v31  ;;  %13620 = vst [vmem:[#allocation9_spill] sm:$0xff] %v10447_v61  ;;  %v9818_v43 = vld [vmem:[%s9928_s29 + $0x10] sm:$0xf]  ;;  %v9759_v51 = vld [vmem:[%s13500_s1 + $0x28] sm:$0xff]  }
  0x78   : > { %8777 = vmatprep.mubr.msk.bf16.mxu0 %vm1497_vm2, %v10391_v8  ;;  %v636_v30 = vsel %vm9974_vm6, %v631_v17, %v635_v60  ;;  %8930 = vmatmul.mubr.msk.bf16.vlgmr.msra.gmra.mrb[0].mxu1 %vm1497_vm2, %v10017_v27  ;;  %v872_v60 = vshll.u32 %v10428_v59, 16  ;;  %v7728_v17 = vcombine.low %v9819_v39, %v9818_v43  ;;  %v902_v43 = vshll.u32 %v10447_v61, 16  ;;  %v10613_v59 = vld [vmem:[%s9928_s29 + $0x60] sm:$0xf] }
  0x79   : > { %v10418_v31 = vcombine.low %v626_v22, %v636_v30  ;;  %8962 = vmatpush3.bf16.msra.mxu1 %v9995_v2  ;;  %8933 = vmatprep.mubr.msk.bf16.mxu1 %vm1497_vm2, %v10065_v14  ;;  %v10438_v2 = vld [vmem:[%s9928_s29 + $0x10] sm:$0xf]  ;;  %v10442_v14 = vld [vmem:[%s9928_s29 + $0x18] sm:$0xf]  ;;  %v906_v39 = vshrl.u32 %v10447_v61, 16  ;;  %v871_v11 = vrot.slane %v869_v49, 4 }
  0x7a   : > { %8963 = vmatprep.subr.bf16.mxu1 %v9748_v6  ;;  %13618 = vst [vmem:[#allocation7_spill] sm:$0xff] %v10438_v2  ;;  %13619 = vst [vmem:[#allocation8_spill] sm:$0xff] %v10442_v14  ;;  %v878_v3 = vshll.u32 %v10438_v2, 16  ;;  %v882_v4 = vshrl.u32 %v10438_v2, 16  ;;  %v896_v22 = vshll.u32 %v10442_v14, 16  ;;  %v10475_v26 = vrot.slane %v902_v43, 5 }
  0x7b   : > { %8778 = vmatmul.mubr.msk.bf16.gmra.mrb[28].mxu0 %vm1497_vm2, %v10418_v31  ;;  %v9821_v30 = vld [vmem:[%s9928_s29 + $0x18] sm:$0xf]  ;;  %v908_v49 = vrot.slane %v906_v39, 4  ;;  %v888_v43 = vshll.u32 %v10473_v28, 16  ;;  %v9824_v39 = vld [vmem:[%s9928_s29 + $0x34] sm:$0xf] }
  0x7c   : > { %8785 = vmatprep.mubr.msk.bf16.mxu0 %vm1497_vm2, %v7727_v62  ;;  %v893_v62 = vshrl.u32 %v10442_v14, 16  ;;  %v10467_v48 = vrot.slane %v878_v3, 5  ;;  %v10483_v3 = vld [vmem:[%s13500_s1 + $0x30] sm:$0xff]   ;;  %v7731_v50 = vcombine.low %v10054_v63, %v9824_v39  ;;  %v10610_v14 = vld [vmem:[%s9928_s29 + $0x44] sm:$0x1]  ;;  %13633 = vst [vmem:[#allocation21_spill] sm:$0xff] %v10613_v59 }
  0x7d   : > { %8964 = vmatpush3.bf16.msra.mxu1 %v9748_v6  ;;  %v9820_v6 = vld [vmem:[%s9928_s29 + $0x1c] sm:$0xf]  ;;  %13623 = vst [vmem:[#allocation12_spill] sm:$0xff] %v10483_v3  ;;  %v10514_v28 = vld [vmem:[%s9928_s29 + $0x30] sm:$0xf] }
  0x7e   : > { %8997 = vmatprep.subr.bf16.mxu1 %v10433_v44  ;;  %v7729_v27 = vcombine.low %v9821_v30, %v9820_v6  ;;  %v884_v6 = vrot.slane %v882_v4, 4  ;;  %v898_v30 = vrot.slane %v896_v22, 5  ;;  %v9822_v4 = vld [vmem:[%s9928_s29 + $0x28] sm:$0xf] }
  0x80   : > { %8934 = vmatmul.mubr.msk.bf16.gmra.mrb[4].mxu1 %vm1497_vm2, %v10079_v25  ;;  %v874_v25 = vrot.slane %v872_v60, 5  ;;  %v10478_v60 = vld [vmem:[%s9928_s29 + $0x24] sm:$0xf]  ;;  %v885_v22 = vor.u32 %v884_v6, %v10467_v48  ;;  %v10503_v6 = vld [vmem:[%s9928_s29 + $0x28] sm:$0xf] }
  0x81   : > { %8937 = vmatprep.mubr.msk.bf16.mxu1 %vm1497_vm2, %v10116_v9  ;;  %v895_v9 = vrot.slane %v893_v62, 4  ;;  %13622 = vst [vmem:[#allocation11_spill] sm:$0xff] %v10478_v60  ;;  %v10488_v62 = vld [vmem:[%s9928_s29 + $0x20] sm:$0x1]  ;;  %v917_v10 = vshrl.u32 %v10478_v60, 16  ;;  %v920_v16 = vshll.u32 %v10478_v60, 16 }
  0x82   : > { %13624 = vst [vmem:[#allocation13_spill] sm:$0xff] %v10488_v62  ;;  %13625 = vst [vmem:[#allocation14_spill] sm:$0xff] %v10503_v6 }
  0x83   : > { %8786 = vmatmul.mubr.msk.bf16.vlgmr.msra.gmra.mrb[0].mxu0 %vm1497_vm2, %v7728_v17  ;;  %v9823_v17 = vld [vmem:[%s9928_s29 + $0x24] sm:$0xf]  ;;  %v899_v57 = vor.u32 %v898_v30, %v895_v9  ;;  %v922_v30 = vrot.slane %v920_v16, 5 }
  0x84   : > { %8789 = vmatprep.mubr.msk.bf16.mxu0 %vm1497_vm2, %v7729_v27  ;;  %8818 = vmatpush3.bf16.msra.mxu0 %v10128_v15  ;;  %v7730_v27 = vcombine.low %v9823_v17, %v9822_v4  ;;  %v875_v15 = vor.u32 %v874_v25, %v871_v11  ;;  %v909_v11 = vor.u32 %v908_v49, %v10475_v26  ;;  %v912_v25 = vshll.u32 %v10488_v62, 16  ;;  %v10511_v62 = vld [vmem:[%s9928_s29 + $0x2c] sm:$0x1] }
  0x85   : > { %8819 = vmatprep.subr.bf16.mxu0 %v9759_v51  ;;  %v900_v9 = vrot.slane %v899_v57, 4  ;;  %v926_v49 = vshll.u32 %v10503_v6, 16  ;;  %v930_v4 = vshrl.u32 %v10503_v6, 16  ;;  %13626 = vst [vmem:[#allocation15_spill] sm:$0xff] %v10511_v62 }
  0x86   : > { %v876_v63 = vrot.slane %v875_v15, 4  ;;  %v910_v17 = vrot.slane %v909_v11, 4  ;;  %v914_v39 = vrot.slane %v912_v25, 5  ;;  %v941_v11 = vshrl.u32 %v10514_v28, 16  ;;  %v10542_v25 = vld [vmem:[%s9928_s29 + $0x38] sm:$0x1] }
  0x87   : > { %13627 = vst [vmem:[#allocation16_spill] sm:$0xff] %v10542_v25 }
  0x88   : > { %8938 = vmatmul.mubr.msk.bf16.gmra.mrb[8].mxu1 %vm1497_vm2, %v10148_v35  ;;  %8820 = vmatpush3.bf16.msra.mxu0 %v9759_v51  ;;  %v886_v35 = vrot.slane %v885_v22, 4  ;;  %v890_v51 = vrot.slane %v888_v43, 5  ;;  %v881_v16 = vsel %vm9974_vm6, %v876_v63, %v10467_v48  ;;  %v10531_v22 = vrot.slane %v926_v49, 5 }
  0x89   : > { %8941 = vmatprep.mubr.msk.bf16.mxu1 %vm1497_vm2, %v10180_v20  ;;  %8853 = vmatprep.subr.bf16.mxu0 %v10483_v3  ;;  %v919_v20 = vrot.slane %v917_v10, 4  ;;  %v936_v43 = vshll.u32 %v10511_v62, 16  ;;  %v915_v48 = vsel %vm9974_vm6, %v910_v17, %v914_v39  ;;  %v954_v63 = vshrl.u32 %v10517_v5, 16 }
  0x8a   : > { %v891_v10 = vsel %vm9974_vm6, %v886_v35, %v890_v51  ;;  %v13634_v62 = vcombine.low %v10123_v13, %v10101_v52 }
  0x8b   : > { %8790 = vmatmul.mubr.msk.bf16.gmra.mrb[4].mxu0 %vm1497_vm2, %v7730_v27  ;;  %v9825_v27 = vld [vmem:[%s9928_s29 + $0x40] sm:$0xf]  ;;  %v923_v15 = vor.u32 %v922_v30, %v919_v20  ;;  %v10546_v35 = vcombine.low %v881_v16, %v891_v10  ;;  %v13629_v30 = vcombine.low %v10114_v7, %v10093_v40  ;;  %v10567_v39 = vrot.slane %v936_v43, 5  ;;  %v10579_v7 = vld [vmem:[%s9928_s29 + $0x54] sm:$0xf] }
  0x8c   : > { %8793 = vmatprep.mubr.msk.bf16.mxu0 %vm1497_vm2, %v7731_v50  ;;  %v7732_v57 = vcombine.low %v10072_v18, %v9825_v27  ;;  %v905_v50 = vsel %vm9974_vm6, %v900_v9, %v10475_v26  ;;  %v932_v18 = vrot.slane %v930_v4, 4  ;;  %v944_v26 = vshll.u32 %v10514_v28, 16  ;;  %v10553_v9 = vld [vmem:[%s9928_s29 + $0x3c] sm:$0xf]  ;;  %v10556_v20 = vld [vmem:[%s9928_s29 + $0x40] sm:$0xf] }
  0x8d   : > { %13628 = vst [vmem:[#allocation17_spill] sm:$0xff] %v10546_v35  ;;  %v10562_v49 = vcombine.low %v905_v50, %v915_v48  ;;  %v10564_v4 = vrot.slane %v923_v15, 4  ;;  %v10570_v27 = vld [vmem:[%s9928_s29 + $0x48] sm:$0xf]  ;;  %v943_v16 = vrot.slane %v941_v11, 4  ;;  %v960_v40 = vshll.u32 %v10542_v25, 16 }
  0x8e   : > { %v933_v17 = vor.u32 %v932_v18, %v10531_v22  ;;  %13631 = vst [vmem:[#allocation19_spill] sm:$0xff] %v10570_v27  ;;  %v946_v10 = vrot.slane %v944_v26, 5  ;;  %13632 = vst [vmem:[#allocation20_spill] sm:$0xff] %v10579_v7  ;;  %v956_v50 = vrot.slane %v954_v63, 4  ;;  %v965_v18 = vshrl.u32 %v10553_v9, 16 }
  0x8f   : > { %13630 = vst [vmem:[#allocation18_spill] sm:$0xff] %v10562_v49  ;;  %v968_v43 = vshll.u32 %v10553_v9, 16  ;;  %v10586_v48 = vld [vmem:[%s9928_s29 + $0x58] sm:$0xf]  ;;  %v978_v11 = vshrl.u32 %v10556_v20, 16  ;;  %v989_v26 = vshrl.u32 %v10570_v27, 16 }
  0x90   : > { %8942 = vmatmul.mubr.msk.bf16.gmra.mrb[12].mxu1 %vm1497_vm2, %v10198_v37  ;;  %v950_v37 = vshll.u32 %v10517_v5, 16  ;;  %v1016_v25 = vshll.u32 %v10579_v7, 16  ;;  %v10604_v3 = vrot.slane %v933_v17, 4  ;;  %v1026_v6 = vshrl.u32 %v10586_v48, 16 }
  0x91   : > { %8945 = vmatprep.mubr.msk.bf16.mxu1 %vm1497_vm2, %v10237_v42  ;;  %v1013_v42 = vshrl.u32 %v10579_v7, 16  ;;  %v947_v60 = vor.u32 %v946_v10, %v943_v16  ;;  %v970_v2 = vrot.slane %v968_v43, 5  ;;  %v980_v24 = vrot.slane %v978_v11, 4  ;;  %v10622_v16 = vld [vmem:[%s9928_s29 + $0x64] sm:$0xf] }
  0x92   : > { %v10575_v51 = vrot.slane %v950_v37, 5  ;;  %v992_v37 = vshll.u32 %v10570_v27, 16  ;;  %v991_v38 = vrot.slane %v989_v26, 4  ;;  %v13635_v10 = vcombine.low %v10169_v0, %v10146_v34  ;;  %v10844_v27 = vld [vmem:[%s9928_s29 + $0xa8] sm:$0xf] }
  0x93   : > { %8794 = vmatmul.mubr.msk.bf16.gmra.mrb[8].mxu0 %vm1497_vm2, %v7732_v57  ;;  %v10573_v57 = vld [vmem:[%s9928_s29 + $0x4c] sm:$0xf]  ;;  %v1015_v52 = vrot.slane %v1013_v42, 4  ;;  %v1018_v13 = vrot.slane %v1016_v25, 5  ;;  %v1028_v11 = vrot.slane %v1026_v6, 4  ;;  %v1037_v26 = vshrl.u32 %v10613_v59, 16 }
  0x94   : > { %8797 = vmatprep.mubr.msk.bf16.mxu0 %vm1497_vm2, %v13629_v30  ;;  %v974_v30 = vshll.u32 %v10556_v20, 16  ;;  %v998_v63 = vshll.u32 %v10573_v57, 16  ;;  %v1002_v15 = vshrl.u32 %v10573_v57, 16  ;;  %v957_v61 = vor.u32 %v956_v50, %v10575_v51  ;;  %v10629_v50 = vld [vmem:[%s9928_s29 + $0x50] sm:$0x1]  ;;  %13654 = vst [vmem:[#allocation33_spill] sm:$0xff] %v10844_v27 }
  0x95   : > { %v994_v44 = vrot.slane %v992_v37, 5  ;;  %v1040_v37 = vshll.u32 %v10613_v59, 16  ;;  %v948_v49 = vrot.slane %v947_v60, 4  ;;  %v962_v34 = vrot.slane %v960_v40, 5 }
  0x96   : > { %v10619_v17 = vrot.slane %v974_v30, 5  ;;  %v1004_v43 = vrot.slane %v1002_v15, 4  ;;  %v1046_v0 = vshll.u32 %v10622_v16, 16  ;;  %v984_v42 = vshll.u32 %v10610_v14, 16 }
  0x97   : > { %v995_v6 = vor.u32 %v994_v44, %v991_v38  ;;  %v1008_v60 = vshll.u32 %v10629_v50, 16  ;;  %v953_v38 = vsel %vm9974_vm6, %v948_v49, %v10575_v51  ;;  %v10660_v44 = vld [vmem:[%s9928_s29 + $0x68] sm:$0x1]  ;;  %v13637_v51 = vcombine.low %v10231_v36, %v10206_v56 }
  0x98   : > { %8946 = vmatmul.mubr.msk.bf16.gmra.mrb[16].mxu1 %vm1497_vm2, %v10255_v54  ;;  %v1022_v54 = vshll.u32 %v10586_v48, 16  ;;  %v981_v25 = vor.u32 %v980_v24, %v10619_v17  ;;  %v1039_v24 = vrot.slane %v1037_v26, 4  ;;  %v10671_v26 = vld [vmem:[%s9928_s29 + $0x6c] sm:$0xf] }
  0x99   : > { %8949 = vmatprep.mubr.msk.bf16.mxu1 %vm1497_vm2, %v10293_v19  ;;  %v967_v19 = vrot.slane %v965_v18, 4  ;;  %v10631_v18 = vrot.slane %v998_v63, 5  ;;  %v958_v63 = vrot.slane %v957_v61, 4  ;;  %v1019_v61 = vor.u32 %v1018_v13, %v1015_v52 }
  0x9a   : > { %v10636_v30 = vrot.slane %v1022_v54, 5  ;;  %v13636_v52 = vcombine.low %v10188_v33, %v10161_v53  ;;  %v996_v49 = vrot.slane %v995_v6, 4  ;;  %v10678_v33 = vld [vmem:[%s9928_s29 + $0x70] sm:$0xf]  ;;  %v1061_v36 = vshrl.u32 %v10671_v26, 16 }
  0x9b   : > { %8798 = vmatmul.mubr.msk.bf16.gmra.mrb[12].mxu0 %vm1497_vm2, %v13634_v62  ;;  %v10634_v62 = vld [vmem:[%s9928_s29 + $0x5c] sm:$0x1]  ;;  %v971_v15 = vor.u32 %v970_v2, %v967_v19  ;;  %v1005_v54 = vor.u32 %v1004_v43, %v10631_v18  ;;  %v1042_v19 = vrot.slane %v1040_v37, 5  ;;  %v10662_v43 = vrot.slane %v1046_v0, 5 }
  0x9c   : > { %8801 = vmatprep.mubr.msk.bf16.mxu0 %vm1497_vm2, %v13635_v10  ;;  %v1050_v10 = vshrl.u32 %v10622_v16, 16  ;;  %v1032_v40 = vshll.u32 %v10634_v62, 16  ;;  %v1029_v2 = vor.u32 %v1028_v11, %v10636_v30  ;;  %v963_v13 = vsel %vm9974_vm6, %v958_v63, %v962_v34 }
  0x9d   : > { %v972_v11 = vrot.slane %v971_v15, 4  ;;  %v1006_v37 = vrot.slane %v1005_v54, 4  ;;  %v1010_v0 = vrot.slane %v1008_v60, 5  ;;  %v1043_v34 = vor.u32 %v1042_v19, %v1039_v24  ;;  %v10696_v60 = vld [vmem:[%s9928_s29 + $0x74] sm:$0x1] }
  0x9e   : > { %v1034_v53 = vrot.slane %v1032_v40, 5  ;;  %v1056_v63 = vshll.u32 %v10660_v44, 16  ;;  %v10693_v54 = vcombine.low %v953_v38, %v963_v13  ;;  %v1070_v40 = vshll.u32 %v10678_v33, 16  ;;  %v10713_v19 = vld [vmem:[%s9928_s29 + $0x78] sm:$0xf] }
  0x9f   : > { %v1011_v24 = vsel %vm9974_vm6, %v1006_v37, %v1010_v0  ;;  %13640 = vst [vmem:[#allocation23_spill] sm:$0xff] %v10713_v19  ;;  %v13642_v37 = vcombine.low %v10284_v29, %v10263_v12  ;;  %v13650_v15 = vcombine.low %v10309_v41, %v10277_v32  ;;  %v10832_v32 = vld [vmem:[%s9928_s29 + $0x8c] sm:$0x1] }
  0xa0   : > { %8950 = vmatmul.mubr.msk.bf16.gmra.mrb[20].mxu1 %vm1497_vm2, %v10311_v46  ;;  %v939_v46 = vsel %vm9974_vm6, %v10604_v3, %v10567_v39  ;;  %v982_v3 = vrot.slane %v981_v25, 4  ;;  %v986_v39 = vrot.slane %v984_v42, 5  ;;  %v1064_v25 = vshll.u32 %v10671_v26, 16  ;;  %13652 = vst [vmem:[#allocation31_spill] sm:$0xff] %v10832_v32 }
  0xa1   : > { %8953 = vmatprep.mubr.msk.bf16.mxu1 %vm1497_vm2, %v10349_v21  ;;  %v1052_v21 = vrot.slane %v1050_v10, 4  ;;  %v1020_v10 = vrot.slane %v1019_v61, 4  ;;  %v13638_v42 = vsel %vm9974_vm6, %v10564_v4, %v10531_v22  ;;  %v1074_v61 = vshrl.u32 %v10678_v33, 16 }
  0xa2   : > { %v10691_v6 = vcombine.low %v13638_v42, %v939_v46  ;;  %v987_v22 = vsel %vm9974_vm6, %v982_v3, %v986_v39  ;;  %v1001_v4 = vsel %vm9974_vm6, %v996_v49, %v10631_v18  ;;  %v10722_v46 = vrot.slane %v1043_v34, 4  ;;  %v10738_v39 = vld [vmem:[%s9928_s29 + $0x7c] sm:$0xf]  ;;  %v10765_v34 = vld [vmem:[%s9928_s29 + $0x84] sm:$0xf] }
  0xa3   : > { %8802 = vmatmul.mubr.msk.bf16.gmra.mrb[16].mxu0 %vm1497_vm2, %v13636_v52  ;;  %v1030_v52 = vrot.slane %v1029_v2, 4  ;;  %v1053_v56 = vor.u32 %v1052_v21, %v10662_v43  ;;  %v977_v2 = vsel %vm9974_vm6, %v972_v11, %v10619_v17  ;;  %v10724_v38 = vrot.slane %v1056_v63, 5  ;;  %13644 = vst [vmem:[#allocation25_spill] sm:$0xff] %v10765_v34  ;;  %v10768_v63 = vld [vmem:[%s9928_s29 + $0x88] sm:$0xf] }
  0xa4   : > { %8805 = vmatprep.mubr.msk.bf16.mxu0 %vm1497_vm2, %v13637_v51  ;;  %13639 = vst [vmem:[#allocation22_spill] sm:$0xff] %v10691_v6  ;;  %v1063_v21 = vrot.slane %v1061_v36, 4  ;;  %v1066_v13 = vrot.slane %v1064_v25, 5  ;;  %v1080_v11 = vshll.u32 %v10696_v60, 16  ;;  %v10735_v3 = vrot.slane %v1074_v61, 4  ;;  %13645 = vst [vmem:[#allocation26_spill] sm:$0xff] %v10768_v63 }
  0xa5   : > { %v1035_v17 = vsel %vm9974_vm6, %v1030_v52, %v1034_v53  ;;  %v10726_v18 = vrot.slane %v1053_v56, 4  ;;  %v1085_v51 = vshrl.u32 %v10713_v19, 16  ;;  %v1088_v49 = vshll.u32 %v10713_v19, 16  ;;  %v10771_v56 = vld [vmem:[%s9928_s29 + $0x90] sm:$0xf] }
  0xa6   : > { %13646 = vst [vmem:[#allocation27_spill] sm:$0xff] %v10771_v56  ;;  %v1067_v25 = vor.u32 %v1066_v13, %v1063_v21  ;;  %v10777_v42 = vrot.slane %v1080_v11, 5  ;;  %v10781_v61 = vld [vmem:[%s9928_s29 + $0x94] sm:$0xf]  ;;  %v10799_v21 = vld [vmem:[%s9928_s29 + $0x80] sm:$0x1] }
  0xa7   : > { %13647 = vst [vmem:[#allocation28_spill] sm:$0xff] %v10781_v61  ;;  %v1109_v13 = vshrl.u32 %v10765_v34, 16  ;;  %v1112_v11 = vshll.u32 %v10765_v34, 16  ;;  %v13651_v34 = vcombine.low %v10340_v58, %v10319_v23 }
  0xa8   : > { %8954 = vmatmul.mubr.msk.bf16.gmra.mrb[24].mxu1 %vm1497_vm2, %v10367_v55  ;;  %v1025_v55 = vsel %vm9974_vm6, %v1020_v10, %v10636_v30  ;;  %v10733_v30 = vrot.slane %v1070_v40, 5  ;;  %v1094_v40 = vshll.u32 %v10738_v39, 16  ;;  %v10819_v12 = vrot.slane %v1067_v25, 4 }
  0xa9   : > { %8957 = vmatprep.mubr.msk.bf16.mxu1 %vm1497_vm2, %v10391_v8  ;;  %v13641_v8 = vcombine.low %v10253_v47, %v10221_v1  ;;  %v10746_v1 = vcombine.low %v977_v2, %v987_v22  ;;  %v10748_v47 = vcombine.low %v1001_v4, %v1011_v24  ;;  %v10754_v10 = vcombine.low %v1025_v55, %v1035_v17  ;;  %v10784_v2 = vld [vmem:[%s9928_s29 + $0x9c] sm:$0xf]  ;;  %v10794_v17 = vld [vmem:[%s9928_s29 + $0xa0] sm:$0xf] }
  0xaa   : > { %13648 = vst [vmem:[#allocation29_spill] sm:$0xff] %v10784_v2  ;;  %v1077_v22 = vor.u32 %v10735_v3, %v10733_v30  ;;  %v10788_v4 = vrot.slane %v1085_v51, 4  ;;  %v10790_v24 = vrot.slane %v1088_v49, 5  ;;  %v1098_v55 = vshrl.u32 %v10738_v39, 16  ;;  %13649 = vst [vmem:[#allocation30_spill] sm:$0xff] %v10794_v17 }
  0xab   : > { %8806 = vmatmul.mubr.msk.bf16.gmra.mrb[20].mxu0 %vm1497_vm2, %v13641_v8  ;;  %13643 = vst [vmem:[#allocation24_spill] sm:$0xff] %v10754_v10  ;;  %v1118_v8 = vshll.u32 %v10768_v63, 16  ;;  %v1122_v3 = vshrl.u32 %v10768_v63, 16  ;;  %v1133_v51 = vshrl.u32 %v10771_v56, 16  ;;  %v1136_v49 = vshll.u32 %v10771_v56, 16 }
  0xac   : > { %8809 = vmatprep.mubr.msk.bf16.mxu0 %vm1497_vm2, %v13642_v37  ;;  %v1146_v37 = vshrl.u32 %v10781_v61, 16  ;;  %v1157_v52 = vshrl.u32 %v10784_v2, 16  ;;  %v1160_v29 = vshll.u32 %v10784_v2, 16  ;;  %v1166_v53 = vshll.u32 %v10794_v17, 16  ;;  %v9768_v2 = vld [vmem:[%s13500_s1 + $0x78] sm:$0xff]  }
  0xad   : > { %v1170_v0 = vshrl.u32 %v10794_v17, 16  ;;  %v10821_v36 = vrot.slane %v1094_v40, 5  ;;  %v1104_v56 = vshll.u32 %v10799_v21, 16  ;;  %v1111_v41 = vrot.slane %v1109_v13, 4 }
  0xae   : > { %v10834_v25 = vrot.slane %v1118_v8, 5  ;;  %v1124_v40 = vrot.slane %v1122_v3, 4  ;;  %v1135_v19 = vrot.slane %v1133_v51, 4  ;;  %v1138_v59 = vrot.slane %v1136_v49, 5  ;;  %v10856_v51 = vld [vmem:[%s9928_s29 + $0xa4] sm:$0x1] }
  0xaf   : > { %v1148_v58 = vrot.slane %v1146_v37, 4  ;;  %v1162_v17 = vrot.slane %v1160_v29, 5  ;;  %v1172_v7 = vrot.slane %v1170_v0, 4  ;;  %v1091_v8 = vor.u32 %v10790_v24, %v10788_v4  ;;  %13655 = vst [vmem:[#allocation34_spill] sm:$0xff] %v10856_v51  ;;  %v13656_v29 = vld [vmem:[#allocation18_spill] sm:$0xff] }
  0xb0   : > { %8958 = vmatmul.mubr.msk.bf16.gmra.mrb[28].mxu1 %vm1497_vm2, %v10418_v31  ;;  %v1142_v31 = vshll.u32 %v10781_v61, 16  ;;  %v10841_v61 = vrot.slane %v1166_v53, 5  ;;  %v1125_v53 = vor.u32 %v1124_v40, %v10834_v25  ;;  %v1181_v24 = vshrl.u32 %v10844_v27, 16 }
  0xb1   : > { %8965 = vmatprep.mubr.msk.bf16.mxu1 %vm1497_vm2, %v10546_v35  ;;  %v1100_v35 = vrot.slane %v1098_v55, 4  ;;  %v10837_v55 = vld [vmem:[%s9928_s29 + $0x98] sm:$0x1]  ;;  %v1184_v37 = vshll.u32 %v10844_v27, 16  ;;  %v1176_v13 = vshll.u32 %v10856_v51, 16 }
  0xb2   : > { %13653 = vst [vmem:[#allocation32_spill] sm:$0xff] %v10837_v55  ;;  %v10839_v23 = vrot.slane %v1142_v31, 5  ;;  %v1152_v49 = vshll.u32 %v10837_v55, 16  ;;  %v10864_v31 = vld [vmem:[%s9928_s29 + $0xac] sm:$0xf]  ;;  %v1173_v40 = vor.u32 %v1172_v7, %v10841_v61  ;;  %v13662_v7 = vld [vmem:[#allocation5_spill] sm:$0xff] }
  0xb3   : > { %8810 = vmatmul.mubr.msk.bf16.gmra.mrb[24].mxu0 %vm1497_vm2, %v13650_v15  ;;  %v1114_v15 = vrot.slane %v1112_v11, 5  ;;  %v10850_v11 = vrot.slane %v1077_v22, 4  ;;  %v1101_v3 = vor.u32 %v1100_v35, %v10821_v36  ;;  %13657 = vst [vmem:[#allocation35_spill] sm:$0xff] %v10864_v31  ;;  %v13658_v22 = vld [vmem:[#allocation6_spill] sm:$0xff]  ;;  %v1139_v35 = vor.u32 %v1138_v59, %v1135_v19  ;;  %v13660_v59 = vld [vmem:[#allocation3_spill] sm:$0xff] }
  0xb4   : > { %8813 = vmatprep.mubr.msk.bf16.mxu0 %vm1497_vm2, %v13651_v34  ;;  %v1159_v34 = vrot.slane %v1157_v52, 4  ;;  %v1128_v52 = vshll.u32 %v10832_v32, 16  ;;  %v1149_v4 = vor.u32 %v1148_v58, %v10839_v23  ;;  %v1092_v58 = vrot.slane %v1091_v8, 4 }
  0xb5   : > { %v1115_v0 = vor.u32 %v1114_v15, %v1111_v41  ;;  %v1106_v41 = vrot.slane %v1104_v56, 5  ;;  %v1190_v56 = vshll.u32 %v10864_v31, 16  ;;  %v1126_v55 = vrot.slane %v1125_v53, 4 }
  0xb6   : > { %v1163_v15 = vor.u32 %v1162_v17, %v1159_v34  ;;  %v1194_v17 = vshrl.u32 %v10864_v31, 16  ;;  %v13663_v34 = vld [vmem:[#allocation7_spill] sm:$0xff]  ;;  %v1130_v32 = vrot.slane %v1128_v52, 5  ;;  %v1154_v63 = vrot.slane %v1152_v49, 5 }
  0xb7   : > { %v13664_v27 = vcombine.low %v13662_v7, %v13663_v34  ;;  %v1116_v51 = vrot.slane %v1115_v0, 4  ;;  %v1183_v8 = vrot.slane %v1181_v24, 4  ;;  %v1083_v7 = vsel %vm9974_vm6, %v10850_v11, %v10777_v42  ;;  %v10897_v0 = vld [vmem:[%s9928_s29 + $0xb0] sm:$0x1] }
  0xb8   : > { %8966 = vmatmul.mubr.msk.bf16.vlgmr.msra.gmra.mrb[0].mxu1 %vm1497_vm2, %v13656_v29  ;;  %v1102_v29 = vrot.slane %v1101_v3, 4  ;;  %v1186_v3 = vrot.slane %v1184_v37, 5  ;;  %v1164_v34 = vrot.slane %v1163_v15, 4  ;;  %v1174_v31 = vrot.slane %v1173_v40, 4  ;;  %v13665_v37 = vld [vmem:[#allocation8_spill] sm:$0xff] }
  0xb9   : > { %8998 = vmatpush3.bf16.msra.mxu1 %v13658_v22  ;;  %8969 = vmatprep.mubr.msk.bf16.mxu1 %vm1497_vm2, %v10691_v6  ;;  %v10877_v22 = vld [vmem:[%s13500_s1 + $0xd0] sm:$0xff]   ;;  %v10905_v52 = vrot.slane %v1190_v56, 5  ;;  %v1196_v49 = vrot.slane %v1194_v17, 4  ;;  %v1121_v42 = vsel %vm9974_vm6, %v1116_v51, %v10834_v25  ;;  %v1200_v51 = vshll.u32 %v10897_v0, 16 }
  0xba   : > { %8999 = vmatprep.subr.bf16.mxu1 %v9768_v2  ;;  %v13659_v6 = vld [vmem:[#allocation4_spill] sm:$0xff]  ;;  %v1107_v53 = vsel %vm9974_vm6, %v1102_v29, %v1106_v41  ;;  %v1187_v25 = vor.u32 %v1186_v3, %v1183_v8  ;;  %v13666_v41 = vld [vmem:[#allocation9_spill] sm:$0xff]  ;;  %v13668_v40 = vsel %vm9974_vm6, %v10726_v18, %v10724_v38  ;;  %v10980_v3 = vld [vmem:[%s9928_s29 + $0xc0] sm:$0xf] }
  0xbb   : > { %v13661_v19 = vcombine.low %v13659_v6, %v13660_v59  ;;  %v1140_v6 = vrot.slane %v1139_v35, 4  ;;  %v1150_v59 = vrot.slane %v1149_v4, 4  ;;  %v10908_v35 = vld [vmem:[%s9928_s29 + $0xb8] sm:$0xf]  ;;  %v13667_v15 = vcombine.low %v13665_v37, %v13666_v41  ;;  %v10964_v38 = vld [vmem:[%s9928_s29 + $0xbc] sm:$0x1] }
  0xbc   : > { %v7661_v18 = vld [vmem:[%s9928_s29 + $0x3c] sm:$0xe]  ;;  %v10990_v41 = vrot.slane %v1187_v25, 4 }
  0xbd   : > { %8814 = vmatmul.mubr.msk.bf16.gmra.mrb[28].mxu0 %vm1497_vm2, %v13661_v19  ;;  %9000 = vmatpush3.bf16.msra.mxu1 %v9768_v2  ;;  %v10890_v19 = vld [vmem:[%s9928_s29 + $0xb4] sm:$0xf]  ;;  %v1097_v2 = vsel %vm9974_vm6, %v1092_v58, %v10821_v36  ;;  %v1145_v29 = vsel %vm9974_vm6, %v1140_v6, %v10839_v23  ;;  %v1155_v4 = vsel %vm9974_vm6, %v1150_v59, %v1154_v63  ;;  %v1214_v23 = vshll.u32 %v10908_v35, 16  ;;  %v13673_v6 = vld [vmem:[#allocation11_spill] sm:$0xff] }
  0xbe   : > { %8821 = vmatprep.mubr.msk.bf16.mxu0 %vm1497_vm2, %v13664_v27  ;;  %v1178_v27 = vrot.slane %v1176_v13, 5  ;;  %9177 = vmatprep.subr.bf16.mxu1 %v10877_v22  ;;  %v1131_v13 = vsel %vm9974_vm6, %v1126_v55, %v1130_v32  ;;  %v1205_v36 = vshrl.u32 %v10890_v19, 16  ;;  %v1208_v11 = vshll.u32 %v10890_v19, 16  ;;  %v9779_v32 = vld [vmem:[%s13500_s1 + $0x38] sm:$0xff]  }
  0xbf   : > { %v1169_v55 = vsel %vm9974_vm6, %v1164_v34, %v10841_v61  ;;  %v1218_v63 = vshrl.u32 %v10908_v35, 16  ;;  %v13669_v61 = vsel %vm9974_vm6, %v10722_v46, %v10662_v43  ;;  %v13671_v58 = vsel %vm9974_vm6, %v10819_v12, %v10733_v30  ;;  %v13674_v43 = vld [vmem:[#allocation14_spill] sm:$0xff] }
  0xc0   : > { %8970 = vmatmul.mubr.msk.bf16.gmra.mrb[4].mxu1 %vm1497_vm2, %v10693_v54  ;;  %v1179_v24 = vsel %vm9974_vm6, %v1174_v31, %v1178_v27  ;;  %v10951_v31 = vcombine.low %v13669_v61, %v13668_v40  ;;  %v10958_v56 = vcombine.low %v13671_v58, %v1083_v7  ;;  %v1197_v34 = vor.u32 %v1196_v49, %v10905_v52  ;;  %v10983_v7 = vld [vmem:[%s9928_s29 + $0xc4] sm:$0xf]  ;;  %v13678_v27 = vld [vmem:[#allocation12_spill] sm:$0xff] }
  0xc1   : > { %8973 = vmatprep.mubr.msk.bf16.mxu1 %vm1497_vm2, %v10746_v1  ;;  %v13675_v46 = vcombine.low %v13673_v6, %v13674_v43  ;;  %v10971_v59 = vcombine.low %v1097_v2, %v1107_v53  ;;  %v10973_v8 = vcombine.low %v1121_v42, %v1131_v13  ;;  %v10975_v30 = vrot.slane %v1205_v36, 4  ;;  %v7662_v53 = vld [vmem:[%s9928_s29 + $0x48] sm:$0xe]  ;;  %v10998_v42 = vld [vmem:[%s13500_s1 + $0x90] sm:$0xff]   ;;  %v7664_v6 = vld [vmem:[%s9928_s29 + $0x60] sm:$0xe] }
  0xc2   : > { %13670 = vst [vmem:[#allocation6_spill] sm:$0xff] %v10951_v31  ;;  %13672 = vst [vmem:[#allocation4_spill] sm:$0xff] %v10958_v56  ;;  %v10977_v12 = vrot.slane %v1208_v11, 5  ;;  %v10986_v49 = vcombine.low %v1145_v29, %v1155_v4  ;;  %v10988_v37 = vcombine.low %v1169_v55, %v1179_v24  ;;  %v10992_v2 = vrot.slane %v1200_v51, 5  ;;  %v7663_v24 = vld [vmem:[%s9928_s29 + $0x54] sm:$0xe] }
  0xc3   : > { %13676 = vst [vmem:[#allocation3_spill] sm:$0xff] %v10971_v59  ;;  %13677 = vst [vmem:[#allocation5_spill] sm:$0xff] %v10973_v8  ;;  %v11000_v13 = vrot.slane %v1214_v23, 5  ;;  %v11002_v36 = vrot.slane %v1218_v63, 4  ;;  %v7677_v29 = vrot.slane %v7661_v18, 9  ;;  %v11005_v4 = vrot.slane %v1197_v34, 4 }
  0xc4   : > { %v1346_v51 = vrot.slane %v10556_v20, 5  ;;  %v1349_v55 = vrot.slane %v10610_v14, 5  ;;  %v7678_v40 = vrot.slane %v7662_v53, 9  ;;  %v1353_v34 = vrot.slane %v10573_v57, 5  ;;  %v7665_v11 = vld [vmem:[%s9928_s29 + $0x6c] sm:$0xe] }
  0xc5   : > { %8822 = vmatmul.mubr.msk.bf16.vlgmr.msra.gmra.mrb[0].mxu0 %vm1497_vm2, %v13667_v15  ;;  %v1356_v18 = vrot.slane %v10629_v50, 5  ;;  %v1363_v53 = vrot.slane %v10634_v62, 5  ;;  %v13681_v62 = vcombine.low %v10553_v9, %v10556_v20  ;;  %v7666_v23 = vld [vmem:[%s9928_s29 + $0x78] sm:$0xe]  ;;  %v1370_v9 = vrot.slane %v10660_v44, 5  ;;  %v13683_v15 = vld [vmem:[#allocation31_spill] sm:$0xff] }
  0xc6   : > { %8825 = vmatprep.mubr.msk.bf16.mxu0 %vm1497_vm2, %v13675_v46  ;;  %8854 = vmatpush3.bf16.msra.mxu0 %v13678_v27  ;;  %v11021_v14 = vsel %vm9930_vm4, %v7677_v29, %v1346_v51  ;;  %v1348_v58 = vrot.slane %v1346_v51, 4  ;;  %v7679_v46 = vrot.slane %v7663_v24, 9  ;;  %v1360_v27 = vrot.slane %v10586_v48, 5  ;;  %v7668_v50 = vld [vmem:[%s9928_s29 + $0x90] sm:$0xe] }
  0xc7   : > { %8855 = vmatprep.subr.bf16.mxu0 %v9779_v32  ;;  %v13680_v29 = vcombine.low %v10514_v28, %v10517_v5  ;;  %v1355_v24 = vrot.slane %v1353_v34, 4  ;;  %v7681_v20 = vrot.slane %v7665_v11, 9  ;;  %v7667_v28 = vld [vmem:[%s9928_s29 + $0x84] sm:$0xe]  ;;  %v7669_v63 = vld [vmem:[%s9928_s29 + $0x9c] sm:$0xe] }
  0xc8   : > { %8974 = vmatmul.mubr.msk.bf16.gmra.mrb[8].mxu1 %vm1497_vm2, %v10748_v47  ;;  %v11039_v51 = vsel %vm9930_vm4, %v1348_v58, %v1349_v55  ;;  %v1362_v55 = vrot.slane %v1360_v27, 4  ;;  %v7680_v58 = vrot.slane %v7664_v6, 9  ;;  %v1374_v6 = vrot.slane %v10678_v33, 5 }
  0xc9   : > { %8977 = vmatprep.mubr.msk.bf16.mxu1 %vm1497_vm2, %v10754_v10  ;;  %v7671_v10 = vld [vmem:[%s9928_s29 + $0xb4] sm:$0xe] }
  0xca   : > { %8856 = vmatpush3.bf16.msra.mxu0 %v9779_v32  ;;  %v11043_v32 = vsel %vm9930_vm4, %v7678_v40, %v1353_v34  ;;  %v11058_v40 = vsel %vm9930_vm4, %v1355_v24, %v1356_v18  ;;  %v1367_v34 = vrot.slane %v10622_v16, 5  ;;  %v7682_v24 = vrot.slane %v7666_v23, 9 }
  0xcb   : > { %9033 = vmatprep.subr.bf16.mxu0 %v10998_v42 }
  0xcc   : > { %v11075_v44 = vsel %vm9930_vm4, %v7680_v58, %v1367_v34  ;;  %v1369_v11 = vrot.slane %v1367_v34, 4  ;;  %v7683_v58 = vrot.slane %v7667_v28, 9  ;;  %v13682_v34 = vld [vmem:[#allocation26_spill] sm:$0xff] }
  0xcd   : > { %8826 = vmatmul.mubr.msk.bf16.gmra.mrb[4].mxu0 %vm1497_vm2, %v13680_v29  ;;  %v11053_v29 = vsel %vm9930_vm4, %v7679_v46, %v1360_v27  ;;  %v11066_v46 = vsel %vm9930_vm4, %v1362_v55, %v1363_v53  ;;  %v1377_v27 = vrot.slane %v10696_v60, 5  ;;  %v11081_v53 = vsel %vm9930_vm4, %v7681_v20, %v1374_v6 }
  0xce   : > { %8829 = vmatprep.mubr.msk.bf16.mxu0 %vm1497_vm2, %v13681_v62  ;;  %v1376_v55 = vrot.slane %v1374_v6, 4  ;;  %v1381_v60 = vrot.slane %v10738_v39, 5  ;;  %v1384_v62 = vrot.slane %v10799_v21, 5  ;;  %v11090_v23 = vsel %vm9930_vm4, %v1369_v11, %v1370_v9  ;;  %v13685_v9 = vld [vmem:[#allocation19_spill] sm:$0xff] }
  0xcf   : > { %v1388_v18 = vrot.slane %v13682_v34, 5  ;;  %v1391_v20 = vrot.slane %v13683_v15, 5  ;;  %v13686_v28 = vcombine.low %v13685_v9, %v10573_v57  ;;  %v7670_v6 = vld [vmem:[%s9928_s29 + $0xa8] sm:$0xe] }
  0xd0   : > { %8978 = vmatmul.mubr.msk.bf16.gmra.mrb[12].mxu1 %vm1497_vm2, %v10951_v31  ;;  %v11099_v21 = vsel %vm9930_vm4, %v1376_v55, %v1377_v27  ;;  %v11103_v17 = vsel %vm9930_vm4, %v7682_v24, %v1381_v60  ;;  %v1383_v25 = vrot.slane %v1381_v60, 4  ;;  %v7684_v55 = vrot.slane %v7668_v50, 9  ;;  %v13690_v60 = vld [vmem:[#allocation28_spill] sm:$0xff] }
  0xd1   : > { %8981 = vmatprep.mubr.msk.bf16.mxu1 %vm1497_vm2, %v10958_v56  ;;  %13684 = vst [vmem:[#allocation8_spill] sm:$0xff] %v11103_v17  ;;  %v11113_v11 = vsel %vm9930_vm4, %v7683_v58, %v1388_v18  ;;  %v1390_v27 = vrot.slane %v1388_v18, 4  ;;  %v13687_v56 = vld [vmem:[#allocation20_spill] sm:$0xff]  ;;  %v1395_v9 = vrot.slane %v13690_v60, 5  ;;  %v7685_v31 = vrot.slane %v7669_v63, 9  ;;  %v13694_v58 = vld [vmem:[#allocation34_spill] sm:$0xff] }
  0xd2   : > { %v13688_v24 = vcombine.low %v13687_v56, %v10586_v48  ;;  %v11122_v57 = vsel %vm9930_vm4, %v1383_v25, %v1384_v62  ;;  %v13693_v48 = vld [vmem:[#allocation30_spill] sm:$0xff]  ;;  %v1419_v25 = vrot.slane %v10964_v38, 5 }
  0xd3   : > { %13689 = vst [vmem:[#allocation9_spill] sm:$0xff] %v11122_v57  ;;  %v11130_v50 = vsel %vm9930_vm4, %v1390_v27, %v1391_v20  ;;  %v1402_v56 = vrot.slane %v13693_v48, 5  ;;  %v11139_v62 = vsel %vm9930_vm4, %v7684_v55, %v1395_v9  ;;  %v1397_v63 = vrot.slane %v1395_v9, 4  ;;  %v13695_v27 = vld [vmem:[#allocation35_spill] sm:$0xff]  ;;  %v7672_v17 = vld [vmem:[%s9928_s29 + $0xc0] sm:$0xe] }
  0xd4   : > { %13692 = vst [vmem:[#allocation11_spill] sm:$0xff] %v11130_v50  ;;  %v1409_v57 = vrot.slane %v13695_v27, 5  ;;  %v7687_v9 = vrot.slane %v7671_v10, 9  ;;  %v7656_v10 = vld [vmem:[%s9928_s29 + $0xc8] sm:$0x1]  ;;  %v7688_v50 = vrot.slane %v7672_v17, 9 }
  0xd5   : > { %8830 = vmatmul.mubr.msk.bf16.gmra.mrb[8].mxu0 %vm1497_vm2, %v13686_v28  ;;  %v13691_v28 = vld [vmem:[#allocation32_spill] sm:$0xff]  ;;  %v11143_v18 = vsel %vm9930_vm4, %v7685_v31, %v1402_v56  ;;  %v1404_v20 = vrot.slane %v1402_v56, 4  ;;  %v13697_v31 = vld [vmem:[#allocation21_spill] sm:$0xff]  ;;  %v13702_v17 = vshll.u32 %v10980_v3, 16 }
  0xd6   : > { %8833 = vmatprep.mubr.msk.bf16.mxu0 %vm1497_vm2, %v13688_v24  ;;  %v1398_v15 = vrot.slane %v13691_v28, 5  ;;  %v1405_v24 = vrot.slane %v13694_v58, 5  ;;  %v7686_v28 = vrot.slane %v7670_v6, 9  ;;  %v1412_v58 = vrot.slane %v10897_v0, 5 }
  0xd7   : > { %v1416_v6 = vrot.slane %v10908_v35, 5 }
  0xd8   : > { %8982 = vmatmul.mubr.msk.bf16.gmra.mrb[16].mxu1 %vm1497_vm2, %v10971_v59  ;;  %v11152_v55 = vsel %vm9930_vm4, %v1397_v63, %v1398_v15  ;;  %v11162_v0 = vsel %vm9930_vm4, %v1404_v20, %v1405_v24  ;;  %v11166_v56 = vsel %vm9930_vm4, %v7686_v28, %v1409_v57  ;;  %v1411_v15 = vrot.slane %v1409_v57, 4 }
  0xd9   : > { %13696 = vst [vmem:[#allocation14_spill] sm:$0xff] %v11152_v55  ;;  %8985 = vmatprep.mubr.msk.bf16.mxu1 %vm1497_vm2, %v10973_v8  ;;  %v11173_v59 = vsel %vm9930_vm4, %v7687_v9, %v1416_v6  ;;  %v1418_v8 = vrot.slane %v1416_v6, 4  ;;  %v13698_v55 = vcombine.low %v13697_v31, %v10622_v16  ;;  %v13699_v24 = vshrl.u32 %v10980_v3, 16 }
  0xda   : > { %v11183_v57 = vsel %vm9930_vm4, %v1411_v15, %v1412_v58  ;;  %v1423_v20 = vrot.slane %v10983_v7, 5  ;;  %v1426_v63 = vrot.slane %v7656_v10, 5  ;;  %v13701_v9 = vcombine.low %v10671_v26, %v10678_v33 }
  0xdb   : > { %v1231_v28 = vrot.slane %v13699_v24, 4  ;;  %13700 = vst [vmem:[#allocation12_spill] sm:$0xff] %v11183_v57  ;;  %v1234_v16 = vrot.slane %v13702_v17, 5  ;;  %v11198_v58 = vsel %vm9930_vm4, %v1418_v8, %v1419_v25  ;;  %v13704_v15 = vshrl.u32 %v10983_v7, 16 }
  0xdc   : > { %v11206_v33 = vsel %vm9930_vm4, %v7688_v50, %v1423_v20  ;;  %v13705_v17 = vor.u32 %v10977_v12, %v10975_v30  ;;  %v13706_v31 = vor.u32 %v11002_v36, %v11000_v13  ;;  %v13707_v25 = vshll.u32 %v10964_v38, 16  ;;  %v13709_v30 = vld [vmem:[#allocation25_spill] sm:$0xff] }
  0xdd   : > { %8834 = vmatmul.mubr.msk.bf16.gmra.mrb[12].mxu0 %vm1497_vm2, %v13698_v55  ;;  %v13703_v55 = vshll.u32 %v10983_v7, 16  ;;  %v1244_v24 = vrot.slane %v13704_v15, 4  ;;  %v13708_v15 = vld [vmem:[#allocation23_spill] sm:$0xff]  ;;  %v7775_v12 = vcombine.low %v13709_v30, %v13682_v34  ;;  %v1193_v38 = vsel %vm9974_vm6, %v10990_v41, %v10905_v52 }
  0xde   : > { %8837 = vmatprep.mubr.msk.bf16.mxu0 %vm1497_vm2, %v13701_v9  ;;  %v1425_v9 = vrot.slane %v1423_v20, 4  ;;  %v1222_v8 = vrot.slane %v13706_v31, 4  ;;  %v1226_v57 = vrot.slane %v13707_v25, 5  ;;  %v7774_v26 = vcombine.low %v13708_v15, %v10738_v39  ;;  %v13710_v41 = vld [vmem:[#allocation7_spill] sm:$0xff] }
  0xdf   : > { %v1240_v6 = vrot.slane %v13703_v55, 5  ;;  %v1212_v55 = vrot.slane %v13705_v17, 4  ;;  %v1203_v39 = vsel %vm9974_vm6, %v11005_v4, %v10992_v2  ;;  %v1248_v31 = vshll.u32 %v7656_v10, 16  ;;  %v7657_v17 = vld [vmem:[%s9928_s29 + $0xc] sm:$0xe] }
  0xe0   : > { %v11220_v50 = vsel %vm9930_vm4, %v1425_v9, %v1426_v63  ;;  %8986 = vmatmul.mubr.msk.bf16.gmra.mrb[20].mxu1 %vm1497_vm2, %v10986_v49  ;;  %v1235_v63 = vor.u32 %v1234_v16, %v1231_v28  ;;  %v1227_v52 = vsel %vm9974_vm6, %v1222_v8, %v1226_v57  ;;  %v1318_v9 = vrot.slane %v13710_v41, 5  ;;  %v13711_v57 = vld [vmem:[#allocation10_spill] sm:$0xff]  ;;  %v13713_v8 = vld [vmem:[#allocation29_spill] sm:$0xff] }
  0xe1   : > { %v7939_v36 = vcombine.low %v11206_v33, %v11220_v50  ;;  %8989 = vmatprep.mubr.msk.bf16.mxu1 %vm1497_vm2, %v10988_v37  ;;  %v1245_v20 = vor.u32 %v1244_v24, %v1240_v6  ;;  %v1217_v34 = vsel %vm9974_vm6, %v1212_v55, %v11000_v13  ;;  %v11247_v25 = vcombine.low %v1193_v38, %v1203_v39  ;;  %v13712_v55 = vld [vmem:[#allocation27_spill] sm:$0xff]  ;;  %v9826_v38 = vld [vmem:[%s9928_s29 + $0x1c] sm:$0xf] }
  0xe2   : > { %v11249_v2 = vcombine.low %v1217_v34, %v1227_v52  ;;  %v1236_v4 = vrot.slane %v1235_v63, 4  ;;  %v1250_v28 = vrot.slane %v1248_v31, 5  ;;  %v7673_v13 = vrot.slane %v7657_v17, 9  ;;  %v7659_v31 = vld [vmem:[%s9928_s29 + $0x24] sm:$0xe]  ;;  %v13714_v17 = vld [vmem:[#allocation13_spill] sm:$0xff] }
  0xe3   : > { %v1246_v10 = vrot.slane %v1245_v20, 4  ;;  %v1320_v16 = vrot.slane %v1318_v9, 4  ;;  %v1321_v24 = vrot.slane %v13711_v57, 5  ;;  %v7777_v15 = vcombine.low %v13713_v8, %v13693_v48  ;;  %v7658_v20 = vld [vmem:[%s9928_s29 + $0x18] sm:$0xe] }
  0xe4   : > { %v1241_v30 = vsel %vm9974_vm6, %v1236_v4, %v1240_v6  ;;  %v1325_v39 = vrot.slane %v9826_v38, 5  ;;  %v1332_v48 = vrot.slane %v13674_v43, 5  ;;  %v7674_v52 = vrot.slane %v7658_v20, 9  ;;  %v13717_v38 = vld [vmem:[#allocation16_spill] sm:$0xff] }
  0xe5   : > { %8838 = vmatmul.mubr.msk.bf16.gmra.mrb[16].mxu0 %vm1497_vm2, %v7774_v26  ;;  %v7776_v26 = vcombine.low %v13712_v55, %v13690_v60  ;;  %v1319_v60 = vsel %vm9930_vm4, %v7673_v13, %v1318_v9  ;;  %v1322_v63 = vsel %vm9930_vm4, %v1320_v16, %v1321_v24  ;;  %v1328_v4 = vrot.slane %v13714_v17, 5  ;;  %v13716_v16 = vld [vmem:[#allocation33_spill] sm:$0xff]  ;;  %v7958_v17 = vld [vmem:[%s9928_s29 + $0xc] sm:$0xf] }
  0xe6   : > { %8841 = vmatprep.mubr.msk.bf16.mxu0 %vm1497_vm2, %v7775_v12  ;;  %v1251_v12 = vsel %vm9974_vm6, %v1246_v10, %v1250_v28  ;;  %v7924_v34 = vcombine.low %v1319_v60, %v1322_v63  ;;  %v1327_v41 = vrot.slane %v1325_v39, 4  ;;  %v7675_v9 = vrot.slane %v7659_v31, 9  ;;  %v13715_v28 = vld [vmem:[#allocation15_spill] sm:$0xff]  ;;  %v9783_v31 = vld [vmem:[%s13500_s1 + $0x98] sm:$0xff]  }
  0xe7   : > { %v11274_v6 = vcombine.low %v1241_v30, %v1251_v12  ;;  %v1334_v10 = vrot.slane %v1332_v48, 4  ;;  %v1335_v13 = vrot.slane %v13715_v28, 5  ;;  %v7778_v43 = vcombine.low %v13716_v16, %v13695_v27 }
  0xe8   : > { %8990 = vmatmul.mubr.msk.bf16.gmra.mrb[24].mxu1 %vm1497_vm2, %v11247_v25  ;;  %v7779_v57 = vcombine.low %v10890_v19, %v10908_v35  ;;  %v1326_v24 = vsel %vm9930_vm4, %v7674_v52, %v1325_v39  ;;  %v1329_v55 = vsel %vm9930_vm4, %v1327_v41, %v1328_v4  ;;  %v1333_v8 = vsel %vm9930_vm4, %v7675_v9, %v1332_v48  ;;  %v11313_v48 = vld [vmem:[%s13500_s1 + $0xc0] sm:$0xff]   ;;  %v7959_v41 = vld [vmem:[%s9928_s29 + $0x10] sm:$0xf] }
  0xe9   : > { %8993 = vmatprep.mubr.msk.bf16.mxu1 %vm1497_vm2, %v11249_v2  ;;  %v1336_v27 = vsel %vm9930_vm4, %v1334_v10, %v1335_v13  ;;  %v7925_v19 = vcombine.low %v1326_v24, %v1329_v55  ;;  %v1342_v39 = vrot.slane %v13717_v38, 5  ;;  %v7780_v60 = vcombine.low %v10980_v3, %v10983_v7  ;;  %v13721_v52 = vld [vmem:[#allocation22_spill] sm:$0xff]  ;;  %v8006_v10 = vld [vmem:[%s9928_s29 + $0xc] sm:$0xe]  ;;  %v7960_v24 = vld [vmem:[%s9928_s29 + $0x18] sm:$0xf] }
  0xea   : > { %v7926_v35 = vcombine.low %v1333_v8, %v1336_v27  ;;  %v13719_v7 = vcombine.low %v11021_v14, %v11039_v51  ;;  %v11337_v14 = vld [vmem:[%s13500_s1 + $0x80] sm:$0xff]   ;;  %v7990_v51 = vld [vmem:[%s9928_s29 + $0x14] sm:$0x1]  ;;  %v4349_v4 = vrot.slane %v7959_v41, 5  ;;  %v13722_v9 = vcombine.low %v11043_v32, %v11058_v40 }
  0xeb   : > { %v3903_v28 = vshll.u32 %v7958_v17, 16  ;;  %v3909_v13 = vshll.u32 %v7959_v41, 16  ;;  %v13723_v16 = vcombine.low %v11053_v29, %v11066_v46  ;;  %v8022_v32 = vrot.slane %v8006_v10, 9  ;;  %v8007_v29 = vld [vmem:[%s9928_s29 + $0x18] sm:$0xe] }
  0xec   : > { %v4351_v40 = vrot.slane %v4349_v4, 4  ;;  %v4352_v55 = vrot.slane %v7990_v51, 5 }
  0xed   : > { %8842 = vmatmul.mubr.msk.bf16.gmra.mrb[20].mxu0 %vm1497_vm2, %v7776_v26  ;;  %v1339_v26 = vrot.slane %v10517_v5, 5  ;;  %v9780_v5 = vld [vmem:[%s13500_s1 + $0xd8] sm:$0xff]   ;;  %v3905_v27 = vrot.slane %v3903_v28, 5  ;;  %v11364_v38 = vsel %vm9930_vm4, %v8022_v32, %v4349_v4  ;;  %v8008_v4 = vld [vmem:[%s9928_s29 + $0x24] sm:$0xe] }
  0xee   : > { %8845 = vmatprep.mubr.msk.bf16.mxu0 %vm1497_vm2, %v7777_v15  ;;  %v7660_v15 = vld [vmem:[%s9928_s29 + $0x30] sm:$0xe] }
  0xef   : > { %v7676_v30 = vrot.slane %v7660_v15, 9  ;;  %v1341_v12 = vrot.slane %v1339_v26, 4  ;;  %v11360_v15 = vrot.slane %v3909_v13, 5  ;;  %v13726_v13 = vld [vmem:[#allocation24_spill] sm:$0xff] }
  0xf0   : > { %8994 = vmatmul.mubr.msk.bf16.gmra.mrb[28].mxu1 %vm1497_vm2, %v11274_v6 }
  0xf1   : > { %9001 = vmatprep.mubr.msk.bf16.mxu1 %vm1497_vm2, %v7924_v34  ;;  %v1340_v63 = vsel %vm9930_vm4, %v7676_v30, %v1339_v26  ;;  %v1343_v20 = vsel %vm9930_vm4, %v1341_v12, %v1342_v39  ;;  %v13720_v34 = vld [vmem:[#allocation18_spill] sm:$0xff]  ;;  %v3927_v30 = vshll.u32 %v7960_v24, 16  ;;  %v8023_v39 = vrot.slane %v8007_v29, 9 }
  0xf2   : > { %v7927_v3 = vcombine.low %v1340_v63, %v1343_v20  ;;  %v11355_v26 = vld [vmem:[%s9928_s29 + $0x20] sm:$0x1]  ;;  %v13724_v63 = vcombine.low %v11075_v44, %v11090_v23  ;;  %v11375_v20 = vsel %vm9930_vm4, %v4351_v40, %v4352_v55  ;;  %v11385_v44 = vld [vmem:[%s9928_s29 + $0x2c] sm:$0x1]  ;;  %v8024_v55 = vrot.slane %v8008_v4, 9 }
  0xf3   : > { %v4366_v29 = vrot.slane %v11385_v44, 5 }
  0xf5   : > { %8846 = vmatmul.mubr.msk.bf16.gmra.mrb[24].mxu0 %vm1497_vm2, %v7778_v43  ;;  %v7961_v43 = vld [vmem:[%s9928_s29 + $0x1c] sm:$0xf] }
  0xf6   : > { %8849 = vmatprep.mubr.msk.bf16.mxu0 %vm1497_vm2, %v7779_v57  ;;  %v3913_v57 = vshrl.u32 %v7959_v41, 16  ;;  %v4356_v46 = vrot.slane %v7961_v43, 5  ;;  %v3937_v12 = vshrl.u32 %v7961_v43, 16  ;;  %v3929_v41 = vrot.slane %v3927_v30, 5 }
  0xf8   : > { %9002 = vmatmul.mubr.msk.bf16.vlgmr.msra.gmra.mrb[0].mxu1 %vm1497_vm2, %v7925_v19  ;;  %v3915_v19 = vrot.slane %v3913_v57, 4  ;;  %v3939_v23 = vrot.slane %v3937_v12, 4 }
  0xf9   : > { %9178 = vmatpush3.bf16.msra.mxu1 %v10877_v22  ;;  %9005 = vmatprep.mubr.msk.bf16.mxu1 %vm1497_vm2, %v7926_v35  ;;  %v13718_v22 = vld [vmem:[#allocation17_spill] sm:$0xff]  ;;  %v3924_v35 = vshrl.u32 %v7960_v24, 16  ;;  %v7964_v24 = vld [vmem:[%s9928_s29 + $0x30] sm:$0xf] }
  0xfa   : > { %9179 = vmatprep.subr.bf16.mxu1 %v9780_v5  ;;  %v3972_v12 = vshrl.u32 %v7964_v24, 16 }
  0xfd   : > { %8850 = vmatmul.mubr.msk.bf16.gmra.mrb[28].mxu0 %vm1497_vm2, %v7780_v60  ;;  %9180 = vmatpush3.bf16.msra.mxu1 %v9780_v5  ;;  %v7963_v5 = vld [vmem:[%s9928_s29 + $0x28] sm:$0xf]  ;;  %v7962_v60 = vld [vmem:[%s9928_s29 + $0x24] sm:$0xf] }
  0xfe   : > { %8857 = vmatprep.mubr.msk.bf16.mxu0 %vm1497_vm2, %v13718_v22  ;;  %9213 = vmatprep.subr.bf16.mxu1 %v11313_v48  ;;  %v4358_v22 = vrot.slane %v4356_v46, 4  ;;  %v3948_v10 = vshrl.u32 %v7962_v60, 16  ;;  %v3961_v28 = vshrl.u32 %v7963_v5, 16 }
 0x100   : > { %9006 = vmatmul.mubr.msk.bf16.gmra.mrb[4].mxu1 %vm1497_vm2, %v7927_v3 }
 0x101   : > { %9009 = vmatprep.mubr.msk.bf16.mxu1 %vm1497_vm2, %v13719_v7  ;;  %v3919_v7 = vshll.u32 %v7990_v51, 16  ;;  %v3957_v51 = vshll.u32 %v7963_v5, 16 }
 0x103   : > { %v3921_v57 = vrot.slane %v3919_v7, 5  ;;  %v11407_v30 = vrot.slane %v3957_v51, 5 }
 0x105   : > { %8858 = vmatmul.mubr.msk.bf16.vlgmr.msra.gmra.mrb[0].mxu0 %vm1497_vm2, %v13720_v34  ;;  %v3916_v34 = vor.u32 %v3915_v19, %v11360_v15  ;;  %v3950_v19 = vrot.slane %v3948_v10, 4  ;;  %v11428_v10 = vld [vmem:[%s9928_s29 + $0x40] sm:$0xf] }
 0x106   : > { %8861 = vmatprep.mubr.msk.bf16.mxu0 %vm1497_vm2, %v13721_v52  ;;  %9034 = vmatpush3.bf16.msra.mxu0 %v10998_v42  ;;  %v3900_v42 = vshrl.u32 %v7958_v17, 16  ;;  %v3926_v52 = vrot.slane %v3924_v35, 4 }
 0x107   : > { %9035 = vmatprep.subr.bf16.mxu0 %v9783_v31  ;;  %v3917_v32 = vrot.slane %v3916_v34, 4 }
 0x108   : > { %9010 = vmatmul.mubr.msk.bf16.gmra.mrb[8].mxu1 %vm1497_vm2, %v13722_v9  ;;  %v3902_v8 = vrot.slane %v3900_v42, 4  ;;  %v4363_v9 = vrot.slane %v7963_v5, 5  ;;  %v3951_v42 = vshll.u32 %v7962_v60, 16  ;;  %v3930_v40 = vor.u32 %v3929_v41, %v3926_v52 }
 0x109   : > { %9013 = vmatprep.mubr.msk.bf16.mxu1 %vm1497_vm2, %v13723_v16 }
 0x10a   : > { %9036 = vmatpush3.bf16.msra.mxu0 %v9783_v31  ;;  %v3906_v3 = vor.u32 %v3905_v27, %v3902_v8  ;;  %v13725_v31 = vcombine.low %v11081_v53, %v11099_v21  ;;  %v8310_v53 = vcombine.low %v11364_v38, %v11375_v20  ;;  %v11394_v21 = vsel %vm9930_vm4, %v8023_v39, %v4356_v46  ;;  %v7965_v46 = vld [vmem:[%s9928_s29 + $0x34] sm:$0xf] }
 0x10b   : > { %9069 = vmatprep.subr.bf16.mxu0 %v11337_v14  ;;  %v4365_v27 = vrot.slane %v4363_v9, 4  ;;  %v3953_v35 = vrot.slane %v3951_v42, 5  ;;  %v3975_v39 = vshll.u32 %v7964_v24, 16  ;;  %v3985_v7 = vshrl.u32 %v7965_v46, 16 }
 0x10c   : > { %v3931_v52 = vrot.slane %v3930_v40, 4  ;;  %v4370_v4 = vrot.slane %v7965_v46, 5  ;;  %v13733_v40 = vld [vmem:[#allocation4_spill] sm:$0xff] }
 0x10d   : > { %8862 = vmatmul.mubr.msk.bf16.gmra.mrb[4].mxu0 %vm1497_vm2, %v10693_v54  ;;  %v3933_v54 = vshll.u32 %v7961_v43, 16  ;;  %v3907_v43 = vrot.slane %v3906_v3, 4  ;;  %v3981_v3 = vshll.u32 %v7965_v46, 16  ;;  %v11434_v51 = vsel %vm9930_vm4, %v4365_v27, %v4366_v29  ;;  %v8010_v29 = vld [vmem:[%s9928_s29 + $0x3c] sm:$0xe] }
 0x10e   : > { %8865 = vmatprep.mubr.msk.bf16.mxu0 %vm1497_vm2, %v10746_v1  ;;  %v4359_v1 = vrot.slane %v11355_v26, 5  ;;  %v3977_v24 = vrot.slane %v3975_v39, 5  ;;  %v4377_v46 = vrot.slane %v11428_v10, 5  ;;  %v4372_v39 = vrot.slane %v4370_v4, 4 }
 0x10f   : > { %v11382_v17 = vrot.slane %v3933_v54, 5  ;;  %v3963_v54 = vrot.slane %v3961_v28, 4  ;;  %v3954_v28 = vor.u32 %v3953_v35, %v3950_v19  ;;  %v11455_v35 = vld [vmem:[%s9928_s29 + $0x44] sm:$0x1] }
 0x110   : > { %9014 = vmatmul.mubr.msk.bf16.gmra.mrb[12].mxu1 %vm1497_vm2, %v13724_v63  ;;  %v11400_v16 = vsel %vm9930_vm4, %v4358_v22, %v4359_v1  ;;  %v13728_v1 = vld [vmem:[#allocation9_spill] sm:$0xff]  ;;  %v3912_v63 = vsel %vm9974_vm6, %v3907_v43, %v11360_v15  ;;  %v8009_v22 = vld [vmem:[%s9928_s29 + $0x30] sm:$0xe]  ;;  %v3922_v15 = vsel %vm9974_vm6, %v3917_v32, %v3921_v57  ;;  %v3967_v43 = vshll.u32 %v11385_v44, 16 }
 0x111   : > { %9017 = vmatprep.mubr.msk.bf16.mxu1 %vm1497_vm2, %v13725_v31  ;;  %v3940_v8 = vor.u32 %v3939_v23, %v11382_v17  ;;  %v13730_v31 = vld [vmem:[#allocation11_spill] sm:$0xff]  ;;  %v11425_v23 = vsel %vm9930_vm4, %v8024_v55, %v4363_v9  ;;  %v3964_v9 = vor.u32 %v3963_v54, %v11407_v30  ;;  %v8025_v57 = vrot.slane %v8009_v22, 9  ;;  %v11458_v54 = vld [vmem:[%s9928_s29 + $0x3c] sm:$0xf] }
 0x112   : > { %v13731_v34 = vcombine.low %v11113_v11, %v13730_v31  ;;  %v7993_v11 = vld [vmem:[%s9928_s29 + $0x38] sm:$0x1]  ;;  %v11443_v32 = vrot.slane %v3981_v3, 5  ;;  %v3987_v55 = vrot.slane %v3985_v7, 4  ;;  %v3936_v27 = vsel %vm9974_vm6, %v3931_v52, %v11382_v17  ;;  %v13734_v3 = vld [vmem:[#allocation14_spill] sm:$0xff] }
 0x113   : > { %v3941_v42 = vrot.slane %v3940_v8, 4  ;;  %v11447_v8 = vcombine.low %v3912_v63, %v3922_v15  ;;  %v4373_v19 = vrot.slane %v7993_v11, 5  ;;  %v3969_v63 = vrot.slane %v3967_v43, 5  ;;  %v11469_v15 = vld [vmem:[%s9928_s29 + $0x4c] sm:$0xf] }
 0x114   : > { %v8026_v17 = vrot.slane %v8010_v29, 9  ;;  %v13735_v7 = vcombine.low %v11139_v62, %v13734_v3  ;;  %v3988_v31 = vor.u32 %v3987_v55, %v11443_v32  ;;  %v4380_v52 = vrot.slane %v11455_v35, 5  ;;  %13736 = vst [vmem:[#allocation2_spill] sm:$0xff] %v11469_v15  ;;  %v8011_v55 = vld [vmem:[%s9928_s29 + $0x48] sm:$0xe] }
 0x115   : > { %8866 = vmatmul.mubr.msk.bf16.gmra.mrb[8].mxu0 %vm1497_vm2, %v10748_v47  ;;  %v3943_v47 = vshll.u32 %v11355_v26, 16  ;;  %v13727_v26 = vld [vmem:[#allocation8_spill] sm:$0xff]  ;;  %v11478_v62 = vsel %vm9930_vm4, %v8025_v57, %v4370_v4  ;;  %v4384_v29 = vrot.slane %v11469_v15, 5  ;;  %v4029_v3 = vshll.u32 %v11469_v15, 16 }
 0x116   : > { %8869 = vmatprep.mubr.msk.bf16.mxu0 %vm1497_vm2, %v13726_v13  ;;  %v13729_v5 = vcombine.low %v13727_v26, %v13728_v1  ;;  %v13732_v13 = vld [vmem:[#allocation6_spill] sm:$0xff]  ;;  %v3955_v26 = vrot.slane %v3954_v28, 4  ;;  %v3991_v1 = vshll.u32 %v7993_v11, 16  ;;  %v3999_v11 = vshll.u32 %v11458_v54, 16 }
 0x117   : > { %v3945_v41 = vrot.slane %v3943_v47, 5  ;;  %v3974_v47 = vrot.slane %v3972_v12, 4  ;;  %v4005_v28 = vshll.u32 %v11428_v10, 16  ;;  %v11501_v57 = vsel %vm9930_vm4, %v8026_v17, %v4377_v46 }
 0x118   : > { %9018 = vmatmul.mubr.msk.bf16.gmra.mrb[16].mxu1 %vm1497_vm2, %v13729_v5  ;;  %v3965_v5 = vrot.slane %v3964_v9, 4  ;;  %v11484_v9 = vld [vmem:[%s9928_s29 + $0x48] sm:$0xf]  ;;  %v3993_v4 = vrot.slane %v3991_v1, 5  ;;  %v4001_v1 = vrot.slane %v3999_v11, 5  ;;  %v8027_v17 = vrot.slane %v8011_v55, 9 }
 0x119   : > { %9021 = vmatprep.mubr.msk.bf16.mxu1 %vm1497_vm2, %v13731_v34  ;;  %v3946_v12 = vsel %vm9974_vm6, %v3941_v42, %v3945_v41  ;;  %v3978_v22 = vor.u32 %v3977_v24, %v3974_v47  ;;  %v4379_v34 = vrot.slane %v4377_v46, 4  ;;  %v3996_v41 = vshrl.u32 %v11458_v54, 16  ;;  %13738 = vst [vmem:[#allocation26_spill] sm:$0xff] %v11484_v9  ;;  %v13739_v47 = vld [vmem:[#allocation3_spill] sm:$0xff]  ;;  %v13742_v11 = vld [vmem:[#allocation12_spill] sm:$0xff] }
 0x11a   : > { %v13737_v42 = vcombine.low %v11143_v18, %v11162_v0  ;;  %v11486_v43 = vcombine.low %v3936_v27, %v3946_v12  ;;  %v11490_v18 = vsel %vm9930_vm4, %v4372_v39, %v4373_v19  ;;  %v3960_v0 = vsel %vm9974_vm6, %v3955_v26, %v11407_v30  ;;  %v13740_v27 = vld [vmem:[#allocation5_spill] sm:$0xff]  ;;  %v7995_v12 = vld [vmem:[%s9928_s29 + $0x50] sm:$0x1] }
 0x11b   : > { %v3970_v24 = vsel %vm9974_vm6, %v3965_v5, %v3969_v63  ;;  %v3989_v19 = vrot.slane %v3988_v31, 4  ;;  %v11509_v30 = vsel %vm9930_vm4, %v4379_v34, %v4380_v52  ;;  %v3998_v39 = vrot.slane %v3996_v41, 4 }
 0x11c   : > { %v4020_v26 = vshrl.u32 %v11484_v9, 16  ;;  %v11513_v5 = vrot.slane %v4005_v28, 5  ;;  %v4023_v63 = vshll.u32 %v11484_v9, 16  ;;  %v11520_v31 = vcombine.low %v3960_v0, %v3970_v24 }
 0x11d   : > { %8870 = vmatmul.mubr.msk.bf16.gmra.mrb[12].mxu0 %vm1497_vm2, %v13732_v13  ;;  %v4009_v13 = vshrl.u32 %v11428_v10, 16  ;;  %v4386_v52 = vrot.slane %v4384_v29, 4  ;;  %v4387_v41 = vrot.slane %v7995_v12, 5  ;;  %v13743_v28 = vcombine.low %v11166_v56, %v13742_v11 }
 0x11e   : > { %8873 = vmatprep.mubr.msk.bf16.mxu0 %vm1497_vm2, %v13733_v40  ;;  %v3979_v40 = vrot.slane %v3978_v22, 4  ;;  %v4022_v24 = vrot.slane %v4020_v26, 4  ;;  %v4002_v56 = vor.u32 %v4001_v1, %v3998_v39  ;;  %v4039_v11 = vshll.u32 %v7995_v12, 16  ;;  %v11561_v12 = vld [vmem:[%s9928_s29 + $0x64] sm:$0xf] }
 0x11f   : > { %v4011_v46 = vrot.slane %v4009_v13, 4  ;;  %v3994_v13 = vsel %vm9974_vm6, %v3989_v19, %v3993_v4  ;;  %v8012_v4 = vld [vmem:[%s9928_s29 + $0x54] sm:$0xe]  ;;  %v11546_v19 = vrot.slane %v4029_v3, 5  ;;  %13746 = vst [vmem:[#allocation20_spill] sm:$0xff] %v11561_v12 }
 0x120   : > { %9022 = vmatmul.mubr.msk.bf16.gmra.mrb[20].mxu1 %vm1497_vm2, %v13735_v7  ;;  %v4033_v7 = vshrl.u32 %v11469_v15, 16  ;;  %v3984_v34 = vsel %vm9974_vm6, %v3979_v40, %v11443_v32  ;;  %v11538_v32 = vld [vmem:[%s9928_s29 + $0x58] sm:$0xf]  ;;  %v13745_v40 = vcombine.low %v11173_v59, %v11198_v58  ;;  %v11554_v59 = vsel %vm9930_vm4, %v8027_v17, %v4384_v29  ;;  %v11571_v17 = vld [vmem:[%s9928_s29 + $0x60] sm:$0xf] }
 0x121   : > { %9025 = vmatprep.mubr.msk.bf16.mxu1 %vm1497_vm2, %v13737_v42  ;;  %v11526_v42 = vld [vmem:[%s9928_s29 + $0x54] sm:$0xf]  ;;  %13744 = vst [vmem:[#allocation19_spill] sm:$0xff] %v11538_v32  ;;  %v4012_v55 = vor.u32 %v4011_v46, %v11513_v5  ;;  %v11558_v58 = vsel %vm9930_vm4, %v4386_v52, %v4387_v41  ;;  %v4053_v39 = vshll.u32 %v11538_v32, 16  ;;  %v4057_v1 = vshrl.u32 %v11538_v32, 16  ;;  %13747 = vst [vmem:[#allocation28_spill] sm:$0xff] %v11571_v17 }
 0x122   : > { %13741 = vst [vmem:[#allocation31_spill] sm:$0xff] %v11526_v42  ;;  %v4047_v26 = vshll.u32 %v11526_v42, 16  ;;  %v8028_v29 = vrot.slane %v8012_v4, 9  ;;  %v4003_v3 = vrot.slane %v4002_v56, 4  ;;  %v11573_v41 = vrot.slane %v4039_v11, 5 }
 0x123   : > { %v8013_v22 = vld [vmem:[%s9928_s29 + $0x60] sm:$0xe]  ;;  %v4059_v4 = vrot.slane %v4057_v1, 4  ;;  %v4068_v60 = vshrl.u32 %v11571_v17, 16  ;;  %v4071_v56 = vshll.u32 %v11571_v17, 16  ;;  %v4081_v11 = vshrl.u32 %v11561_v12, 16 }
 0x124   : > { %v8017_v15 = vld [vmem:[%s9928_s29 + $0x90] sm:$0xe] }
 0x125   : > { %8874 = vmatmul.mubr.msk.bf16.gmra.mrb[16].mxu0 %vm1497_vm2, %v13739_v47  ;;  %v4015_v47 = vshll.u32 %v11455_v35, 16  ;;  %v4044_v35 = vshrl.u32 %v11526_v42, 16  ;;  %v4073_v9 = vrot.slane %v4071_v56, 5  ;;  %v11824_v42 = vld [vmem:[%s13500_s1 + $0xa0] sm:$0xff]  }
 0x126   : > { %8877 = vmatprep.mubr.msk.bf16.mxu0 %vm1497_vm2, %v13740_v27  ;;  %v4025_v27 = vrot.slane %v4023_v63, 5  ;;  %v4391_v63 = vrot.slane %v11538_v32, 5  ;;  %v9787_v32 = vld [vmem:[%s13500_s1 + $0x88] sm:$0xff]  }
 0x127   : > { %v4017_v46 = vrot.slane %v4015_v47, 5  ;;  %v4046_v44 = vrot.slane %v4044_v35, 4  ;;  %v11580_v47 = vrot.slane %v4053_v39, 5 }
 0x128   : > { %9026 = vmatmul.mubr.msk.bf16.gmra.mrb[24].mxu1 %vm1497_vm2, %v13743_v28  ;;  %v4035_v28 = vrot.slane %v4033_v7, 4  ;;  %v4013_v7 = vrot.slane %v4012_v55, 4  ;;  %v4026_v52 = vor.u32 %v4025_v27, %v4022_v24  ;;  %v4393_v24 = vrot.slane %v4391_v63, 4 }
 0x129   : > { %9029 = vmatprep.mubr.msk.bf16.mxu1 %vm1497_vm2, %v13745_v40  ;;  %v7996_v40 = vld [vmem:[%s9928_s29 + $0x5c] sm:$0x1]  ;;  %v4077_v27 = vshll.u32 %v11561_v12, 16  ;;  %v4060_v38 = vor.u32 %v4059_v4, %v11580_v47 }
 0x12a   : > { %v4036_v0 = vor.u32 %v4035_v28, %v11546_v19  ;;  %v4394_v55 = vrot.slane %v7996_v40, 5  ;;  %v4008_v28 = vsel %vm9974_vm6, %v4003_v3, %v11513_v5  ;;  %v4018_v33 = vsel %vm9974_vm6, %v4013_v7, %v4017_v46 }
 0x12b   : > { %v4027_v50 = vrot.slane %v4026_v52, 4  ;;  %v4063_v20 = vshll.u32 %v7996_v40, 16  ;;  %v11606_v5 = vsel %vm9930_vm4, %v8028_v29, %v4391_v63  ;;  %v11626_v29 = vld [vmem:[%s9928_s29 + $0x70] sm:$0xf]  ;;  %v11629_v63 = vld [vmem:[%s9928_s29 + $0x6c] sm:$0xf] }
 0x12c   : > { %v4037_v35 = vrot.slane %v4036_v0, 4  ;;  %13748 = vst [vmem:[#allocation32_spill] sm:$0xff] %v11626_v29  ;;  %13749 = vst [vmem:[#allocation30_spill] sm:$0xff] %v11629_v63  ;;  %v9784_v40 = vld [vmem:[%s13500_s1 + $0xc8] sm:$0xff]   ;;  %v11648_v4 = vrot.slane %v4060_v38, 4 }
 0x12d   : > { %8878 = vmatmul.mubr.msk.bf16.gmra.mrb[20].mxu0 %vm1497_vm2, %v10986_v49  ;;  %v11567_v49 = vcombine.low %v3984_v34, %v3994_v13  ;;  %v4049_v34 = vrot.slane %v4047_v26, 5  ;;  %v7997_v13 = vld [vmem:[%s9928_s29 + $0x68] sm:$0x1]  ;;  %v11650_v56 = vrot.slane %v4063_v20, 5  ;;  %v11748_v0 = vld [vmem:[%s9928_s29 + $0xb8] sm:$0xf] }
 0x12e   : > { %8881 = vmatprep.mubr.msk.bf16.mxu0 %vm1497_vm2, %v10988_v37  ;;  %v4398_v37 = vrot.slane %v11561_v12, 5  ;;  %v4401_v39 = vrot.slane %v7997_v13, 5  ;;  %v4042_v3 = vsel %vm9974_vm6, %v4037_v35, %v11573_v41  ;;  %v4105_v35 = vshrl.u32 %v11626_v29, 16  ;;  %13754 = vst [vmem:[#allocation21_spill] sm:$0xff] %v11748_v0  ;;  %v11751_v20 = vld [vmem:[%s9928_s29 + $0xb4] sm:$0xf] }
 0x12f   : > { %v4050_v1 = vor.u32 %v4049_v34, %v4046_v44  ;;  %v11610_v44 = vsel %vm9930_vm4, %v4393_v24, %v4394_v55  ;;  %v11653_v24 = vld [vmem:[%s9928_s29 + $0x74] sm:$0x1]  ;;  %v11656_v55 = vld [vmem:[%s9928_s29 + $0x6c] sm:$0xe]  ;;  %13755 = vst [vmem:[#allocation23_spill] sm:$0xff] %v11751_v20 }
 0x130   : > { %9030 = vmatmul.mubr.msk.bf16.gmra.mrb[28].mxu1 %vm1497_vm2, %v7939_v36  ;;  %v8029_v36 = vrot.slane %v8013_v22, 9  ;;  %v4400_v26 = vrot.slane %v4398_v37, 4  ;;  %v11612_v22 = vrot.slane %v4077_v27, 5  ;;  %v4111_v34 = vshll.u32 %v11653_v24, 16 }
 0x131   : > { %9181 = vmatprep.mubr.msk.bf16.mxu1 %vm1497_vm2, %v8310_v53  ;;  %v4070_v53 = vrot.slane %v4068_v60, 4  ;;  %v11616_v60 = vcombine.low %v4008_v28, %v4018_v33  ;;  %v11638_v52 = vrot.slane %v4050_v1, 4  ;;  %v11665_v28 = vld [vmem:[%s9928_s29 + $0x78] sm:$0xe]  ;;  %v4092_v33 = vshrl.u32 %v11629_v63, 16  ;;  %v11694_v1 = vld [vmem:[%s13500_s1 + $0xe0] sm:$0xff]  }
 0x132   : > { %v11623_v46 = vsel %vm9930_vm4, %v8029_v36, %v4398_v37  ;;  %v11636_v7 = vsel %vm9930_vm4, %v4400_v26, %v4401_v39  ;;  %v11644_v37 = vld [vmem:[%s9928_s29 + $0x7c] sm:$0xf]  ;;  %v4101_v36 = vshll.u32 %v11626_v29, 16  ;;  %v11689_v39 = vld [vmem:[%s9928_s29 + $0x78] sm:$0xf] }
 0x133   : > { %v4074_v41 = vor.u32 %v4073_v9, %v4070_v53  ;;  %v4095_v9 = vshll.u32 %v11629_v63, 16  ;;  %v4056_v26 = vsel %vm9974_vm6, %v11638_v52, %v11580_v47  ;;  %13752 = vst [vmem:[#allocation34_spill] sm:$0xff] %v11689_v39  ;;  %v4066_v47 = vsel %vm9974_vm6, %v11648_v4, %v11650_v56  ;;  %v11711_v52 = vld [vmem:[%s9928_s29 + $0x88] sm:$0xf]  ;;  %v11717_v4 = vld [vmem:[%s9928_s29 + $0x84] sm:$0xf] }
 0x134   : > { %13753 = vst [vmem:[#allocation35_spill] sm:$0xff] %v11717_v4  ;;  %v11720_v56 = vld [vmem:[%s9928_s29 + $0x90] sm:$0xf]  ;;  %v11768_v63 = vld [vmem:[%s9928_s29 + $0xc0] sm:$0xf] }
 0x135   : > { %8882 = vmatmul.mubr.msk.bf16.gmra.mrb[24].mxu0 %vm1497_vm2, %v11247_v25  ;;  %v4083_v25 = vrot.slane %v4081_v11, 4  ;;  %v4405_v11 = vrot.slane %v11626_v29, 5  ;;  %v11702_v38 = vrot.slane %v4074_v41, 4  ;;  %v11722_v41 = vrot.slane %v4101_v36, 5  ;;  %v11739_v36 = vld [vmem:[%s9928_s29 + $0xa8] sm:$0xf] }
 0x136   : > { %8885 = vmatprep.mubr.msk.bf16.mxu0 %vm1497_vm2, %v11249_v2  ;;  %v4032_v2 = vsel %vm9974_vm6, %v4027_v50, %v11546_v19  ;;  %v4087_v19 = vshll.u32 %v7997_v13, 16  ;;  %v13750_v13 = vcombine.low %v11394_v21, %v11400_v16  ;;  %v13751_v50 = vcombine.low %v11425_v23, %v11434_v51  ;;  %v11765_v29 = vld [vmem:[%s9928_s29 + $0xc4] sm:$0xf]  ;;  %13758 = vst [vmem:[#allocation7_spill] sm:$0xff] %v11768_v63 }
 0x137   : > { %v4084_v27 = vor.u32 %v4083_v25, %v11612_v22  ;;  %v11674_v21 = vcombine.low %v4032_v2, %v4042_v3  ;;  %v8030_v23 = vrot.slane %v11656_v55, 9  ;;  %v4408_v51 = vrot.slane %v11653_v24, 5  ;;  %13757 = vst [vmem:[#allocation25_spill] sm:$0xff] %v11765_v29  ;;  %v7999_v24 = vld [vmem:[%s9928_s29 + $0x80] sm:$0x1] }
 0x138   : > { %9182 = vmatmul.mubr.msk.bf16.vlgmr.msra.gmra.mrb[32].mxu1 %vm1497_vm2, %v13750_v13  ;;  %v4407_v2 = vrot.slane %v4405_v11, 4  ;;  %v4097_v3 = vrot.slane %v4095_v9, 5  ;;  %v4107_v55 = vrot.slane %v4105_v35, 4  ;;  %v4116_v13 = vshrl.u32 %v11689_v39, 16 }
 0x139   : > { %9214 = vmatpush3.bf16.msra.mxu1 %v11313_v48  ;;  %9185 = vmatprep.mubr.msk.bf16.mxu1 %vm1497_vm2, %v13751_v50  ;;  %v11684_v48 = vrot.slane %v4087_v19, 5  ;;  %v11708_v25 = vrot.slane %v4084_v27, 4  ;;  %v11714_v19 = vld [vmem:[%s9928_s29 + $0x94] sm:$0xf]  ;;  %v11726_v27 = vld [vmem:[%s9928_s29 + $0xa0] sm:$0xf]  ;;  %v13756_v35 = vcombine.low %v11478_v62, %v11490_v18  ;;  %v13759_v62 = vcombine.low %v11501_v57, %v11509_v30 }
 0x13a   : > { %9215 = vmatprep.subr.bf16.mxu1 %v9784_v40  ;;  %v4119_v50 = vshll.u32 %v11689_v39, 16  ;;  %v4125_v16 = vshll.u32 %v11644_v37, 16  ;;  %v4129_v9 = vshrl.u32 %v11644_v37, 16  ;;  %v11782_v18 = vsel %vm9930_vm4, %v8030_v23, %v4405_v11 }
 0x13b   : > { %v4108_v53 = vor.u32 %v4107_v55, %v11722_v41  ;;  %v11791_v57 = vcombine.low %v4056_v26, %v4066_v47  ;;  %v4080_v30 = vsel %vm9974_vm6, %v11702_v38, %v11612_v22  ;;  %v11799_v11 = vsel %vm9930_vm4, %v4407_v2, %v4408_v51  ;;  %v11808_v47 = vld [vmem:[%s9928_s29 + $0x8c] sm:$0x1]  ;;  %v8016_v2 = vld [vmem:[%s9928_s29 + $0x84] sm:$0xe] }
 0x13c   : > { %v13760_v23 = vrot.slane %v11644_v37, 5  ;;  %v4121_v55 = vrot.slane %v4119_v50, 5  ;;  %v4131_v26 = vrot.slane %v4129_v9, 4  ;;  %v4090_v22 = vsel %vm9974_vm6, %v11708_v25, %v11684_v48 }
 0x13d   : > { %8886 = vmatmul.mubr.msk.bf16.gmra.mrb[28].mxu0 %vm1497_vm2, %v11274_v6  ;;  %v4094_v6 = vrot.slane %v4092_v33, 4  ;;  %9216 = vmatpush3.bf16.msra.mxu1 %v9784_v40  ;;  %v11729_v33 = vld [vmem:[%s9928_s29 + $0xac] sm:$0xf]  ;;  %v11736_v40 = vld [vmem:[%s9928_s29 + $0x9c] sm:$0xf]  ;;  %v4415_v51 = vrot.slane %v7999_v24, 5 }
 0x13e   : > { %9037 = vmatprep.mubr.msk.bf16.mxu0 %vm1497_vm2, %v11447_v8  ;;  %9249 = vmatprep.subr.bf16.mxu1 %v11694_v1  ;;  %v4113_v38 = vrot.slane %v4111_v34, 5  ;;  %v4140_v9 = vshrl.u32 %v11717_v4, 16  ;;  %v4143_v50 = vshll.u32 %v11717_v4, 16  ;;  %v8318_v34 = vcombine.low %v11782_v18, %v11799_v11 }
 0x13f   : > { %v13761_v48 = vrot.slane %v11644_v37, 5  ;;  %v13762_v25 = vrot.slane %v11665_v28, 9  ;;  %v11838_v4 = vcombine.low %v4080_v30, %v4090_v22  ;;  %v4135_v17 = vshll.u32 %v7999_v24, 16 }
 0x140   : > { %9186 = vmatmul.mubr.msk.bf16.gmra.mrb[36].mxu1 %vm1497_vm2, %v13756_v35  ;;  %v4098_v35 = vor.u32 %v4097_v3, %v4094_v6  ;;  %v4414_v6 = vrot.slane %v13760_v23, 4  ;;  %v4118_v3 = vrot.slane %v4116_v13, 4  ;;  %v4419_v23 = vrot.slane %v11711_v52, 5 }
 0x141   : > { %9189 = vmatprep.mubr.msk.bf16.mxu1 %vm1497_vm2, %v13759_v62  ;;  %v11805_v62 = vrot.slane %v4125_v16, 5  ;;  %v4109_v13 = vrot.slane %v4108_v53, 4  ;;  %v4149_v53 = vshll.u32 %v11711_v52, 16  ;;  %v13763_v18 = vcombine.low %v11554_v59, %v11558_v58 }
 0x142   : > { %v4099_v16 = vrot.slane %v4098_v35, 4  ;;  %v4153_v35 = vshrl.u32 %v11711_v52, 16  ;;  %v4122_v39 = vor.u32 %v4121_v55, %v4118_v3  ;;  %v11848_v28 = vsel %vm9930_vm4, %v4414_v6, %v4415_v51 }
 0x143   : > { %v4132_v12 = vor.u32 %v4131_v26, %v11805_v62  ;;  %v8032_v11 = vrot.slane %v8016_v2, 9  ;;  %v13764_v30 = vcombine.low %v11606_v5, %v11610_v44  ;;  %v4114_v58 = vsel %vm9974_vm6, %v4109_v13, %v4113_v38  ;;  %v11877_v2 = vld [vmem:[%s9928_s29 + $0x98] sm:$0x1] }
 0x144   : > { %v4104_v59 = vsel %vm9974_vm6, %v4099_v16, %v11722_v41  ;;  %v4142_v24 = vrot.slane %v4140_v9, 4  ;;  %v4145_v6 = vrot.slane %v4143_v50, 5  ;;  %v8033_v3 = vrot.slane %v8017_v15, 9 }
 0x145   : > { %9038 = vmatmul.mubr.msk.bf16.vlgmr.msra.gmra.mrb[32].mxu0 %vm1497_vm2, %v11486_v43  ;;  %v11862_v55 = vrot.slane %v4149_v53, 5  ;;  %v4155_v5 = vrot.slane %v4153_v35, 4  ;;  %v4123_v41 = vrot.slane %v4122_v39, 4  ;;  %v4133_v26 = vrot.slane %v4132_v12, 4 }
 0x146   : > { %9041 = vmatprep.mubr.msk.bf16.mxu0 %vm1497_vm2, %v11520_v31  ;;  %9070 = vmatpush3.bf16.msra.mxu0 %v11337_v14  ;;  %v11834_v14 = vsel %vm9930_vm4, %v13762_v25, %v13761_v48  ;;  %v4421_v48 = vrot.slane %v4419_v23, 4  ;;  %v4422_v25 = vrot.slane %v11808_v47, 5  ;;  %v4137_v22 = vrot.slane %v4135_v17, 5 }
 0x147   : > { %9071 = vmatprep.subr.bf16.mxu0 %v9787_v32  ;;  %v8319_v44 = vcombine.low %v11834_v14, %v11848_v28  ;;  %v11870_v51 = vcombine.low %v4104_v59, %v4114_v58  ;;  %v4420_v15 = vsel %vm9930_vm4, %v8032_v11, %v4419_v23  ;;  %v4164_v16 = vshrl.u32 %v11720_v56, 16  ;;  %v8018_v28 = vld [vmem:[%s9928_s29 + $0x9c] sm:$0xe] }
 0x148   : > { %9190 = vmatmul.mubr.msk.bf16.gmra.mrb[40].mxu1 %vm1497_vm2, %v13763_v18  ;;  %v4423_v38 = vsel %vm9930_vm4, %v4421_v48, %v4422_v25  ;;  %v4146_v13 = vor.u32 %v4145_v6, %v4142_v24  ;;  %v4167_v12 = vshll.u32 %v11720_v56, 16  ;;  %v4173_v17 = vshll.u32 %v11714_v19, 16 }
 0x149   : > { %9193 = vmatprep.mubr.msk.bf16.mxu1 %vm1497_vm2, %v13764_v30  ;;  %v4177_v39 = vshrl.u32 %v11714_v19, 16  ;;  %v4156_v50 = vor.u32 %v4155_v5, %v11862_v55  ;;  %v4159_v14 = vshll.u32 %v11808_v47, 16  ;;  %v4128_v53 = vsel %vm9974_vm6, %v4123_v41, %v11805_v62  ;;  %v11902_v47 = vld [vmem:[%s9928_s29 + $0xa4] sm:$0x1] }
 0x14a   : > { %9072 = vmatpush3.bf16.msra.mxu0 %v9787_v32  ;;  %v4426_v32 = vrot.slane %v11714_v19, 5  ;;  %v4138_v35 = vsel %vm9974_vm6, %v4133_v26, %v4137_v22  ;;  %v4429_v18 = vrot.slane %v11877_v2, 5  ;;  %v4433_v11 = vrot.slane %v11726_v27, 5  ;;  %v8019_v22 = vld [vmem:[%s9928_s29 + $0xa8] sm:$0xe] }
 0x14b   : > { %9105 = vmatprep.subr.bf16.mxu0 %v11824_v42  ;;  %v13765_v48 = vcombine.low %v11623_v46, %v11636_v7  ;;  %v8320_v25 = vcombine.low %v4420_v15, %v4423_v38  ;;  %v4166_v30 = vrot.slane %v4164_v16, 4  ;;  %v4188_v62 = vshrl.u32 %v11736_v40, 16 }
 0x14c   : > { %v11885_v9 = vsel %vm9930_vm4, %v8033_v3, %v4426_v32  ;;  %v4428_v23 = vrot.slane %v4426_v32, 4  ;;  %v4191_v59 = vshll.u32 %v11736_v40, 16  ;;  %v4147_v58 = vrot.slane %v4146_v13, 4  ;;  %v11923_v13 = vld [vmem:[%s9928_s29 + $0xb0] sm:$0x1] }
 0x14d   : > { %9042 = vmatmul.mubr.msk.bf16.gmra.mrb[36].mxu0 %vm1497_vm2, %v11567_v49  ;;  %v4169_v24 = vrot.slane %v4167_v12, 5  ;;  %v11907_v6 = vrot.slane %v4173_v17, 5  ;;  %v4179_v3 = vrot.slane %v4177_v39, 4  ;;  %v4157_v46 = vrot.slane %v4156_v50, 4 }
 0x14e   : > { %9045 = vmatprep.mubr.msk.bf16.mxu0 %vm1497_vm2, %v11616_v60  ;;  %v4161_v7 = vrot.slane %v4159_v14, 5  ;;  %v8034_v32 = vrot.slane %v8018_v28, 9  ;;  %v4440_v5 = vrot.slane %v11729_v33, 5  ;;  %v4435_v41 = vrot.slane %v4433_v11, 4 }
 0x14f   : > { %v4436_v26 = vrot.slane %v11902_v47, 5  ;;  %v4201_v15 = vshrl.u32 %v11726_v27, 16  ;;  %v11918_v38 = vcombine.low %v4128_v53, %v4138_v35  ;;  %v4430_v16 = vsel %vm9930_vm4, %v4428_v23, %v4429_v18 }
 0x150   : > { %9194 = vmatmul.mubr.msk.bf16.gmra.mrb[44].mxu1 %vm1497_vm2, %v13765_v48  ;;  %v4190_v12 = vrot.slane %v4188_v62, 4  ;;  %v4193_v17 = vrot.slane %v4191_v59, 5  ;;  %v4152_v39 = vsel %vm9974_vm6, %v4147_v58, %v11862_v55  ;;  %v4170_v50 = vor.u32 %v4169_v24, %v4166_v30 }
 0x151   : > { %9197 = vmatprep.mubr.msk.bf16.mxu1 %vm1497_vm2, %v8318_v34  ;;  %v4197_v34 = vshll.u32 %v11726_v27, 16  ;;  %v4180_v14 = vor.u32 %v4179_v3, %v11907_v6  ;;  %v4183_v28 = vshll.u32 %v11877_v2, 16  ;;  %v4162_v53 = vsel %vm9974_vm6, %v4157_v46, %v4161_v7 }
 0x152   : > { %v4434_v35 = vsel %vm9930_vm4, %v8034_v32, %v4433_v11  ;;  %v8035_v23 = vrot.slane %v8019_v22, 9  ;;  %v4442_v18 = vrot.slane %v4440_v5, 4  ;;  %v4437_v48 = vsel %vm9930_vm4, %v4435_v41, %v4436_v26 }
 0x153   : > { %v4443_v62 = vrot.slane %v11923_v13, 5  ;;  %v11937_v59 = vrot.slane %v4197_v34, 5  ;;  %v4203_v55 = vrot.slane %v4201_v15, 4  ;;  %v4194_v30 = vor.u32 %v4193_v17, %v4190_v12  ;;  %v11960_v15 = vld [vmem:[%s9928_s29 + $0xbc] sm:$0x1] }
 0x154   : > { %v4212_v2 = vshrl.u32 %v11739_v36, 16  ;;  %v4215_v58 = vshll.u32 %v11739_v36, 16  ;;  %v4221_v11 = vshll.u32 %v11729_v33, 16  ;;  %v8321_v24 = vcombine.low %v11885_v9, %v4430_v16  ;;  %v8020_v16 = vld [vmem:[%s9928_s29 + $0xb4] sm:$0xe] }
 0x155   : > { %9046 = vmatmul.mubr.msk.bf16.gmra.mrb[40].mxu0 %vm1497_vm2, %v11674_v21  ;;  %v11945_v3 = vcombine.low %v4152_v39, %v4162_v53  ;;  %v4171_v46 = vrot.slane %v4170_v50, 4  ;;  %v4185_v7 = vrot.slane %v4183_v28, 5  ;;  %v4181_v32 = vrot.slane %v4180_v14, 4 }
 0x156   : > { %9049 = vmatprep.mubr.msk.bf16.mxu0 %vm1497_vm2, %v11791_v57  ;;  %v4225_v41 = vshrl.u32 %v11729_v33, 16  ;;  %v4447_v26 = vrot.slane %v11748_v0, 5  ;;  %v8322_v22 = vcombine.low %v4434_v35, %v4437_v48  ;;  %v4444_v9 = vsel %vm9930_vm4, %v4442_v18, %v4443_v62 }
 0x157   : > { %v4207_v34 = vshll.u32 %v11902_v47, 16  ;;  %v4214_v12 = vrot.slane %v4212_v2, 4  ;;  %v4217_v17 = vrot.slane %v4215_v58, 5  ;;  %v11965_v39 = vrot.slane %v4221_v11, 5 }
 0x158   : > { %9198 = vmatmul.mubr.msk.bf16.gmra.mrb[48].mxu1 %vm1497_vm2, %v8319_v44  ;;  %v11949_v44 = vsel %vm9930_vm4, %v8035_v23, %v4440_v5  ;;  %v4195_v5 = vrot.slane %v4194_v30, 4  ;;  %v4236_v50 = vshrl.u32 %v11751_v20, 16  ;;  %v4239_v14 = vshll.u32 %v11751_v20, 16 }
 0x159   : > { %9201 = vmatprep.mubr.msk.bf16.mxu1 %vm1497_vm2, %v8320_v25  ;;  %v4204_v25 = vor.u32 %v4203_v55, %v11937_v59  ;;  %v4245_v28 = vshll.u32 %v11748_v0, 16  ;;  %v4249_v47 = vshrl.u32 %v11748_v0, 16  ;;  %v4227_v53 = vrot.slane %v4225_v41, 4  ;;  %v8021_v0 = vld [vmem:[%s9928_s29 + $0xc0] sm:$0xe] }
 0x15a   : > { %v8036_v35 = vrot.slane %v8020_v16, 9  ;;  %v4449_v23 = vrot.slane %v4447_v26, 4  ;;  %v4450_v18 = vrot.slane %v11960_v15, 5  ;;  %v4176_v48 = vsel %vm9974_vm6, %v4171_v46, %v11907_v6  ;;  %v8005_v16 = vld [vmem:[%s9928_s29 + $0xc8] sm:$0x1] }
 0x15b   : > { %v4205_v62 = vrot.slane %v4204_v25, 4  ;;  %v4209_v55 = vrot.slane %v4207_v34, 5  ;;  %v4454_v30 = vrot.slane %v11765_v29, 5  ;;  %v4186_v2 = vsel %vm9974_vm6, %v4181_v32, %v4185_v7 }
 0x15c   : > { %v8323_v58 = vcombine.low %v11949_v44, %v4444_v9  ;;  %v4218_v11 = vor.u32 %v4217_v17, %v4214_v12  ;;  %v4231_v41 = vshll.u32 %v11923_v13, 16  ;;  %v4238_v20 = vrot.slane %v4236_v50, 4 }
 0x15d   : > { %9050 = vmatmul.mubr.msk.bf16.gmra.mrb[44].mxu0 %vm1497_vm2, %v11838_v4  ;;  %v4241_v6 = vrot.slane %v4239_v14, 5  ;;  %v4247_v46 = vrot.slane %v4245_v28, 5  ;;  %v4251_v25 = vrot.slane %v4249_v47, 4  ;;  %v4228_v34 = vor.u32 %v4227_v53, %v11965_v39 }
 0x15e   : > { %9053 = vmatprep.mubr.msk.bf16.mxu0 %vm1497_vm2, %v11870_v51  ;;  %v4448_v7 = vsel %vm9930_vm4, %v8036_v35, %v4447_v26  ;;  %v4451_v13 = vsel %vm9930_vm4, %v4449_v23, %v4450_v18  ;;  %v4210_v32 = vsel %vm9974_vm6, %v4205_v62, %v4209_v55  ;;  %v8037_v44 = vrot.slane %v8021_v0, 9 }
 0x15f   : > { %v4457_v9 = vrot.slane %v8005_v16, 5  ;;  %v4269_v26 = vshll.u32 %v11765_v29, 16  ;;  %v4273_v12 = vshrl.u32 %v11765_v29, 16  ;;  %v8324_v17 = vcombine.low %v4448_v7, %v4451_v13 }
 0x160   : > { %9202 = vmatmul.mubr.msk.bf16.gmra.mrb[52].mxu1 %vm1497_vm2, %v8321_v24  ;;  %v4200_v24 = vsel %vm9974_vm6, %v4195_v5, %v11937_v59  ;;  %v4260_v59 = vshrl.u32 %v11768_v63, 16  ;;  %v4263_v5 = vshll.u32 %v11768_v63, 16  ;;  %v4242_v50 = vor.u32 %v4241_v6, %v4238_v20  ;;  %v8095_v63 = vld [vmem:[%s9928_s29 + $0x84] sm:$0xe] }
 0x161   : > { %9205 = vmatprep.mubr.msk.bf16.mxu1 %vm1497_vm2, %v8322_v22  ;;  %v4456_v22 = vrot.slane %v4454_v30, 4  ;;  %v4252_v14 = vor.u32 %v4251_v25, %v4247_v46  ;;  %v4255_v28 = vshll.u32 %v11960_v15, 16  ;;  %v12003_v47 = vcombine.low %v4176_v48, %v4186_v2 }
 0x162   : > { %v4233_v0 = vrot.slane %v4231_v41, 5  ;;  %v12005_v53 = vcombine.low %v4200_v24, %v4210_v32  ;;  %v4219_v35 = vrot.slane %v4218_v11, 4  ;;  %v4229_v23 = vrot.slane %v4228_v34, 4 }
 0x163   : > { %v4455_v18 = vsel %vm9930_vm4, %v8037_v44, %v4454_v30  ;;  %v4262_v62 = vrot.slane %v4260_v59, 4  ;;  %v4265_v55 = vrot.slane %v4263_v5, 5  ;;  %v4271_v29 = vrot.slane %v4269_v26, 5  ;;  %v12045_v59 = vld [vmem:[%s9928_s29 + $0x1c] sm:$0xf] }
 0x164   : > { %v4275_v7 = vrot.slane %v4273_v12, 4  ;;  %v4458_v20 = vsel %vm9930_vm4, %v4456_v22, %v4457_v9  ;;  %v4243_v15 = vrot.slane %v4242_v50, 4  ;;  %v4253_v48 = vrot.slane %v4252_v14, 4  ;;  %v12042_v9 = vld [vmem:[%s9928_s29 + $0x18] sm:$0xf]  ;;  %13767 = vst [vmem:[#allocation27_spill] sm:$0xff] %v12045_v59 }
 0x165   : > { %9054 = vmatmul.mubr.msk.bf16.gmra.mrb[48].mxu0 %vm1497_vm2, %v11918_v38  ;;  %v4257_v2 = vrot.slane %v4255_v28, 5  ;;  %v4224_v30 = vsel %vm9974_vm6, %v4219_v35, %v11965_v39  ;;  %v8325_v11 = vcombine.low %v4455_v18, %v4458_v20  ;;  %v4266_v41 = vor.u32 %v4265_v55, %v4262_v62  ;;  %13766 = vst [vmem:[#allocation10_spill] sm:$0xff] %v12042_v9  ;;  %v9829_v20 = vld [vmem:[%s9928_s29 + $0x1c] sm:$0xf] }
 0x166   : > { %9057 = vmatprep.mubr.msk.bf16.mxu0 %vm1497_vm2, %v11945_v3  ;;  %v4276_v6 = vor.u32 %v4275_v7, %v4271_v29  ;;  %v4279_v25 = vshll.u32 %v8005_v16, 16  ;;  %v4248_v24 = vsel %vm9974_vm6, %v4243_v15, %v4247_v46  ;;  %v4512_v26 = vshrl.u32 %v12042_v9, 16  ;;  %v9830_v15 = vld [vmem:[%s9928_s29 + $0x18] sm:$0xf] }
 0x167   : > { %v4258_v34 = vsel %vm9974_vm6, %v4253_v48, %v4257_v2  ;;  %v4267_v32 = vrot.slane %v4266_v41, 4  ;;  %v4515_v12 = vshll.u32 %v12042_v9, 16  ;;  %v4521_v14 = vshll.u32 %v12045_v59, 16  ;;  %v9831_v2 = vld [vmem:[%s9928_s29 + $0x28] sm:$0xf] }
 0x168   : > { %9206 = vmatmul.mubr.msk.bf16.gmra.mrb[56].mxu1 %vm1497_vm2, %v8323_v58  ;;  %v4234_v58 = vsel %vm9974_vm6, %v4229_v23, %v4233_v0  ;;  %v12029_v39 = vcombine.low %v4248_v24, %v4258_v34  ;;  %v4277_v44 = vrot.slane %v4276_v6, 4  ;;  %v4281_v22 = vrot.slane %v4279_v25, 5  ;;  %v12064_v0 = vld [vmem:[%s9928_s29 + $0x24] sm:$0xf]  ;;  %v12074_v23 = vld [vmem:[%s9928_s29 + $0x28] sm:$0xf] }
 0x169   : > { %9209 = vmatprep.mubr.msk.bf16.mxu1 %vm1497_vm2, %v8324_v17  ;;  %v12026_v13 = vcombine.low %v4224_v30, %v4234_v58  ;;  %v4272_v16 = vsel %vm9974_vm6, %v4267_v32, %v4271_v29  ;;  %v9827_v29 = vld [vmem:[%s9928_s29 + $0x10] sm:$0xf]  ;;  %v9828_v17 = vld [vmem:[%s9928_s29 + $0xc] sm:$0xf]  ;;  %v4525_v28 = vshrl.u32 %v12045_v59, 16  ;;  %13768 = vst [vmem:[#allocation29_spill] sm:$0xff] %v12064_v0  ;;  %v8161_v48 = vcombine.low %v9830_v15, %v9829_v20 }
 0x16a   : > { %v4282_v46 = vsel %vm9974_vm6, %v4277_v44, %v4281_v22  ;;  %v8160_v50 = vcombine.low %v9828_v17, %v9827_v29  ;;  %v4514_v35 = vrot.slane %v4512_v26, 4  ;;  %13770 = vst [vmem:[#allocation15_spill] sm:$0xff] %v12074_v23  ;;  %v12078_v18 = vrot.slane %v4521_v14, 5  ;;  %v9832_v30 = vld [vmem:[%s9928_s29 + $0x24] sm:$0xf]  ;;  %v9807_v22 = vld [vmem:[%s13500_s1 + $0xa8] sm:$0xff]  }
 0x16b   : > { %v12050_v5 = vcombine.low %v4272_v16, %v4282_v46  ;;  %v4527_v62 = vrot.slane %v4525_v28, 4  ;;  %v4536_v55 = vshrl.u32 %v12064_v0, 16  ;;  %v4539_v7 = vshll.u32 %v12064_v0, 16  ;;  %v12089_v25 = vld [vmem:[%s9928_s29 + $0x30] sm:$0xf] }
 0x16c   : > { %v8162_v58 = vcombine.low %v9832_v30, %v9831_v2  ;;  %v4545_v6 = vshll.u32 %v12074_v23, 16  ;;  %v4549_v44 = vshrl.u32 %v12074_v23, 16  ;;  %v4560_v16 = vshrl.u32 %v12089_v25, 16  ;;  %v8071_v26 = vld [vmem:[%s9928_s29 + $0x2c] sm:$0x1]  ;;  %v12114_v14 = vld [vmem:[%s13500_s1 + $0xb0] sm:$0xff]  }
 0x16d   : > { %9058 = vmatmul.mubr.msk.bf16.gmra.mrb[52].mxu0 %vm1497_vm2, %v12003_v47  ;;  %v4528_v24 = vor.u32 %v4527_v62, %v12078_v18  ;;  %v4538_v34 = vrot.slane %v4536_v55, 4  ;;  %v4541_v32 = vrot.slane %v4539_v7, 5  ;;  %13771 = vst [vmem:[#allocation33_spill] sm:$0xff] %v12114_v14  ;;  %v9833_v28 = vld [vmem:[%s9928_s29 + $0x30] sm:$0xf]  ;;  %v8164_v55 = vcombine.low %v11458_v54, %v11428_v10 }
 0x16e   : > { %9061 = vmatprep.mubr.msk.bf16.mxu0 %vm1497_vm2, %v12005_v53  ;;  %v12106_v29 = vrot.slane %v4545_v6, 5  ;;  %v4551_v17 = vrot.slane %v4549_v44, 4  ;;  %v4562_v62 = vrot.slane %v4560_v16, 4  ;;  %v4555_v20 = vshll.u32 %v8071_v26, 16  ;;  %v12157_v16 = vld [vmem:[%s9928_s29 + $0x44] sm:$0x1] }
 0x16f   : > { %v8094_v0 = vld [vmem:[%s9928_s29 + $0x78] sm:$0xe] }
 0x170   : > { %9210 = vmatmul.mubr.msk.bf16.gmra.mrb[60].mxu1 %vm1497_vm2, %v8325_v11  ;;  %v4552_v30 = vor.u32 %v4551_v17, %v12106_v29 }
 0x171   : > { %9217 = vmatprep.mubr.msk.bf16.mxu1 %vm1497_vm2, %v11447_v8  ;;  %v9796_v8 = vld [vmem:[%s13500_s1 + $0xe8] sm:$0xff]  }
 0x175   : > { %9062 = vmatmul.mubr.msk.bf16.gmra.mrb[56].mxu0 %vm1497_vm2, %v12026_v13 }
 0x176   : > { %9065 = vmatprep.mubr.msk.bf16.mxu0 %vm1497_vm2, %v12029_v39 }
 0x178   : > { %9218 = vmatmul.mubr.msk.bf16.vlgmr.msra.gmra.mrb[32].mxu1 %vm1497_vm2, %v11486_v43  ;;  %v12069_v43 = vld [vmem:[%s13500_s1 + $0xf0] sm:$0xff]  }
 0x179   : > { %9250 = vmatpush3.bf16.msra.mxu1 %v11694_v1  ;;  %9221 = vmatprep.mubr.msk.bf16.mxu1 %vm1497_vm2, %v11520_v31  ;;  %13769 = vst [vmem:[#allocation13_spill] sm:$0xff] %v12069_v43  ;;  %v4517_v1 = vrot.slane %v4515_v12, 5  ;;  %v8070_v31 = vld [vmem:[%s9928_s29 + $0x20] sm:$0x1]  ;;  %v4542_v12 = vor.u32 %v4541_v32, %v4538_v34  ;;  %v8092_v32 = vld [vmem:[%s9928_s29 + $0x60] sm:$0xe] }
 0x17a   : > { %9251 = vmatprep.subr.bf16.mxu1 %v9796_v8  ;;  %v4531_v41 = vshll.u32 %v8070_v31, 16  ;;  %v8072_v31 = vld [vmem:[%s9928_s29 + $0x38] sm:$0x1] }
 0x17b   : > { %v4518_v11 = vor.u32 %v4517_v1, %v4514_v35  ;;  %v9834_v35 = vld [vmem:[%s9928_s29 + $0x34] sm:$0xf]  ;;  %v12129_v2 = vrot.slane %v4542_v12, 4  ;;  %v4579_v54 = vshll.u32 %v8072_v31, 16  ;;  %v8090_v12 = vld [vmem:[%s9928_s29 + $0x48] sm:$0xe] }
 0x17c   : > { %v8163_v1 = vcombine.low %v9833_v28, %v9834_v35  ;;  %v8091_v31 = vld [vmem:[%s9928_s29 + $0x54] sm:$0xe] }
 0x17d   : > { %9066 = vmatmul.mubr.msk.bf16.gmra.mrb[60].mxu0 %vm1497_vm2, %v12050_v5  ;;  %9252 = vmatpush3.bf16.msra.mxu1 %v9796_v8  ;;  %v4519_v46 = vrot.slane %v4518_v11, 4  ;;  %v4533_v8 = vrot.slane %v4531_v41, 5  ;;  %v12173_v17 = vrot.slane %v4579_v54, 5  ;;  %v8093_v41 = vld [vmem:[%s9928_s29 + $0x6c] sm:$0xe] }
 0x17e   : > { %9073 = vmatprep.mubr.msk.bf16.mxu0 %vm1497_vm2, %v8160_v50  ;;  %9285 = vmatprep.subr.bf16.mxu1 %v12069_v43  ;;  %v12109_v50 = vld [vmem:[%s9928_s29 + $0x34] sm:$0xf] }
 0x17f   : > { %v4524_v7 = vsel %vm9974_vm6, %v4519_v46, %v12078_v18  ;;  %v4569_v15 = vshll.u32 %v12109_v50, 16  ;;  %v4573_v10 = vshrl.u32 %v12109_v50, 16  ;;  %v12136_v18 = vld [vmem:[%s9928_s29 + $0x3c] sm:$0xf]  ;;  %v12164_v46 = vrot.slane %v4552_v30, 4 }
 0x180   : > { %9222 = vmatmul.mubr.msk.bf16.gmra.mrb[36].mxu1 %vm1497_vm2, %v11567_v49  ;;  %v4563_v49 = vshll.u32 %v12089_v25, 16  ;;  %v4584_v26 = vshrl.u32 %v12136_v18, 16  ;;  %v4587_v28 = vshll.u32 %v12136_v18, 16 }
 0x181   : > { %9225 = vmatprep.mubr.msk.bf16.mxu1 %vm1497_vm2, %v11616_v60  ;;  %v4529_v60 = vrot.slane %v4528_v24, 4  ;;  %v8089_v24 = vld [vmem:[%s9928_s29 + $0x3c] sm:$0xe]  ;;  %v12151_v44 = vrot.slane %v4569_v15, 5  ;;  %v12187_v15 = vld [vmem:[%s9928_s29 + $0x50] sm:$0x1] }
 0x182   : > { %v8105_v35 = vrot.slane %v8089_v24, 9 }
 0x185   : > { %9074 = vmatmul.mubr.msk.bf16.vlgmr.msra.gmra.mrb[32].mxu0 %vm1497_vm2, %v8161_v48  ;;  %v4534_v48 = vsel %vm9974_vm6, %v4529_v60, %v4533_v8  ;;  %v12166_v8 = vrot.slane %v4573_v10, 4  ;;  %v12170_v60 = vld [vmem:[%s9928_s29 + $0x4c] sm:$0xf]  ;;  %v8106_v10 = vrot.slane %v8090_v12, 9  ;;  %v12203_v12 = vrot.slane %v4587_v28, 5 }
 0x186   : > { %9077 = vmatprep.mubr.msk.bf16.mxu0 %vm1497_vm2, %v8162_v58  ;;  %9106 = vmatpush3.bf16.msra.mxu0 %v11824_v42  ;;  %v4565_v42 = vrot.slane %v4563_v49, 5  ;;  %v13773_v58 = vld [vmem:[#allocation26_spill] sm:$0xff]  ;;  %v12145_v34 = vcombine.low %v4524_v7, %v4534_v48  ;;  %v12183_v7 = vld [vmem:[%s9928_s29 + $0x58] sm:$0xf]  ;;  %v4989_v54 = vrot.slane %v12170_v60, 5 }
 0x187   : > { %9107 = vmatprep.subr.bf16.mxu0 %v9807_v22  ;;  %v4996_v24 = vrot.slane %v12183_v7, 5  ;;  %v12221_v49 = vld [vmem:[%s9928_s29 + $0x64] sm:$0xf] }
 0x188   : > { %9226 = vmatmul.mubr.msk.bf16.gmra.mrb[40].mxu1 %vm1497_vm2, %v11674_v21  ;;  %v13772_v21 = vld [vmem:[#allocation2_spill] sm:$0xff]  ;;  %v4566_v6 = vor.u32 %v4565_v42, %v4562_v62  ;;  %13774 = vst [vmem:[#allocation16_spill] sm:$0xff] %v12145_v34  ;;  %v8108_v42 = vrot.slane %v8092_v32, 9  ;;  %v8109_v32 = vrot.slane %v8093_v41, 9 }
 0x189   : > { %9229 = vmatprep.mubr.msk.bf16.mxu1 %vm1497_vm2, %v11791_v57  ;;  %v8165_v11 = vcombine.low %v13773_v58, %v13772_v21  ;;  %v12147_v57 = vrot.slane %v4555_v20, 5  ;;  %v4985_v20 = vrot.slane %v12157_v16, 5  ;;  %v12196_v21 = vrot.slane %v4584_v26, 4 }
 0x18a   : > { %9108 = vmatpush3.bf16.msra.mxu0 %v9807_v22  ;;  %v12154_v22 = vld [vmem:[%s9928_s29 + $0x40] sm:$0xf]  ;;  %v12178_v62 = vrot.slane %v4566_v6, 4  ;;  %v4992_v58 = vrot.slane %v12187_v15, 5  ;;  %v8107_v6 = vrot.slane %v8091_v31, 9  ;;  %v12217_v26 = vsel %vm9930_vm4, %v8106_v10, %v4989_v54 }
 0x18b   : > { %9141 = vmatprep.subr.bf16.mxu0 %v12114_v14  ;;  %13777 = vst [vmem:[#allocation22_spill] sm:$0xff] %v12217_v26  ;;  %v4991_v31 = vrot.slane %v4989_v54, 4  ;;  %v12235_v10 = vld [vmem:[%s9928_s29 + $0x70] sm:$0xf]  ;;  %v5003_v14 = vrot.slane %v12221_v49, 5 }
 0x18d   : > { %9078 = vmatmul.mubr.msk.bf16.gmra.mrb[36].mxu0 %vm1497_vm2, %v8163_v1  ;;  %v4982_v1 = vrot.slane %v12154_v22, 5  ;;  %v12239_v54 = vsel %vm9930_vm4, %v4991_v31, %v4992_v58  ;;  %v5010_v31 = vrot.slane %v12235_v10, 5 }
 0x18e   : > { %9081 = vmatprep.mubr.msk.bf16.mxu0 %vm1497_vm2, %v8164_v55  ;;  %v12230_v55 = vsel %vm9930_vm4, %v8107_v6, %v4996_v24  ;;  %13779 = vst [vmem:[#allocation8_spill] sm:$0xff] %v12239_v54  ;;  %v13781_v6 = vld [vmem:[#allocation19_spill] sm:$0xff] }
 0x18f   : > { %v12191_v48 = vsel %vm9930_vm4, %v8105_v35, %v4982_v1  ;;  %v4984_v30 = vrot.slane %v4982_v1, 4  ;;  %v12206_v35 = vld [vmem:[%s9928_s29 + $0x48] sm:$0xf]  ;;  %v12209_v1 = vld [vmem:[%s9928_s29 + $0x5c] sm:$0x1]  ;;  %13778 = vst [vmem:[#allocation24_spill] sm:$0xff] %v12230_v55  ;;  %v12271_v41 = vsel %vm9930_vm4, %v8109_v32, %v5010_v31 }
 0x190   : > { %13775 = vst [vmem:[#allocation17_spill] sm:$0xff] %v12191_v48  ;;  %9230 = vmatmul.mubr.msk.bf16.gmra.mrb[44].mxu1 %vm1497_vm2, %v11838_v4  ;;  %13785 = vst [vmem:[#allocation6_spill] sm:$0xff] %v12271_v41  ;;  %v5012_v23 = vrot.slane %v5010_v31, 4  ;;  %v12280_v55 = vld [vmem:[%s9928_s29 + $0x88] sm:$0xf]  ;;  %v4617_v32 = vshll.u32 %v12170_v60, 16 }
 0x191   : > { %9233 = vmatprep.mubr.msk.bf16.mxu1 %vm1497_vm2, %v11870_v51  ;;  %v12213_v4 = vsel %vm9930_vm4, %v4984_v30, %v4985_v20  ;;  %v12224_v51 = vld [vmem:[%s9928_s29 + $0x68] sm:$0x1]  ;;  %v4998_v20 = vrot.slane %v4996_v24, 4  ;;  %v4999_v30 = vrot.slane %v12209_v1, 5  ;;  %v12248_v24 = vld [vmem:[%s9928_s29 + $0x74] sm:$0x1] }
 0x192   : > { %13776 = vst [vmem:[#allocation18_spill] sm:$0xff] %v12213_v4  ;;  %v5006_v28 = vrot.slane %v12224_v51, 5  ;;  %v13780_v4 = vld [vmem:[#allocation31_spill] sm:$0xff]  ;;  %13786 = vst [vmem:[#allocation4_spill] sm:$0xff] %v12280_v55 }
 0x193   : > { %v13782_v48 = vcombine.low %v13780_v4, %v13781_v6  ;;  %v12254_v58 = vsel %vm9930_vm4, %v4998_v20, %v4999_v30  ;;  %v5005_v4 = vrot.slane %v5003_v14, 4  ;;  %v5013_v6 = vrot.slane %v12248_v24, 5  ;;  %v12267_v30 = vld [vmem:[%s9928_s29 + $0x7c] sm:$0xf]  ;;  %v12291_v31 = vld [vmem:[%s9928_s29 + $0x8c] sm:$0x1] }
 0x194   : > { %13783 = vst [vmem:[#allocation9_spill] sm:$0xff] %v12254_v58  ;;  %v4608_v20 = vshrl.u32 %v12206_v35, 16  ;;  %v4611_v58 = vshll.u32 %v12206_v35, 16  ;;  %v5017_v54 = vrot.slane %v12267_v30, 5  ;;  %13788 = vst [vmem:[#allocation3_spill] sm:$0xff] %v12291_v31 }
 0x195   : > { %9082 = vmatmul.mubr.msk.bf16.gmra.mrb[40].mxu0 %vm1497_vm2, %v8165_v11  ;;  %v4603_v11 = vshll.u32 %v12157_v16, 16  ;;  %v12284_v16 = vsel %vm9930_vm4, %v5005_v4, %v5006_v28  ;;  %v12297_v26 = vsel %vm9930_vm4, %v5012_v23, %v5013_v6  ;;  %v5024_v28 = vrot.slane %v12280_v55, 5  ;;  %v13791_v55 = vld [vmem:[#allocation20_spill] sm:$0xff] }
 0x196   : > { %9085 = vmatprep.mubr.msk.bf16.mxu0 %vm1497_vm2, %v13782_v48  ;;  %v12261_v48 = vsel %vm9930_vm4, %v8108_v42, %v5003_v14  ;;  %v4576_v42 = vor.u32 %v12166_v8, %v12151_v44  ;;  %v12277_v14 = vld [vmem:[%s9928_s29 + $0x80] sm:$0x1]  ;;  %13787 = vst [vmem:[#allocation14_spill] sm:$0xff] %v12284_v16  ;;  %13789 = vst [vmem:[#allocation5_spill] sm:$0xff] %v12297_v26  ;;  %v8110_v4 = vrot.slane %v8094_v0, 9  ;;  %v5019_v59 = vrot.slane %v5017_v54, 4 }
 0x197   : > { %13784 = vst [vmem:[#allocation11_spill] sm:$0xff] %v12261_v48  ;;  %v5020_v9 = vrot.slane %v12277_v14, 5  ;;  %v4621_v8 = vshrl.u32 %v12170_v60, 16  ;;  %v8111_v16 = vrot.slane %v8095_v63, 9  ;;  %v5026_v23 = vrot.slane %v5024_v28, 4  ;;  %v13790_v48 = vld [vmem:[#allocation28_spill] sm:$0xff] }
 0x198   : > { %9234 = vmatmul.mubr.msk.bf16.gmra.mrb[48].mxu1 %vm1497_vm2, %v11918_v38  ;;  %v5027_v6 = vrot.slane %v12291_v31, 5  ;;  %v13792_v43 = vcombine.low %v13790_v48, %v13791_v55  ;;  %v13794_v0 = vshrl.u32 %v12154_v22, 16  ;;  %v12321_v41 = vsel %vm9930_vm4, %v8110_v4, %v5017_v54  ;;  %v13797_v31 = vld [vmem:[#allocation30_spill] sm:$0xff]  ;;  %v13798_v55 = vld [vmem:[#allocation32_spill] sm:$0xff] }
 0x199   : > { %9237 = vmatprep.mubr.msk.bf16.mxu1 %vm1497_vm2, %v11945_v3  ;;  %v13793_v3 = vshll.u32 %v12154_v22, 16  ;;  %13795 = vst [vmem:[#allocation12_spill] sm:$0xff] %v12321_v41  ;;  %v12325_v63 = vsel %vm9930_vm4, %v5019_v59, %v5020_v9  ;;  %v13799_v48 = vcombine.low %v13797_v31, %v13798_v55  ;;  %v12340_v54 = vsel %vm9930_vm4, %v8111_v16, %v5024_v28 }
 0x19a   : > { %v4599_v26 = vrot.slane %v13794_v0, 4  ;;  %13796 = vst [vmem:[#allocation2_spill] sm:$0xff] %v12325_v63  ;;  %13800 = vst [vmem:[#allocation26_spill] sm:$0xff] %v12340_v54  ;;  %v12344_v9 = vsel %vm9930_vm4, %v5026_v23, %v5027_v6  ;;  %v4558_v59 = vsel %vm9974_vm6, %v12164_v46, %v12147_v57  ;;  %v4613_v31 = vrot.slane %v4611_v58, 5  ;;  %v12358_v6 = vld [vmem:[%s9928_s29 + $0x94] sm:$0xf] }
 0x19b   : > { %v12315_v38 = vrot.slane %v13793_v3, 5  ;;  %v12334_v3 = vld [vmem:[%s9928_s29 + $0x54] sm:$0xf]  ;;  %13801 = vst [vmem:[#allocation31_spill] sm:$0xff] %v12344_v9  ;;  %v12352_v55 = vrot.slane %v4603_v11, 5  ;;  %v12354_v16 = vrot.slane %v4617_v32, 5 }
 0x19c   : > { %v4623_v28 = vrot.slane %v4621_v8, 4  ;;  %v4627_v23 = vshll.u32 %v12187_v15, 16  ;;  %v4632_v46 = vshrl.u32 %v12334_v3, 16  ;;  %v12365_v58 = vld [vmem:[%s9928_s29 + $0x98] sm:$0x1]  ;;  %v4572_v15 = vsel %vm9974_vm6, %v12178_v62, %v12151_v44  ;;  %v13803_v63 = vld [vmem:[#allocation34_spill] sm:$0xff] }
 0x19d   : > { %9086 = vmatmul.mubr.msk.bf16.gmra.mrb[44].mxu0 %vm1497_vm2, %v13792_v43  ;;  %v12331_v43 = vrot.slane %v4576_v42, 4  ;;  %v4610_v42 = vrot.slane %v4608_v20, 4  ;;  %v4600_v57 = vor.u32 %v4599_v26, %v12315_v38  ;;  %v12368_v11 = vld [vmem:[%s9928_s29 + $0xa0] sm:$0xf]  ;;  %v5031_v20 = vrot.slane %v12358_v6, 5 }
 0x19e   : > { %9089 = vmatprep.mubr.msk.bf16.mxu0 %vm1497_vm2, %v13799_v48  ;;  %v4590_v48 = vor.u32 %v12203_v12, %v12196_v21  ;;  %13802 = vst [vmem:[#allocation19_spill] sm:$0xff] %v12368_v11  ;;  %v4635_v12 = vshll.u32 %v12334_v3, 16  ;;  %v12383_v26 = vld [vmem:[%s9928_s29 + $0xa4] sm:$0x1]  ;;  %v8096_v32 = vld [vmem:[%s9928_s29 + $0x90] sm:$0xe]  ;;  %v4624_v9 = vor.u32 %v4623_v28, %v12354_v16  ;;  %v13804_v41 = vcombine.low %v13803_v63, %v11644_v37 }
 0x19f   : > { %v4582_v21 = vsel %vm9974_vm6, %v12331_v43, %v12173_v17  ;;  %v5038_v8 = vrot.slane %v12368_v11, 5  ;;  %v8112_v4 = vrot.slane %v8096_v32, 9  ;;  %v5033_v0 = vrot.slane %v5031_v20, 4  ;;  %v8097_v62 = vld [vmem:[%s9928_s29 + $0x9c] sm:$0xe]  ;;  %v13807_v28 = vld [vmem:[#allocation35_spill] sm:$0xff] }
 0x1a0   : > { %9238 = vmatmul.mubr.msk.bf16.gmra.mrb[52].mxu1 %vm1497_vm2, %v12003_v47  ;;  %v4614_v47 = vor.u32 %v4613_v31, %v4610_v42  ;;  %v5034_v44 = vrot.slane %v12365_v58, 5  ;;  %v8113_v17 = vrot.slane %v8097_v62, 9  ;;  %v5041_v54 = vrot.slane %v12383_v26, 5  ;;  %v12442_v62 = vld [vmem:[%s9928_s29 + $0x6c] sm:$0xf] }
 0x1a1   : > { %9241 = vmatprep.mubr.msk.bf16.mxu1 %vm1497_vm2, %v12005_v53  ;;  %v5040_v43 = vrot.slane %v5038_v8, 4  ;;  %v12397_v11 = vrot.slane %v4590_v48, 4  ;;  %v12399_v53 = vrot.slane %v4600_v57, 4  ;;  %v12403_v42 = vsel %vm9930_vm4, %v8112_v4, %v5031_v20 }
 0x1a2   : > { %13805 = vst [vmem:[#allocation28_spill] sm:$0xff] %v12403_v42  ;;  %v12407_v31 = vsel %vm9930_vm4, %v5033_v0, %v5034_v44  ;;  %v13808_v32 = vcombine.low %v13807_v28, %v11711_v52  ;;  %v12413_v37 = vrot.slane %v4627_v23, 5  ;;  %v12422_v4 = vsel %vm9930_vm4, %v8113_v17, %v5038_v8  ;;  %v12461_v28 = vld [vmem:[%s9928_s29 + $0xb8] sm:$0xf] }
 0x1a3   : > { %13806 = vst [vmem:[#allocation20_spill] sm:$0xff] %v12407_v31  ;;  %13809 = vst [vmem:[#allocation30_spill] sm:$0xff] %v12422_v4  ;;  %v12426_v0 = vsel %vm9930_vm4, %v5040_v43, %v5041_v54  ;;  %v12428_v52 = vrot.slane %v4632_v46, 4  ;;  %v12430_v48 = vrot.slane %v4635_v12, 5  ;;  %v4641_v23 = vshll.u32 %v12183_v7, 16 }
 0x1a4   : > { %13810 = vst [vmem:[#allocation32_spill] sm:$0xff] %v12426_v0  ;;  %v12435_v20 = vrot.slane %v4614_v47, 4  ;;  %v12437_v44 = vrot.slane %v4624_v9, 4  ;;  %v4645_v8 = vshrl.u32 %v12183_v7, 16  ;;  %v12445_v46 = vld [vmem:[%s9928_s29 + $0xac] sm:$0xf]  ;;  %v13811_v12 = vsel %vm9974_vm6, %v12129_v2, %v12106_v29 }
 0x1a5   : > { %9090 = vmatmul.mubr.msk.bf16.gmra.mrb[48].mxu0 %vm1497_vm2, %v13804_v41  ;;  %v12416_v41 = vld [vmem:[%s9928_s29 + $0x60] sm:$0xf]  ;;  %v12452_v17 = vcombine.low %v13811_v12, %v4558_v59  ;;  %v12458_v43 = vld [vmem:[%s9928_s29 + $0xb0] sm:$0x1]  ;;  %13812 = vst [vmem:[#allocation34_spill] sm:$0xff] %v12461_v28  ;;  %v12466_v57 = vcombine.low %v4572_v15, %v4582_v21  ;;  %v5052_v63 = vrot.slane %v12461_v28, 5  ;;  %v13814_v42 = vcombine.low %v11720_v56, %v11714_v19 }
 0x1a6   : > { %9093 = vmatprep.mubr.msk.bf16.mxu0 %vm1497_vm2, %v13808_v32  ;;  %v4656_v47 = vshrl.u32 %v12416_v41, 16  ;;  %v5045_v32 = vrot.slane %v12445_v46, 5  ;;  %v4659_v2 = vshll.u32 %v12416_v41, 16  ;;  %v12474_v59 = vld [vmem:[%s9928_s29 + $0xbc] sm:$0x1]  ;;  %v4665_v9 = vshll.u32 %v12221_v49, 16 }
 0x1a7   : > { %13813 = vst [vmem:[#allocation35_spill] sm:$0xff] %v12474_v59  ;;  %v8098_v12 = vld [vmem:[%s9928_s29 + $0xa8] sm:$0xe]  ;;  %v5048_v21 = vrot.slane %v12458_v43, 5  ;;  %v8099_v54 = vld [vmem:[%s9928_s29 + $0xb4] sm:$0xe] }
 0x1a8   : > { %9242 = vmatmul.mubr.msk.bf16.gmra.mrb[56].mxu1 %vm1497_vm2, %v12026_v13  ;;  %v8114_v13 = vrot.slane %v8098_v12, 9  ;;  %v5047_v15 = vrot.slane %v5045_v32, 4  ;;  %v4669_v0 = vshrl.u32 %v12221_v49, 16  ;;  %v8115_v29 = vrot.slane %v8099_v54, 9 }
 0x1a9   : > { %9245 = vmatprep.mubr.msk.bf16.mxu1 %vm1497_vm2, %v12029_v39  ;;  %v5054_v4 = vrot.slane %v5052_v63, 4  ;;  %v5055_v31 = vrot.slane %v12474_v59, 5  ;;  %v12489_v28 = vrot.slane %v4641_v23, 5  ;;  %v4680_v39 = vshrl.u32 %v12442_v62, 16 }
 0x1aa   : > { %v12494_v12 = vsel %vm9930_vm4, %v8114_v13, %v5045_v32  ;;  %v12498_v54 = vsel %vm9930_vm4, %v5047_v15, %v5048_v21  ;;  %v13817_v59 = vcombine.low %v11736_v40, %v11726_v27  ;;  %v4683_v19 = vshll.u32 %v12442_v62, 16 }
 0x1ab   : > { %13815 = vst [vmem:[#allocation36_spill] sm:$0xff] %v12494_v12  ;;  %13816 = vst [vmem:[#allocation37_spill] sm:$0xff] %v12498_v54  ;;  %v12513_v23 = vsel %vm9930_vm4, %v5054_v4, %v5055_v31  ;;  %v12515_v32 = vrot.slane %v4645_v8, 4  ;;  %v12517_v27 = vrot.slane %v4656_v47, 4  ;;  %v4689_v40 = vshll.u32 %v12235_v10, 16 }
 0x1ac   : > { %13819 = vst [vmem:[#allocation39_spill] sm:$0xff] %v12513_v23  ;;  %v4661_v13 = vrot.slane %v4659_v2, 5  ;;  %v12522_v15 = vrot.slane %v4665_v9, 5  ;;  %v12528_v31 = vld [vmem:[%s9928_s29 + $0x78] sm:$0xf]  ;;  %v4606_v8 = vsel %vm9974_vm6, %v12399_v53, %v12352_v55  ;;  %v4638_v47 = vor.u32 %v12430_v48, %v12428_v52 }
 0x1ad   : > { %9094 = vmatmul.mubr.msk.bf16.gmra.mrb[52].mxu0 %vm1497_vm2, %v13814_v42  ;;  %v12509_v42 = vsel %vm9930_vm4, %v8115_v29, %v5052_v63  ;;  %v12524_v63 = vrot.slane %v4669_v0, 4  ;;  %v4693_v29 = vshrl.u32 %v12235_v10, 16  ;;  %v12531_v4 = vld [vmem:[%s9928_s29 + $0xc4] sm:$0xf]  ;;  %v4682_v2 = vrot.slane %v4680_v39, 4 }
 0x1ae   : > { %9097 = vmatprep.mubr.msk.bf16.mxu0 %vm1497_vm2, %v13817_v59  ;;  %13818 = vst [vmem:[#allocation38_spill] sm:$0xff] %v12509_v42  ;;  %v12540_v9 = vld [vmem:[%s9928_s29 + $0xc8] sm:$0x1]  ;;  %v12543_v0 = vld [vmem:[%s9928_s29 + $0xd0] sm:$0xf]  ;;  %v5059_v21 = vrot.slane %v12531_v4, 5  ;;  %v4620_v59 = vsel %vm9974_vm6, %v12435_v20, %v12354_v16  ;;  %v4630_v55 = vsel %vm9974_vm6, %v12437_v44, %v12413_v37  ;;  %v13821_v44 = vcombine.low %v11739_v36, %v11729_v33 }
 0x1af   : > { %v4685_v53 = vrot.slane %v4683_v19, 5  ;;  %v12557_v52 = vld [vmem:[%s9928_s29 + $0xd4] sm:$0x1]  ;;  %v8100_v48 = vld [vmem:[%s9928_s29 + $0xc0] sm:$0xe]  ;;  %v5066_v39 = vrot.slane %v12543_v0, 5  ;;  %v4648_v33 = vor.u32 %v12515_v32, %v12489_v28 }
 0x1b0   : > { %9246 = vmatmul.mubr.msk.bf16.gmra.mrb[60].mxu1 %vm1497_vm2, %v12050_v5  ;;  %13820 = vst [vmem:[#allocation40_spill] sm:$0xff] %v12557_v52  ;;  %v12563_v5 = vrot.slane %v4689_v40, 5  ;;  %v8116_v56 = vrot.slane %v8100_v48, 9  ;;  %v5061_v23 = vrot.slane %v5059_v21, 4  ;;  %v5062_v16 = vrot.slane %v12540_v9, 5  ;;  %v13833_v36 = vld [vmem:[#allocation25_spill] sm:$0xff] }
 0x1b1   : > { %9253 = vmatprep.mubr.msk.bf16.mxu1 %vm1497_vm2, %v12145_v34  ;;  %v8101_v20 = vld [vmem:[%s9928_s29 + $0xcc] sm:$0xe]  ;;  %v4695_v42 = vrot.slane %v4693_v29, 4  ;;  %v5068_v12 = vrot.slane %v5066_v39, 4  ;;  %v5069_v37 = vrot.slane %v12557_v52, 5  ;;  %v4704_v19 = vshrl.u32 %v12528_v31, 16 }
 0x1b2   : > { %v8117_v54 = vrot.slane %v8101_v20, 9  ;;  %v4707_v40 = vshll.u32 %v12528_v31, 16  ;;  %v12576_v48 = vsel %vm9930_vm4, %v8116_v56, %v5059_v21  ;;  %v12580_v29 = vsel %vm9930_vm4, %v5061_v23, %v5062_v16  ;;  %v13824_v20 = vld [vmem:[#allocation23_spill] sm:$0xff]  ;;  %v13825_v34 = vld [vmem:[#allocation21_spill] sm:$0xff] }
 0x1b3   : > { %13822 = vst [vmem:[#allocation41_spill] sm:$0xff] %v12576_v48  ;;  %13823 = vst [vmem:[#allocation42_spill] sm:$0xff] %v12580_v29  ;;  %v13826_v52 = vcombine.low %v13824_v20, %v13825_v34  ;;  %v12596_v56 = vsel %vm9930_vm4, %v5068_v12, %v5069_v37  ;;  %v4662_v23 = vor.u32 %v4661_v13, %v12517_v27  ;;  %v4713_v34 = vshll.u32 %v12267_v30, 16  ;;  %v9814_v12 = vld [vmem:[%s13500_s1 + $0xf8] sm:$0xff]  }
 0x1b4   : > { %13828 = vst [vmem:[#allocation21_spill] sm:$0xff] %v12596_v56  ;;  %v4717_v21 = vshrl.u32 %v12267_v30, 16  ;;  %v4672_v16 = vor.u32 %v12524_v63, %v12522_v15  ;;  %v4686_v27 = vor.u32 %v4685_v53, %v4682_v2  ;;  %v4696_v13 = vor.u32 %v4695_v42, %v12563_v5  ;;  %v13831_v53 = vld [vmem:[#allocation13_spill] sm:$0xff] }
 0x1b5   : > { %9098 = vmatmul.mubr.msk.bf16.gmra.mrb[56].mxu0 %vm1497_vm2, %v13821_v44  ;;  %v12592_v44 = vsel %vm9930_vm4, %v8117_v54, %v5066_v39  ;;  %v4675_v54 = vshll.u32 %v12224_v51, 16  ;;  %v4699_v39 = vshll.u32 %v12248_v24, 16  ;;  %v4706_v37 = vrot.slane %v4704_v19, 4  ;;  %v12644_v24 = vld [vmem:[%s9928_s29 + $0x90] sm:$0xf] }
 0x1b6   : > { %9101 = vmatprep.mubr.msk.bf16.mxu0 %vm1497_vm2, %v13826_v52  ;;  %13827 = vst [vmem:[#allocation23_spill] sm:$0xff] %v12592_v44  ;;  %v4639_v52 = vrot.slane %v4638_v47, 4  ;;  %v4709_v20 = vrot.slane %v4707_v40, 5  ;;  %v13829_v51 = vsel %vm9974_vm6, %v12397_v11, %v12315_v38  ;;  %v13830_v47 = vshll.u32 %v12209_v1, 16 }
 0x1b7   : > { %v12618_v63 = vcombine.low %v13829_v51, %v4606_v8  ;;  %v4649_v19 = vrot.slane %v4648_v33, 4  ;;  %v4663_v40 = vrot.slane %v4662_v23, 4  ;;  %v12629_v38 = vrot.slane %v4713_v34, 5  ;;  %v12632_v8 = vld [vmem:[%s9928_s29 + $0x84] sm:$0xf] }
 0x1b8   : > { %9254 = vmatmul.mubr.msk.bf16.vlgmr.msra.gmra.mrb[32].mxu1 %vm1497_vm2, %v12452_v17  ;;  %v4653_v2 = vrot.slane %v13830_v47, 5  ;;  %v4719_v11 = vrot.slane %v4717_v21, 4  ;;  %v12634_v51 = vcombine.low %v4620_v59, %v4630_v55  ;;  %v4644_v1 = vsel %vm9974_vm6, %v4639_v52, %v12489_v28  ;;  %v13835_v59 = vld [vmem:[#allocation10_spill] sm:$0xff]  ;;  %v13836_v55 = vld [vmem:[#allocation27_spill] sm:$0xff] }
 0x1b9   : > { %9286 = vmatpush3.bf16.msra.mxu1 %v13831_v53  ;;  %9257 = vmatprep.mubr.msk.bf16.mxu1 %vm1497_vm2, %v12466_v57  ;;  %v4673_v47 = vrot.slane %v4672_v16, 4  ;;  %v4677_v32 = vrot.slane %v4675_v54, 5  ;;  %v13832_v53 = vld [vmem:[#allocation7_spill] sm:$0xff]  ;;  %v4687_v33 = vrot.slane %v4686_v27, 4  ;;  %v4697_v23 = vrot.slane %v4696_v13, 4  ;;  %v13838_v16 = vld [vmem:[#allocation4_spill] sm:$0xff] }
 0x1ba   : > { %9287 = vmatprep.subr.bf16.mxu1 %v9814_v12  ;;  %v13834_v42 = vcombine.low %v13832_v53, %v13833_v36  ;;  %v4701_v34 = vrot.slane %v4699_v39, 5  ;;  %v4710_v21 = vor.u32 %v4709_v20, %v4706_v37  ;;  %v13837_v56 = vcombine.low %v13835_v59, %v13836_v55 }
 0x1bb   : > { %v4728_v28 = vshrl.u32 %v12632_v8, 16  ;;  %v4731_v52 = vshll.u32 %v12632_v8, 16  ;;  %v4737_v54 = vshll.u32 %v13838_v16, 16  ;;  %v4741_v36 = vshrl.u32 %v13838_v16, 16 }
 0x1bc   : > { %v4654_v27 = vsel %vm9974_vm6, %v4649_v19, %v4653_v2  ;;  %v4668_v39 = vsel %vm9974_vm6, %v4663_v40, %v12522_v15  ;;  %v4720_v13 = vor.u32 %v4719_v11, %v12629_v38  ;;  %v4723_v37 = vshll.u32 %v12277_v14, 16 }
 0x1bd   : > { %9102 = vmatmul.mubr.msk.bf16.gmra.mrb[60].mxu0 %vm1497_vm2, %v13834_v42  ;;  %9288 = vmatpush3.bf16.msra.mxu1 %v9814_v12  ;;  %v4755_v20 = vshll.u32 %v12644_v24, 16  ;;  %v4761_v42 = vshll.u32 %v12358_v6, 16  ;;  %v4765_v53 = vshrl.u32 %v12358_v6, 16  ;;  %v4678_v2 = vsel %vm9974_vm6, %v4673_v47, %v4677_v32 }
 0x1be   : > { %9109 = vmatprep.mubr.msk.bf16.mxu0 %vm1497_vm2, %v13837_v56  ;;  %v4752_v56 = vshrl.u32 %v12644_v24, 16  ;;  %v4692_v15 = vsel %vm9974_vm6, %v4687_v33, %v12563_v5  ;;  %v4702_v19 = vsel %vm9974_vm6, %v4697_v23, %v4701_v34  ;;  %v4711_v14 = vrot.slane %v4710_v21, 4  ;;  %v9816_v23 = vld [vmem:[%s13500_s1 + $0xb8] sm:$0xff]  }
 0x1bf   : > { %v4730_v12 = vrot.slane %v4728_v28, 4  ;;  %v4733_v40 = vrot.slane %v4731_v52, 5  ;;  %v12674_v11 = vrot.slane %v4737_v54, 5  ;;  %v4743_v59 = vrot.slane %v4741_v36, 4  ;;  %v12688_v52 = vld [vmem:[%s9928_s29 + $0x9c] sm:$0xf] }
 0x1c0   : > { %9258 = vmatmul.mubr.msk.bf16.gmra.mrb[36].mxu1 %vm1497_vm2, %v12618_v63  ;;  %v12678_v32 = vcombine.low %v4644_v1, %v4654_v27  ;;  %v4721_v47 = vrot.slane %v4720_v13, 4  ;;  %v4725_v33 = vrot.slane %v4723_v37, 5  ;;  %v4754_v34 = vrot.slane %v4752_v56, 4  ;;  %v13839_v54 = vld [vmem:[#allocation29_spill] sm:$0xff]  ;;  %v13840_v1 = vld [vmem:[#allocation15_spill] sm:$0xff] }
 0x1c1   : > { %9261 = vmatprep.mubr.msk.bf16.mxu1 %vm1497_vm2, %v12634_v51  ;;  %v4757_v21 = vrot.slane %v4755_v20, 5  ;;  %v12685_v55 = vrot.slane %v4761_v42, 5  ;;  %v4767_v28 = vrot.slane %v4765_v53, 4  ;;  %v13841_v36 = vcombine.low %v13839_v54, %v13840_v1  ;;  %v13844_v54 = vld [vmem:[#allocation33_spill] sm:$0xff] }
 0x1c2   : > { %v12694_v27 = vcombine.low %v4668_v39, %v4678_v2  ;;  %v12696_v13 = vcombine.low %v4692_v15, %v4702_v19  ;;  %v13842_v20 = vcombine.low %v12089_v25, %v12109_v50  ;;  %v4716_v42 = vsel %vm9974_vm6, %v4711_v14, %v12629_v38  ;;  %v13843_v2 = vld [vmem:[#allocation3_spill] sm:$0xff] }
 0x1c3   : > { %v4734_v53 = vor.u32 %v4733_v40, %v4730_v12  ;;  %v4744_v39 = vor.u32 %v4743_v59, %v12674_v11  ;;  %v4747_v15 = vshll.u32 %v13843_v2, 16  ;;  %v12712_v19 = vld [vmem:[%s9928_s29 + $0xa8] sm:$0xf]  ;;  %v4776_v1 = vshrl.u32 %v12688_v52, 16 }
 0x1c4   : > { %v13845_v25 = vld [vmem:[#allocation19_spill] sm:$0xff]  ;;  %v4726_v38 = vsel %vm9974_vm6, %v4721_v47, %v4725_v33  ;;  %v4758_v14 = vor.u32 %v4757_v21, %v4754_v34  ;;  %v4768_v12 = vor.u32 %v4767_v28, %v12685_v55  ;;  %v4771_v40 = vshll.u32 %v12365_v58, 16  ;;  %v12740_v34 = vld [vmem:[%s13501_s2] ss:$0 sm:$0xff]  ;;  %v12755_v58 = vld [vmem:[%s9928_s29 + $0xb4] sm:$0xf] }
 0x1c5   : > { %9110 = vmatmul.mubr.msk.bf16.vlgmr.msra.gmra.mrb[32].mxu0 %vm1497_vm2, %v13841_v36  ;;  %v4779_v36 = vshll.u32 %v12688_v52, 16  ;;  %v4785_v50 = vshll.u32 %v13845_v25, 16  ;;  %v4800_v59 = vshrl.u32 %v12712_v19, 16  ;;  %v4803_v2 = vshll.u32 %v12712_v19, 16 }
 0x1c6   : > { %9113 = vmatprep.mubr.msk.bf16.mxu0 %vm1497_vm2, %v13842_v20  ;;  %9142 = vmatpush3.bf16.msra.mxu0 %v13844_v54  ;;  %v4789_v20 = vshrl.u32 %v13845_v25, 16  ;;  %v4809_v54 = vshll.u32 %v12445_v46, 16  ;;  %v4813_v56 = vshrl.u32 %v12445_v46, 16  ;;  %v12729_v37 = vrot.slane %v4734_v53, 4 }
 0x1c7   : > { %9143 = vmatprep.subr.bf16.mxu0 %v9816_v23  ;;  %v12731_v47 = vrot.slane %v4744_v39, 4  ;;  %v12733_v33 = vrot.slane %v4747_v15, 5  ;;  %v4778_v21 = vrot.slane %v4776_v1, 4  ;;  %v4781_v28 = vrot.slane %v4779_v36, 5 }
 0x1c8   : > { %9262 = vmatmul.mubr.msk.bf16.gmra.mrb[40].mxu1 %vm1497_vm2, %v12678_v32  ;;  %v12744_v53 = vrot.slane %v4785_v50, 5  ;;  %v4791_v39 = vrot.slane %v4789_v20, 4  ;;  %v12746_v5 = vcombine.low %v4716_v42, %v4726_v38  ;;  %v12748_v15 = vrot.slane %v4758_v14, 4 }
 0x1c9   : > { %9265 = vmatprep.mubr.msk.bf16.mxu1 %vm1497_vm2, %v12694_v27  ;;  %v12750_v44 = vrot.slane %v4768_v12, 4  ;;  %v13846_v29 = vcombine.low %v12136_v18, %v12154_v22  ;;  %v4802_v36 = vrot.slane %v4800_v59, 4  ;;  %v4805_v50 = vrot.slane %v4803_v2, 5  ;;  %v12781_v2 = vld [vmem:[%s9928_s29 + $0xc0] sm:$0xf] }
 0x1ca   : > { %9144 = vmatpush3.bf16.msra.mxu0 %v9816_v23  ;;  %v12752_v23 = vrot.slane %v4771_v40, 5  ;;  %v12761_v20 = vrot.slane %v4809_v54, 5  ;;  %v4815_v42 = vrot.slane %v4813_v56, 4  ;;  %v13847_v14 = vcombine.low %v12206_v35, %v12170_v60 }
 0x1cb   : > { %v9003_v1 = vpop.f32.mrb[0].mxu1  ;;  %v4740_v18 = vsel %vm9974_vm6, %v12729_v37, %v12674_v11  ;;  %v4750_v22 = vsel %vm9974_vm6, %v12731_v47, %v12733_v33  ;;  %v4782_v59 = vor.u32 %v4781_v28, %v4778_v21  ;;  %v4792_v60 = vor.u32 %v4791_v39, %v12744_v53  ;;  %v13848_v21 = vld [vmem:[#allocation34_spill] sm:$0xff] }
 0x1cc   : > { %v3660_v38 = vadd.f32 %v9003_v1, %v12740_v34  ;;  %v3499_v12 = vpop.f32.mrb[1].mxu1  ;;  %v4819_v35 = vshll.u32 %v12458_v43, 16  ;;  %v4764_v37 = vsel %vm9974_vm6, %v12748_v15, %v12685_v55  ;;  %v4824_v54 = vshrl.u32 %v12755_v58, 16 }
 0x1cd   : > { %9114 = vmatmul.mubr.msk.bf16.gmra.mrb[36].mxu0 %vm1497_vm2, %v13846_v29  ;;  %v4795_v29 = vshll.u32 %v12383_v26, 16  ;;  %v3658_v56 = vadd.f32 %v12740_v34, %v3499_v12  ;;  %v9004_v40 = vpop.f32.mrb[2].mxu1  ;;  %v4774_v26 = vsel %vm9974_vm6, %v12750_v44, %v12752_v23  ;;  %v4827_v43 = vshll.u32 %v12755_v58, 16 }
 0x1ce   : > { %9117 = vmatprep.mubr.msk.bf16.mxu0 %vm1497_vm2, %v13847_v14  ;;  %3726 = vrot.lane.b32.xlu1 %v3660_v38, %s9866_s19  ;;  %v3502_v11 = vpop.f32.mrb[3].mxu1  ;;  %v4806_v47 = vor.u32 %v4805_v50, %v4802_v36  ;;  %v4816_v33 = vor.u32 %v4815_v42, %v12761_v20  ;;  %v4833_v28 = vshll.u32 %v13848_v21, 16  ;;  %v4837_v39 = vshrl.u32 %v13848_v21, 16 }
 0x1cf   : > { %3722 = vrot.lane.b32.xlu0 %v3658_v56, %s9866_s19  ;;  %v3661_v55 = vadd.f32 %v9004_v40, %v12740_v34  ;;  %v12801_v44 = vrot.slane %v4795_v29, 5  ;;  %v4848_v15 = vshrl.u32 %v12781_v2, 16  ;;  %v4851_v23 = vshll.u32 %v12781_v2, 16 }
 0x1d0   : > { %9266 = vmatmul.mubr.msk.bf16.gmra.mrb[44].mxu1 %vm1497_vm2, %v12696_v13  ;;  %v3659_v1 = vadd.f32 %v12740_v34, %v3502_v11  ;;  %v12808_v36 = vrot.slane %v4782_v59, 4  ;;  %v12810_v50 = vrot.slane %v4792_v60, 4  ;;  %v12812_v42 = vrot.slane %v4819_v35, 5 }
 0x1d1   : > { %9269 = vmatprep.mubr.msk.bf16.mxu1 %vm1497_vm2, %v12746_v5  ;;  %v4826_v38 = vrot.slane %v4824_v54, 4  ;;  %v4829_v14 = vrot.slane %v4827_v43, 5  ;;  %v4857_v12 = vshll.u32 %v12531_v4, 16  ;;  %v4861_v29 = vshrl.u32 %v12531_v4, 16 }
 0x1d2   : > { %3728 = vrot.lane.b32.xlu1 %v3661_v55, %s9866_s19  ;;  %v13849_v56 = vcombine.low %v12334_v3, %v12183_v7  ;;  %v4807_v59 = vrot.slane %v4806_v47, 4  ;;  %v4817_v60 = vrot.slane %v4816_v33, 4  ;;  %v12823_v35 = vrot.slane %v4833_v28, 5  ;;  %v12844_v28 = vld [vmem:[%s9928_s29 + $0xcc] sm:$0xf] }
 0x1d3   : > { %3724 = vrot.lane.b32.xlu0 %v3659_v1, %s9866_s19  ;;  %v9007_v40 = vpop.f32.mrb[4].mxu1  ;;  %v4839_v11 = vrot.slane %v4837_v39, 4  ;;  %v13850_v43 = vcombine.low %v12416_v41, %v12221_v49  ;;  %v12830_v3 = vcombine.low %v4740_v18, %v4750_v22  ;;  %v4850_v55 = vrot.slane %v4848_v15, 4  ;;  %v13851_v41 = vld [vmem:[#allocation35_spill] sm:$0xff] }
 0x1d4   : > { %v3664_v54 = vadd.f32 %v9007_v40, %v12740_v34  ;;  %v3515_v7 = vpop.f32.mrb[5].mxu1  ;;  %v12832_v48 = vcombine.low %v4764_v37, %v4774_v26  ;;  %v4788_v47 = vsel %vm9974_vm6, %v12808_v36, %v12744_v53  ;;  %v4798_v49 = vsel %vm9974_vm6, %v12810_v50, %v12801_v44 }
 0x1d5   : > { %9118 = vmatmul.mubr.msk.bf16.gmra.mrb[40].mxu0 %vm1497_vm2, %v13849_v56  ;;  %v4853_v56 = vrot.slane %v4851_v23, 5  ;;  %v9008_v1 = vpop.f32.mrb[6].mxu1  ;;  %v4843_v33 = vshll.u32 %v13851_v41, 16  ;;  %v4830_v26 = vor.u32 %v4829_v14, %v4826_v38  ;;  %v12852_v53 = vrot.slane %v4857_v12, 5 }
 0x1d6   : > { %9121 = vmatprep.mubr.msk.bf16.mxu0 %vm1497_vm2, %v13850_v43  ;;  %v3665_v22 = vadd.f32 %v9008_v1, %v12740_v34  ;;  %v3518_v37 = vpop.f32.mrb[7].mxu1  ;;  %v4863_v39 = vrot.slane %v4861_v29, 4  ;;  %v4812_v23 = vsel %vm9974_vm6, %v4807_v59, %v12761_v20  ;;  %v4822_v36 = vsel %vm9974_vm6, %v4817_v60, %v12812_v42 }
 0x1d7   : > { %3734 = vrot.lane.b32.xlu0 %v3664_v54, %s9866_s19  ;;  %v4840_v50 = vor.u32 %v4839_v11, %v12823_v35  ;;  %v4854_v12 = vor.u32 %v4853_v56, %v4850_v55  ;;  %v4872_v29 = vshrl.u32 %v12844_v28, 16  ;;  %v4875_v20 = vshll.u32 %v12844_v28, 16 }
 0x1d8   : > { %v8859_v18 = vpop.f32.mrb[0].mxu0  ;;  %9270 = vmatmul.mubr.msk.bf16.gmra.mrb[48].mxu1 %vm1497_vm2, %v12830_v3  ;;  %3736 = vrot.lane.b32.xlu1 %v3665_v22, %s9866_s19  ;;  %v3662_v59 = vadd.f32 %v12740_v34, %v3515_v7  ;;  %v4881_v60 = vshll.u32 %v12543_v0, 16  ;;  %v4885_v11 = vshrl.u32 %v12543_v0, 16  ;;  %v3663_v43 = vadd.f32 %v12740_v34, %v3518_v37 }
 0x1d9   : > { %v2628_v44 = vadd.f32 %v8859_v18, %v12740_v34  ;;  %v2461_v15 = vpop.f32.mrb[1].mxu0  ;;  %9273 = vmatprep.mubr.msk.bf16.mxu1 %vm1497_vm2, %v12832_v48  ;;  %v4864_v55 = vor.u32 %v4863_v39, %v12852_v53  ;;  %v4867_v56 = vshll.u32 %v12540_v9, 16  ;;  %v13852_v7 = vcombine.low %v12442_v62, %v12235_v10 }
 0x1da   : > { %v2626_v38 = vadd.f32 %v12740_v34, %v2461_v15  ;;  %v8860_v14 = vpop.f32.mrb[2].mxu0  ;;  %v12890_v41 = vcombine.low %v4788_v47, %v4798_v49  ;;  %v4831_v18 = vrot.slane %v4830_v26, 4  ;;  %v4845_v22 = vrot.slane %v4843_v33, 5 }
 0x1db   : > { %2660 = vst.msk [vmem:[%s12849_s22 + $0x20] sm:$0xff] %vm1497_vm2, %v2628_v44  ;;  %v2629_v42 = vadd.f32 %v8860_v14, %v12740_v34  ;;  %v2464_v40 = vpop.f32.mrb[3].mxu0  ;;  %3730 = vrot.lane.b32.xlu0 %v3662_v59, %s9866_s19  ;;  %v9011_v1 = vpop.f32.mrb[8].mxu1  ;;  %v13853_v9 = vcombine.low %v12528_v31, %v12267_v30  ;;  %v12900_v62 = vcombine.low %v4812_v23, %v4822_v36  ;;  %v4841_v39 = vrot.slane %v4840_v50, 4 }
 0x1dc   : > { %2658 = vst.msk [vmem:[%s12849_s22] sm:$0xff] %vm1497_vm2, %v2626_v38  ;;  %v2627_v54 = vadd.f32 %v12740_v34, %v2464_v40  ;;  %v3668_v37 = vadd.f32 %v9011_v1, %v12740_v34  ;;  %3732 = vrot.lane.b32.xlu1 %v3663_v43, %s9866_s19  ;;  %v3531_v10 = vpop.f32.mrb[9].mxu1  ;;  %v4855_v44 = vrot.slane %v4854_v12, 4  ;;  %v4874_v49 = vrot.slane %v4872_v29, 4  ;;  %v8086_v43 = vld [vmem:[%s9928_s29 + $0x18] sm:$0xe] }
 0x1dd   : > { %2661 = vst.msk [vmem:[%s12849_s22 + $0x28] sm:$0xff] %vm1497_vm2, %v2629_v42  ;;  %9122 = vmatmul.mubr.msk.bf16.gmra.mrb[44].mxu0 %vm1497_vm2, %v13852_v7  ;;  %v9012_v47 = vpop.f32.mrb[10].mxu1  ;;  %v4877_v26 = vrot.slane %v4875_v20, 5  ;;  %v12902_v33 = vrot.slane %v4881_v60, 5  ;;  %v4887_v15 = vrot.slane %v4885_v11, 4  ;;  %v4865_v30 = vrot.slane %v4864_v55, 4 }
 0x1de   : > { %2659 = vst.msk [vmem:[%s12849_s22 + $0x8] sm:$0xff] %vm1497_vm2, %v2627_v54  ;;  %9125 = vmatprep.mubr.msk.bf16.mxu0 %vm1497_vm2, %v13853_v9  ;;  %v3669_v14 = vadd.f32 %v9012_v47, %v12740_v34  ;;  %v3534_v42 = vpop.f32.mrb[11].mxu1  ;;  %v4869_v31 = vrot.slane %v4867_v56, 5  ;;  %v8207_v23 = vcombine.low %v12632_v8, %v13838_v16  ;;  %v8208_v36 = vcombine.low %v12644_v24, %v12358_v6  ;;  %v13854_v24 = vld [vmem:[#allocation40_spill] sm:$0xff]  ;;  %v9835_v7 = vld [vmem:[%s9928_s29 + $0x1c] sm:$0xf] }
 0x1df   : > { %3742 = vrot.lane.b32.xlu0 %v3668_v37, %s9866_s19  ;;  %v4836_v50 = vsel %vm9974_vm6, %v4831_v18, %v12823_v35  ;;  %v4846_v8 = vsel %vm9974_vm6, %v4841_v39, %v4845_v22  ;;  %v4860_v6 = vsel %vm9974_vm6, %v4855_v44, %v12852_v53  ;;  %v4891_v16 = vshll.u32 %v13854_v24, 16 }
 0x1e0   : > { %v8863_v38 = vpop.f32.mrb[4].mxu0  ;;  %9274 = vmatmul.mubr.msk.bf16.gmra.mrb[52].mxu1 %vm1497_vm2, %v12890_v41  ;;  %3744 = vrot.lane.b32.xlu1 %v3669_v14, %s9866_s19  ;;  %v3666_v60 = vadd.f32 %v12740_v34, %v3531_v10  ;;  %v4878_v11 = vor.u32 %v4877_v26, %v4874_v49  ;;  %v4888_v54 = vor.u32 %v4887_v15, %v12902_v33  ;;  %v4961_v1 = vrot.slane %v9835_v7, 5 }
 0x1e1   : > { %v2632_v40 = vadd.f32 %v8863_v38, %v12740_v34  ;;  %v2477_v59 = vpop.f32.mrb[5].mxu0  ;;  %9277 = vmatprep.mubr.msk.bf16.mxu1 %vm1497_vm2, %v12900_v62  ;;  %v3667_v55 = vadd.f32 %v12740_v34, %v3534_v42  ;;  %v4870_v56 = vsel %vm9974_vm6, %v4865_v30, %v4869_v31  ;;  %v12948_v9 = vcombine.low %v4836_v50, %v4846_v8  ;;  %v9836_v30 = vld [vmem:[%s9928_s29 + $0x20] sm:$0x1] }
 0x1e2   : > { %v2630_v12 = vadd.f32 %v12740_v34, %v2477_v59  ;;  %v8864_v29 = vpop.f32.mrb[6].mxu0  ;;  %v8102_v10 = vrot.slane %v8086_v43, 9  ;;  %v12950_v44 = vcombine.low %v4860_v6, %v4870_v56  ;;  %v4879_v47 = vrot.slane %v4878_v11, 4  ;;  %v9838_v11 = vld [vmem:[%s9928_s29 + $0x34] sm:$0xf] }
 0x1e3   : > { %2664 = vst.msk [vmem:[%s12849_s22 + $0x60] sm:$0xff] %vm1497_vm2, %v2632_v40  ;;  %v2633_v35 = vadd.f32 %v8864_v29, %v12740_v34  ;;  %v2480_v20 = vpop.f32.mrb[7].mxu0  ;;  %3738 = vrot.lane.b32.xlu0 %v3666_v60, %s9866_s19  ;;  %v9015_v18 = vpop.f32.mrb[12].mxu1  ;;  %v4889_v49 = vrot.slane %v4888_v54, 4  ;;  %v4893_v26 = vrot.slane %v4891_v16, 5  ;;  %v4963_v42 = vrot.slane %v4961_v1, 4 }
 0x1e4   : > { %2662 = vst.msk [vmem:[%s12849_s22 + $0x40] sm:$0xff] %vm1497_vm2, %v2630_v12  ;;  %v2631_v53 = vadd.f32 %v12740_v34, %v2480_v20  ;;  %v3672_v22 = vadd.f32 %v9015_v18, %v12740_v34  ;;  %3740 = vrot.lane.b32.xlu1 %v3667_v55, %s9866_s19  ;;  %v3547_v37 = vpop.f32.mrb[13].mxu1  ;;  %v4964_v31 = vrot.slane %v9836_v30, 5  ;;  %v8210_v12 = vcombine.low %v12712_v19, %v12445_v46  ;;  %v8087_v60 = vld [vmem:[%s9928_s29 + $0x24] sm:$0xe] }
 0x1e5   : > { %2665 = vst.msk [vmem:[%s12849_s22 + $0x68] sm:$0xff] %vm1497_vm2, %v2633_v35  ;;  %9126 = vmatmul.mubr.msk.bf16.gmra.mrb[48].mxu0 %vm1497_vm2, %v8207_v23  ;;  %v9016_v39 = vpop.f32.mrb[14].mxu1  ;;  %v8209_v23 = vcombine.low %v12688_v52, %v13845_v25  ;;  %v4962_v29 = vsel %vm9930_vm4, %v8102_v10, %v4961_v1  ;;  %v9837_v52 = vld [vmem:[%s9928_s29 + $0x28] sm:$0xf]  ;;  %v3670_v24 = vadd.f32 %v12740_v34, %v3547_v37  ;;  %v4975_v54 = vrot.slane %v9838_v11, 5 }
 0x1e6   : > { %2663 = vst.msk [vmem:[%s12849_s22 + $0x48] sm:$0xff] %vm1497_vm2, %v2631_v53  ;;  %9129 = vmatprep.mubr.msk.bf16.mxu0 %vm1497_vm2, %v8208_v36  ;;  %v3673_v38 = vadd.f32 %v9016_v39, %v12740_v34  ;;  %v3550_v14 = vpop.f32.mrb[15].mxu1  ;;  %v4968_v25 = vrot.slane %v9837_v52, 5  ;;  %v4884_v46 = vsel %vm9974_vm6, %v4879_v47, %v12902_v33  ;;  %v4894_v19 = vsel %vm9974_vm6, %v4889_v49, %v4893_v26  ;;  %v8088_v33 = vld [vmem:[%s9928_s29 + $0x30] sm:$0xe] }
 0x1e7   : > { %3750 = vrot.lane.b32.xlu0 %v3672_v22, %s9866_s19  ;;  %v3671_v35 = vadd.f32 %v12740_v34, %v3550_v14  ;;  %v4965_v20 = vsel %vm9930_vm4, %v4963_v42, %v4964_v31  ;;  %v12996_v55 = vcombine.low %v4884_v46, %v4894_v19  ;;  %v8103_v1 = vrot.slane %v8087_v60, 9  ;;  %v9839_v22 = vld [vmem:[%s9928_s29 + $0x2c] sm:$0x1] }
 0x1e8   : > { %v8867_v15 = vpop.f32.mrb[8].mxu0  ;;  %9278 = vmatmul.mubr.msk.bf16.gmra.mrb[56].mxu1 %vm1497_vm2, %v12948_v9  ;;  %3752 = vrot.lane.b32.xlu1 %v3673_v38, %s9866_s19  ;;  %v8388_v7 = vcombine.low %v4962_v29, %v4965_v20  ;;  %v4970_v18 = vrot.slane %v4968_v25, 4  ;;  %v4971_v37 = vrot.slane %v9839_v22, 5  ;;  %v8104_v49 = vrot.slane %v8088_v33, 9 }
 0x1e9   : > { %v2636_v40 = vadd.f32 %v8867_v15, %v12740_v34  ;;  %v2493_v59 = vpop.f32.mrb[9].mxu0  ;;  %9281 = vmatprep.mubr.msk.bf16.mxu1 %vm1497_vm2, %v12950_v44  ;;  %v4977_v26 = vrot.slane %v4975_v54, 4  ;;  %v9840_v15 = vld [vmem:[%s9928_s29 + $0x38] sm:$0x1]  ;;  %v8211_v30 = vcombine.low %v12755_v58, %v13848_v21  ;;  %v8213_v60 = vcombine.low %v12844_v28, %v12543_v0 }
 0x1ea   : > { %v2634_v36 = vadd.f32 %v12740_v34, %v2493_v59  ;;  %v8868_v50 = vpop.f32.mrb[10].mxu0  ;;  %v4978_v38 = vrot.slane %v9840_v15, 5  ;;  %v8212_v59 = vcombine.low %v12781_v2, %v12531_v4  ;;  %v13856_v15 = vld [vmem:[#allocation17_spill] sm:$0xff] }
 0x1eb   : > { %2668 = vst.msk [vmem:[%s12849_s22 + $0xa0] sm:$0xff] %vm1497_vm2, %v2636_v40  ;;  %v2637_v8 = vadd.f32 %v8868_v50, %v12740_v34  ;;  %v2496_v6 = vpop.f32.mrb[11].mxu0  ;;  %3746 = vrot.lane.b32.xlu0 %v3670_v24, %s9866_s19  ;;  %v9019_v45 = vpop.f32.mrb[16].mxu1  ;;  %v4972_v50 = vsel %vm9930_vm4, %v4970_v18, %v4971_v37 }
 0x1ec   : > { %2666 = vst.msk [vmem:[%s12849_s22 + $0x80] sm:$0xff] %vm1497_vm2, %v2634_v36  ;;  %v2635_v16 = vadd.f32 %v12740_v34, %v2496_v6  ;;  %v3676_v43 = vadd.f32 %v9019_v45, %v12740_v34  ;;  %3748 = vrot.lane.b32.xlu1 %v3671_v35, %s9866_s19  ;;  %v3563_v53 = vpop.f32.mrb[17].mxu1  ;;  %v4969_v36 = vsel %vm9930_vm4, %v8103_v1, %v4968_v25 }
 0x1ed   : > { %2669 = vst.msk [vmem:[%s12849_s22 + $0xa8] sm:$0xff] %vm1497_vm2, %v2637_v8  ;;  %9130 = vmatmul.mubr.msk.bf16.gmra.mrb[52].mxu0 %vm1497_vm2, %v8209_v23  ;;  %v9020_v56 = vpop.f32.mrb[18].mxu1  ;;  %v3674_v21 = vadd.f32 %v12740_v34, %v3563_v53  ;;  %v4979_v29 = vsel %vm9930_vm4, %v4977_v26, %v4978_v38  ;;  %v8389_v6 = vcombine.low %v4969_v36, %v4972_v50  ;;  %v13857_v38 = vld [vmem:[#allocation18_spill] sm:$0xff] }
 0x1ee   : > { %2667 = vst.msk [vmem:[%s12849_s22 + $0x88] sm:$0xff] %vm1497_vm2, %v2635_v16  ;;  %9133 = vmatprep.mubr.msk.bf16.mxu0 %vm1497_vm2, %v8210_v12  ;;  %v3677_v39 = vadd.f32 %v9020_v56, %v12740_v34  ;;  %v3566_v47 = vpop.f32.mrb[19].mxu1  ;;  %v4976_v12 = vsel %vm9930_vm4, %v8104_v49, %v4975_v54 }
 0x1ef   : > { %3758 = vrot.lane.b32.xlu0 %v3676_v43, %s9866_s19  ;;  %v3675_v2 = vadd.f32 %v12740_v34, %v3566_v47  ;;  %v8390_v24 = vcombine.low %v4976_v12, %v4979_v29 }
 0x1f0   : > { %v8871_v10 = vpop.f32.mrb[12].mxu0  ;;  %9282 = vmatmul.mubr.msk.bf16.gmra.mrb[60].mxu1 %vm1497_vm2, %v12996_v55  ;;  %3760 = vrot.lane.b32.xlu1 %v3677_v39, %s9866_s19 }
 0x1f1   : > { %v2640_v14 = vadd.f32 %v8871_v10, %v12740_v34  ;;  %v2509_v42 = vpop.f32.mrb[13].mxu0  ;;  %9289 = vmatprep.mubr.msk.bf16.mxu1 %vm1497_vm2, %v8388_v7  ;;  %v13855_v7 = vld [vmem:[#allocation16_spill] sm:$0xff] }
 0x1f2   : > { %v2638_v31 = vadd.f32 %v12740_v34, %v2509_v42  ;;  %v8872_v40 = vpop.f32.mrb[14].mxu0 }
 0x1f3   : > { %2672 = vst.msk [vmem:[%s12849_s22 + $0xe0] sm:$0xff] %vm1497_vm2, %v2640_v14  ;;  %v2641_v23 = vadd.f32 %v8872_v40, %v12740_v34  ;;  %v2512_v58 = vpop.f32.mrb[15].mxu0  ;;  %3754 = vrot.lane.b32.xlu0 %v3674_v21, %s9866_s19  ;;  %v9023_v52 = vpop.f32.mrb[20].mxu1  ;;  %v13858_v14 = vcombine.low %v13856_v15, %v13857_v38  ;;  %v13859_v40 = vld [vmem:[#allocation22_spill] sm:$0xff]  ;;  %v13881_v38 = vld [vmem:[#allocation32_spill] sm:$0xff] }
 0x1f4   : > { %2670 = vst.msk [vmem:[%s12849_s22 + $0xc0] sm:$0xff] %vm1497_vm2, %v2638_v31  ;;  %v2639_v4 = vadd.f32 %v12740_v34, %v2512_v58  ;;  %v3680_v25 = vadd.f32 %v9023_v52, %v12740_v34  ;;  %3756 = vrot.lane.b32.xlu1 %v3675_v2, %s9866_s19  ;;  %v3579_v8 = vpop.f32.mrb[21].mxu1 }
 0x1f5   : > { %2673 = vst.msk [vmem:[%s12849_s22 + $0xe8] sm:$0xff] %vm1497_vm2, %v2641_v23  ;;  %9134 = vmatmul.mubr.msk.bf16.gmra.mrb[56].mxu0 %vm1497_vm2, %v8211_v30  ;;  %v9024_v61 = vpop.f32.mrb[22].mxu1  ;;  %v3678_v43 = vadd.f32 %v12740_v34, %v3579_v8 }
 0x1f6   : > { %2671 = vst.msk [vmem:[%s12849_s22 + $0xc8] sm:$0xff] %vm1497_vm2, %v2639_v4  ;;  %9137 = vmatprep.mubr.msk.bf16.mxu0 %vm1497_vm2, %v8212_v59  ;;  %v3681_v19 = vadd.f32 %v9024_v61, %v12740_v34  ;;  %v3582_v16 = vpop.f32.mrb[23].mxu1  ;;  %v13860_v59 = vld [vmem:[#allocation8_spill] sm:$0xff]  ;;  %v13863_v61 = vld [vmem:[#allocation9_spill] sm:$0xff] }
 0x1f7   : > { %3766 = vrot.lane.b32.xlu0 %v3680_v25, %s9866_s19  ;;  %v3679_v28 = vadd.f32 %v12740_v34, %v3582_v16  ;;  %v13861_v23 = vcombine.low %v13859_v40, %v13860_v59  ;;  %v13889_v40 = vld [vmem:[#allocation41_spill] sm:$0xff]  ;;  %v13890_v59 = vld [vmem:[#allocation42_spill] sm:$0xff] }
 0x1f8   : > { %v8875_v46 = vpop.f32.mrb[16].mxu0  ;;  %9290 = vmatmul.mubr.msk.bf16.vlgmr.msra.gmra.mrb[32].mxu1 %vm1497_vm2, %v8389_v6  ;;  %3768 = vrot.lane.b32.xlu1 %v3681_v19, %s9866_s19 }
 0x1f9   : > { %v2644_v35 = vadd.f32 %v8875_v46, %v12740_v34  ;;  %v2525_v20 = vpop.f32.mrb[17].mxu0  ;;  %9293 = vmatprep.mubr.msk.bf16.mxu1 %vm1497_vm2, %v8390_v24 }
 0x1fa   : > { %v2642_v11 = vadd.f32 %v12740_v34, %v2525_v20  ;;  %v8876_v54 = vpop.f32.mrb[18].mxu0  ;;  %v13866_v20 = vld [vmem:[#allocation14_spill] sm:$0xff] }
 0x1fb   : > { %2676 = vst.msk [vmem:[%s12849_s22 + $0x120] sm:$0xff] %vm1497_vm2, %v2644_v35  ;;  %v2645_v45 = vadd.f32 %v8876_v54, %v12740_v34  ;;  %v2528_v33 = vpop.f32.mrb[19].mxu0  ;;  %3762 = vrot.lane.b32.xlu0 %v3678_v43, %s9866_s19  ;;  %v9027_v53 = vpop.f32.mrb[24].mxu1  ;;  %v13865_v35 = vld [vmem:[#allocation11_spill] sm:$0xff] }
 0x1fc   : > { %2674 = vst.msk [vmem:[%s12849_s22 + $0x100] sm:$0xff] %vm1497_vm2, %v2642_v11  ;;  %v2643_v0 = vadd.f32 %v12740_v34, %v2528_v33  ;;  %v3684_v56 = vadd.f32 %v9027_v53, %v12740_v34  ;;  %3764 = vrot.lane.b32.xlu1 %v3679_v28, %s9866_s19  ;;  %v3595_v1 = vpop.f32.mrb[25].mxu1  ;;  %v13868_v53 = vld [vmem:[#allocation6_spill] sm:$0xff] }
 0x1fd   : > { %2677 = vst.msk [vmem:[%s12849_s22 + $0x128] sm:$0xff] %vm1497_vm2, %v2645_v45  ;;  %9138 = vmatmul.mubr.msk.bf16.gmra.mrb[60].mxu0 %vm1497_vm2, %v8213_v60  ;;  %v9028_v18 = vpop.f32.mrb[26].mxu1  ;;  %v3682_v31 = vadd.f32 %v12740_v34, %v3595_v1  ;;  %v13867_v60 = vcombine.low %v13865_v35, %v13866_v20  ;;  %v13871_v1 = vld [vmem:[#allocation12_spill] sm:$0xff] }
 0x1fe   : > { %2675 = vst.msk [vmem:[%s12849_s22 + $0x108] sm:$0xff] %vm1497_vm2, %v2643_v0  ;;  %9145 = vmatprep.mubr.msk.bf16.mxu0 %vm1497_vm2, %v13855_v7  ;;  %v3685_v37 = vadd.f32 %v9028_v18, %v12740_v34  ;;  %v3598_v10 = vpop.f32.mrb[27].mxu1  ;;  %v13872_v18 = vld [vmem:[#allocation2_spill] sm:$0xff] }
 0x1ff   : > { %3774 = vrot.lane.b32.xlu0 %v3684_v56, %s9866_s19  ;;  %v3683_v21 = vadd.f32 %v12740_v34, %v3598_v10  ;;  %v13874_v10 = vld [vmem:[#allocation26_spill] sm:$0xff] }
 0x200   : > { %v8879_v22 = vpop.f32.mrb[20].mxu0  ;;  %9294 = vmatmul.mubr.msk.bf16.gmra.mrb[36].mxu1 %vm1497_vm2, %v13858_v14  ;;  %3776 = vrot.lane.b32.xlu1 %v3685_v37, %s9866_s19  ;;  %v13883_v14 = vld [vmem:[#allocation36_spill] sm:$0xff] }
 0x201   : > { %v2648_v39 = vadd.f32 %v8879_v22, %v12740_v34  ;;  %v2541_v47 = vpop.f32.mrb[21].mxu0  ;;  %9297 = vmatprep.mubr.msk.bf16.mxu1 %vm1497_vm2, %v13861_v23  ;;  %v13873_v22 = vcombine.low %v13871_v1, %v13872_v18  ;;  %v13891_v23 = vcombine.low %v13889_v40, %v13890_v59 }
 0x202   : > { %v2646_v49 = vadd.f32 %v12740_v34, %v2541_v47  ;;  %v8880_v26 = vpop.f32.mrb[22].mxu0 }
 0x203   : > { %2680 = vst.msk [vmem:[%s12849_s22 + $0x160] sm:$0xff] %vm1497_vm2, %v2648_v39  ;;  %v2649_v42 = vadd.f32 %v8880_v26, %v12740_v34  ;;  %v2544_v30 = vpop.f32.mrb[23].mxu0  ;;  %3770 = vrot.lane.b32.xlu0 %v3682_v31, %s9866_s19  ;;  %v9031_v36 = vpop.f32.mrb[28].mxu1  ;;  %v13875_v39 = vld [vmem:[#allocation31_spill] sm:$0xff]  ;;  %v13878_v26 = vld [vmem:[#allocation20_spill] sm:$0xff] }
 0x204   : > { %2678 = vst.msk [vmem:[%s12849_s22 + $0x140] sm:$0xff] %vm1497_vm2, %v2646_v49  ;;  %v2647_v58 = vadd.f32 %v12740_v34, %v2544_v30  ;;  %v3688_v50 = vadd.f32 %v9031_v36, %v12740_v34  ;;  %3772 = vrot.lane.b32.xlu1 %v3683_v21, %s9866_s19  ;;  %v3611_v4 = vpop.f32.mrb[29].mxu1  ;;  %v13876_v47 = vcombine.low %v13874_v10, %v13875_v39  ;;  %v13877_v49 = vld [vmem:[#allocation28_spill] sm:$0xff] }
 0x205   : > { %2681 = vst.msk [vmem:[%s12849_s22 + $0x168] sm:$0xff] %vm1497_vm2, %v2649_v42  ;;  %9146 = vmatmul.mubr.msk.bf16.vlgmr.msra.gmra.mrb[32].mxu0 %vm1497_vm2, %v12452_v17  ;;  %v9032_v2 = vpop.f32.mrb[30].mxu1  ;;  %v3686_v16 = vadd.f32 %v12740_v34, %v3611_v4  ;;  %v13879_v15 = vcombine.low %v13877_v49, %v13878_v26  ;;  %v13884_v42 = vld [vmem:[#allocation37_spill] sm:$0xff] }
 0x206   : > { %2679 = vst.msk [vmem:[%s12849_s22 + $0x148] sm:$0xff] %vm1497_vm2, %v2647_v58  ;;  %9149 = vmatprep.mubr.msk.bf16.mxu0 %vm1497_vm2, %v12466_v57  ;;  %v3689_v29 = vadd.f32 %v9032_v2, %v12740_v34  ;;  %v3614_v17 = vpop.f32.mrb[31].mxu1  ;;  %v13862_v57 = vld [vmem:[#allocation24_spill] sm:$0xff]  ;;  %v13885_v30 = vcombine.low %v13883_v14, %v13884_v42 }
 0x207   : > { %3782 = vrot.lane.b32.xlu0 %v3688_v50, %s9866_s19  ;;  %v13864_v24 = vcombine.low %v13862_v57, %v13863_v61  ;;  %v3687_v54 = vadd.f32 %v12740_v34, %v3614_v17 }
 0x208   : > { %v8883_v12 = vpop.f32.mrb[24].mxu0  ;;  %3784 = vrot.lane.b32.xlu1 %v3689_v29, %s9866_s19 }
 0x209   : > { %v2652_v52 = vadd.f32 %v8883_v12, %v12740_v34  ;;  %v2557_v25 = vpop.f32.mrb[25].mxu0  ;;  %9298 = vmatmul.mubr.msk.bf16.gmra.mrb[40].mxu1 %vm1497_vm2, %v13864_v24 }
 0x20a   : > { %v2650_v8 = vadd.f32 %v12740_v34, %v2557_v25  ;;  %v8884_v6 = vpop.f32.mrb[26].mxu0  ;;  %9301 = vmatprep.mubr.msk.bf16.mxu1 %vm1497_vm2, %v13867_v60 }
 0x20b   : > { %2684 = vst.msk [vmem:[%s12849_s22 + $0x1a0] sm:$0xff] %vm1497_vm2, %v2652_v52  ;;  %v2653_v46 = vadd.f32 %v8884_v6, %v12740_v34  ;;  %v2560_v19 = vpop.f32.mrb[27].mxu0  ;;  %3778 = vrot.lane.b32.xlu0 %v3686_v16, %s9866_s19 }
 0x20c   : > { %2682 = vst.msk [vmem:[%s12849_s22 + $0x180] sm:$0xff] %vm1497_vm2, %v2650_v8  ;;  %v2651_v11 = vadd.f32 %v12740_v34, %v2560_v19  ;;  %3780 = vrot.lane.b32.xlu1 %v3687_v54, %s9866_s19 }
 0x20d   : > { %2685 = vst.msk [vmem:[%s12849_s22 + $0x1a8] sm:$0xff] %vm1497_vm2, %v2653_v46  ;;  %9150 = vmatmul.mubr.msk.bf16.gmra.mrb[36].mxu0 %vm1497_vm2, %v12618_v63  ;;  %v13869_v63 = vld [vmem:[#allocation5_spill] sm:$0xff] }
 0x20e   : > { %2683 = vst.msk [vmem:[%s12849_s22 + $0x188] sm:$0xff] %vm1497_vm2, %v2651_v11  ;;  %9153 = vmatprep.mubr.msk.bf16.mxu0 %vm1497_vm2, %v12634_v51  ;;  %v13870_v56 = vcombine.low %v13868_v53, %v13869_v63 }
 0x210   : > { %v8887_v45 = vpop.f32.mrb[28].mxu0 }
 0x211   : > { %v2656_v33 = vadd.f32 %v8887_v45, %v12740_v34  ;;  %v2573_v43 = vpop.f32.mrb[29].mxu0  ;;  %9302 = vmatmul.mubr.msk.bf16.gmra.mrb[44].mxu1 %vm1497_vm2, %v13870_v56 }
 0x212   : > { %v2654_v0 = vadd.f32 %v12740_v34, %v2573_v43  ;;  %v8888_v28 = vpop.f32.mrb[30].mxu0  ;;  %9305 = vmatprep.mubr.msk.bf16.mxu1 %vm1497_vm2, %v13873_v22 }
 0x213   : > { %2688 = vst.msk [vmem:[%s12849_s22 + $0x1e0] sm:$0xff] %vm1497_vm2, %v2656_v33  ;;  %v2657_v7 = vadd.f32 %v8888_v28, %v12740_v34  ;;  %v2576_v51 = vpop.f32.mrb[31].mxu0 }
 0x214   : > { %2686 = vst.msk [vmem:[%s12849_s22 + $0x1c0] sm:$0xff] %vm1497_vm2, %v2654_v0  ;;  %v2655_v37 = vadd.f32 %v12740_v34, %v2576_v51 }
 0x215   : > { %2689 = vst.msk [vmem:[%s12849_s22 + $0x1e8] sm:$0xff] %vm1497_vm2, %v2657_v7  ;;  %9154 = vmatmul.mubr.msk.bf16.gmra.mrb[40].mxu0 %vm1497_vm2, %v12678_v32  ;;  %v13880_v32 = vld [vmem:[#allocation30_spill] sm:$0xff] }
 0x216   : > { %2687 = vst.msk [vmem:[%s12849_s22 + $0x1c8] sm:$0xff] %vm1497_vm2, %v2655_v37  ;;  %9157 = vmatprep.mubr.msk.bf16.mxu0 %vm1497_vm2, %v12694_v27  ;;  %v13882_v27 = vcombine.low %v13880_v32, %v13881_v38 }
 0x219   : > { %9306 = vmatmul.mubr.msk.bf16.gmra.mrb[48].mxu1 %vm1497_vm2, %v13876_v47 }
 0x21a   : > { %9309 = vmatprep.mubr.msk.bf16.mxu1 %vm1497_vm2, %v13879_v15 }
 0x21d   : > { %9158 = vmatmul.mubr.msk.bf16.gmra.mrb[44].mxu0 %vm1497_vm2, %v12696_v13  ;;  %v13886_v13 = vld [vmem:[#allocation38_spill] sm:$0xff] }
 0x21e   : > { %9161 = vmatprep.mubr.msk.bf16.mxu0 %vm1497_vm2, %v12746_v5  ;;  %v13887_v5 = vld [vmem:[#allocation39_spill] sm:$0xff] }
 0x21f   : > { %v13888_v31 = vcombine.low %v13886_v13, %v13887_v5 }
 0x221   : > { %9310 = vmatmul.mubr.msk.bf16.gmra.mrb[52].mxu1 %vm1497_vm2, %v13882_v27 }
 0x222   : > { %9313 = vmatprep.mubr.msk.bf16.mxu1 %vm1497_vm2, %v13885_v30 }
 0x225   : > { %9162 = vmatmul.mubr.msk.bf16.gmra.mrb[48].mxu0 %vm1497_vm2, %v12830_v3  ;;  %v13892_v3 = vld [vmem:[#allocation23_spill] sm:$0xff] }
 0x226   : > { %9165 = vmatprep.mubr.msk.bf16.mxu0 %vm1497_vm2, %v12832_v48  ;;  %v13893_v48 = vld [vmem:[#allocation21_spill] sm:$0xff] }
 0x227   : > { %v13894_v58 = vcombine.low %v13892_v3, %v13893_v48 }
 0x229   : > { %9314 = vmatmul.mubr.msk.bf16.gmra.mrb[56].mxu1 %vm1497_vm2, %v13888_v31 }
 0x22a   : > { %9317 = vmatprep.mubr.msk.bf16.mxu1 %vm1497_vm2, %v13891_v23 }
 0x22d   : > { %9166 = vmatmul.mubr.msk.bf16.gmra.mrb[52].mxu0 %vm1497_vm2, %v12890_v41 }
 0x22e   : > { %9169 = vmatprep.mubr.msk.bf16.mxu0 %vm1497_vm2, %v12900_v62 }
 0x231   : > { %9318 = vmatmul.mubr.msk.bf16.gmra.mrb[60].mxu1 %vm1497_vm2, %v13894_v58 }
 0x235   : > { %9170 = vmatmul.mubr.msk.bf16.gmra.mrb[56].mxu0 %vm1497_vm2, %v12948_v9 }
 0x236   : > { %9173 = vmatprep.mubr.msk.bf16.mxu0 %vm1497_vm2, %v12950_v44 }
 0x23d   : > { %9174 = vmatmul.mubr.msk.bf16.gmra.mrb[60].mxu0 %vm1497_vm2, %v12996_v55 }
 0x240   : > { %v3727_v41 = vpop.permute.xlu1 %3726 }
 0x241   : > { %3821 = vst.msk [vmem:[%s12849_s22 + $0x20] sm:$0xff] %vm3818_vm7, %v3727_v41  ;;  %v3723_v62 = vpop.permute.xlu0 %3722 }
 0x242   : > { %3819 = vst.msk [vmem:[%s12849_s22] sm:$0xff] %vm3818_vm7, %v3723_v62 }
 0x244   : > { %v3729_v21 = vpop.permute.xlu1 %3728 }
 0x245   : > { %3822 = vst.msk [vmem:[%s12849_s22 + $0x28] sm:$0xff] %vm3818_vm7, %v3729_v21  ;;  %v3725_v9 = vpop.permute.xlu0 %3724 }
 0x246   : > { %3820 = vst.msk [vmem:[%s12849_s22 + $0x8] sm:$0xff] %vm3818_vm7, %v3725_v9 }
 0x249   : > { %v3735_v44 = vpop.permute.xlu0 %3734 }
 0x24a   : > { %3825 = vst.msk [vmem:[%s12849_s22 + $0x60] sm:$0xff] %vm3818_vm7, %v3735_v44  ;;  %v3737_v55 = vpop.permute.xlu1 %3736 }
 0x24b   : > { %3826 = vst.msk [vmem:[%s12849_s22 + $0x68] sm:$0xff] %vm3818_vm7, %v3737_v55 }
 0x24d   : > { %v3731_v36 = vpop.permute.xlu0 %3730 }
 0x24e   : > { %3823 = vst.msk [vmem:[%s12849_s22 + $0x40] sm:$0xff] %vm3818_vm7, %v3731_v36  ;;  %v3733_v50 = vpop.permute.xlu1 %3732 }
 0x24f   : > { %3824 = vst.msk [vmem:[%s12849_s22 + $0x48] sm:$0xff] %vm3818_vm7, %v3733_v50 }
 0x251   : > { %v3743_v4 = vpop.permute.xlu0 %3742 }
 0x252   : > { %3829 = vst.msk [vmem:[%s12849_s22 + $0xa0] sm:$0xff] %vm3818_vm7, %v3743_v4  ;;  %v3745_v2 = vpop.permute.xlu1 %3744 }
 0x253   : > { %3830 = vst.msk [vmem:[%s12849_s22 + $0xa8] sm:$0xff] %vm3818_vm7, %v3745_v2 }
 0x255   : > { %v3739_v12 = vpop.permute.xlu0 %3738 }
 0x256   : > { %3827 = vst.msk [vmem:[%s12849_s22 + $0x80] sm:$0xff] %vm3818_vm7, %v3739_v12  ;;  %v3741_v29 = vpop.permute.xlu1 %3740 }
 0x257   : > { %3828 = vst.msk [vmem:[%s12849_s22 + $0x88] sm:$0xff] %vm3818_vm7, %v3741_v29 }
 0x259   : > { %v3751_v17 = vpop.permute.xlu0 %3750 }
 0x25a   : > { %3833 = vst.msk [vmem:[%s12849_s22 + $0xe0] sm:$0xff] %vm3818_vm7, %v3751_v17  ;;  %v3753_v52 = vpop.permute.xlu1 %3752 }
 0x25b   : > { %3834 = vst.msk [vmem:[%s12849_s22 + $0xe8] sm:$0xff] %vm3818_vm7, %v3753_v52 }
 0x25d   : > { %v3747_v25 = vpop.permute.xlu0 %3746 }
 0x25e   : > { %3831 = vst.msk [vmem:[%s12849_s22 + $0xc0] sm:$0xff] %vm3818_vm7, %v3747_v25  ;;  %v3749_v8 = vpop.permute.xlu1 %3748 }
 0x25f   : > { %3832 = vst.msk [vmem:[%s12849_s22 + $0xc8] sm:$0xff] %vm3818_vm7, %v3749_v8 }
 0x261   : > { %v3759_v6 = vpop.permute.xlu0 %3758 }
 0x262   : > { %3837 = vst.msk [vmem:[%s12849_s22 + $0x120] sm:$0xff] %vm3818_vm7, %v3759_v6  ;;  %v3761_v57 = vpop.permute.xlu1 %3760 }
 0x263   : > { %3838 = vst.msk [vmem:[%s12849_s22 + $0x128] sm:$0xff] %vm3818_vm7, %v3761_v57 }
 0x265   : > { %v3755_v61 = vpop.permute.xlu0 %3754 }
 0x266   : > { %3835 = vst.msk [vmem:[%s12849_s22 + $0x100] sm:$0xff] %vm3818_vm7, %v3755_v61  ;;  %v3757_v24 = vpop.permute.xlu1 %3756 }
 0x267   : > { %3836 = vst.msk [vmem:[%s12849_s22 + $0x108] sm:$0xff] %vm3818_vm7, %v3757_v24 }
 0x269   : > { %v3767_v46 = vpop.permute.xlu0 %3766 }
 0x26a   : > { %3841 = vst.msk [vmem:[%s12849_s22 + $0x160] sm:$0xff] %vm3818_vm7, %v3767_v46  ;;  %v3769_v19 = vpop.permute.xlu1 %3768 }
 0x26b   : > { %3842 = vst.msk [vmem:[%s12849_s22 + $0x168] sm:$0xff] %vm3818_vm7, %v3769_v19  ;;  %v13321_v19 = vld [vmem:[%s13501_s2] ss:$0 sm:$0xff] }
 0x26d   : > { %v3763_v16 = vpop.permute.xlu0 %3762 }
 0x26e   : > { %3839 = vst.msk [vmem:[%s12849_s22 + $0x140] sm:$0xff] %vm3818_vm7, %v3763_v16  ;;  %v3765_v35 = vpop.permute.xlu1 %3764 }
 0x26f   : > { %3840 = vst.msk [vmem:[%s12849_s22 + $0x148] sm:$0xff] %vm3818_vm7, %v3765_v35 }
 0x271   : > { %v3775_v20 = vpop.permute.xlu0 %3774 }
 0x272   : > { %3845 = vst.msk [vmem:[%s12849_s22 + $0x1a0] sm:$0xff] %vm3818_vm7, %v3775_v20  ;;  %v3777_v60 = vpop.permute.xlu1 %3776 }
 0x273   : > { %3846 = vst.msk [vmem:[%s12849_s22 + $0x1a8] sm:$0xff] %vm3818_vm7, %v3777_v60 }
 0x275   : > { %v3771_v11 = vpop.permute.xlu0 %3770 }
 0x276   : > { %3843 = vst.msk [vmem:[%s12849_s22 + $0x180] sm:$0xff] %vm3818_vm7, %v3771_v11  ;;  %v3773_v54 = vpop.permute.xlu1 %3772 }
 0x277   : > { %3844 = vst.msk [vmem:[%s12849_s22 + $0x188] sm:$0xff] %vm3818_vm7, %v3773_v54 }
 0x279   : > { %v3783_v45 = vpop.permute.xlu0 %3782 }
 0x27a   : > { %3849 = vst.msk [vmem:[%s12849_s22 + $0x1e0] sm:$0xff] %vm3818_vm7, %v3783_v45  ;;  %v3785_v33 = vpop.permute.xlu1 %3784 }
 0x27b   : > { %3850 = vst.msk [vmem:[%s12849_s22 + $0x1e8] sm:$0xff] %vm3818_vm7, %v3785_v33 }
 0x27d   : > { %v3779_v43 = vpop.permute.xlu0 %3778 }
 0x27e   : > { %3847 = vst.msk [vmem:[%s12849_s22 + $0x1c0] sm:$0xff] %vm3818_vm7, %v3779_v43  ;;  %v3781_v0 = vpop.permute.xlu1 %3780 }
 0x27f   : > { %3848 = vst.msk [vmem:[%s12849_s22 + $0x1c8] sm:$0xff] %vm3818_vm7, %v3781_v0 }
 0x2cb   : > { %v9291_v28 = vpop.f32.mrb[32].mxu1 }
 0x2cc   : > { %v7298_v53 = vadd.f32 %v9291_v28, %v12740_v34  ;;  %v7137_v63 = vpop.f32.mrb[33].mxu1 }
 0x2cd   : > { %v9292_v56 = vpop.f32.mrb[34].mxu1  ;;  %v7296_v1 = vadd.f32 %v12740_v34, %v7137_v63 }
 0x2ce   : > { %v7299_v7 = vadd.f32 %v9292_v56, %v12740_v34  ;;  %7364 = vrot.lane.b32.xlu0 %v7298_v53, %s9866_s19  ;;  %v7140_v51 = vpop.f32.mrb[35].mxu1 }
 0x2cf   : > { %v7297_v18 = vadd.f32 %v12740_v34, %v7140_v51 }
 0x2d0   : > { %7366 = vrot.lane.b32.xlu1 %v7299_v7, %s9866_s19 }
 0x2d2   : > { %7360 = vrot.lane.b32.xlu0 %v7296_v1, %s9866_s19 }
 0x2d3   : > { %v9295_v22 = vpop.f32.mrb[36].mxu1 }
 0x2d4   : > { %v7302_v37 = vadd.f32 %v9295_v22, %v12740_v34  ;;  %v7153_v10 = vpop.f32.mrb[37].mxu1  ;;  %7362 = vrot.lane.b32.xlu1 %v7297_v18, %s9866_s19 }
 0x2d5   : > { %v9296_v39 = vpop.f32.mrb[38].mxu1  ;;  %v7300_v14 = vadd.f32 %v12740_v34, %v7153_v10 }
 0x2d6   : > { %v7303_v49 = vadd.f32 %v9296_v39, %v12740_v34  ;;  %7372 = vrot.lane.b32.xlu0 %v7302_v37, %s9866_s19  ;;  %v7156_v26 = vpop.f32.mrb[39].mxu1 }
 0x2d7   : > { %v7301_v5 = vadd.f32 %v12740_v34, %v7156_v26 }
 0x2d8   : > { %v9147_v47 = vpop.f32.mrb[32].mxu0  ;;  %7374 = vrot.lane.b32.xlu1 %v7303_v49, %s9866_s19 }
 0x2d9   : > { %v6265_v15 = vadd.f32 %v9147_v47, %v12740_v34  ;;  %v6104_v32 = vpop.f32.mrb[33].mxu0 }
 0x2da   : > { %v6263_v38 = vadd.f32 %v12740_v34, %v6104_v32  ;;  %v9148_v27 = vpop.f32.mrb[34].mxu0  ;;  %7368 = vrot.lane.b32.xlu0 %v7300_v14, %s9866_s19 }
 0x2db   : > { %8272 = vst.msk [vmem:[%s12849_s22 + $0x30] sm:$0xff] %vm1497_vm2, %v6265_v15  ;;  %v6266_v42 = vadd.f32 %v9148_v27, %v12740_v34  ;;  %v6107_v30 = vpop.f32.mrb[35].mxu0 }
 0x2dc   : > { %8270 = vst.msk [vmem:[%s12849_s22 + $0x10] sm:$0xff] %vm1497_vm2, %v6263_v38  ;;  %v6264_v13 = vadd.f32 %v12740_v34, %v6107_v30  ;;  %v9299_v31 = vpop.f32.mrb[40].mxu1  ;;  %7370 = vrot.lane.b32.xlu1 %v7301_v5, %s9866_s19 }
 0x2dd   : > { %8273 = vst.msk [vmem:[%s12849_s22 + $0x38] sm:$0xff] %vm1497_vm2, %v6266_v42  ;;  %v7306_v40 = vadd.f32 %v9299_v31, %v12740_v34  ;;  %v7169_v59 = vpop.f32.mrb[41].mxu1 }
 0x2de   : > { %8271 = vst.msk [vmem:[%s12849_s22 + $0x18] sm:$0xff] %vm1497_vm2, %v6264_v13  ;;  %v9300_v23 = vpop.f32.mrb[42].mxu1  ;;  %v7304_v44 = vadd.f32 %v12740_v34, %v7169_v59 }
 0x2df   : > { %v7307_v48 = vadd.f32 %v9300_v23, %v12740_v34  ;;  %7380 = vrot.lane.b32.xlu0 %v7306_v40, %s9866_s19  ;;  %v7172_v58 = vpop.f32.mrb[43].mxu1 }
 0x2e0   : > { %v9151_v3 = vpop.f32.mrb[36].mxu0  ;;  %v7305_v4 = vadd.f32 %v12740_v34, %v7172_v58 }
 0x2e1   : > { %v6269_v41 = vadd.f32 %v9151_v3, %v12740_v34  ;;  %v6120_v62 = vpop.f32.mrb[37].mxu0  ;;  %7382 = vrot.lane.b32.xlu1 %v7307_v48, %s9866_s19 }
 0x2e2   : > { %v6267_v21 = vadd.f32 %v12740_v34, %v6120_v62  ;;  %v9152_v9 = vpop.f32.mrb[38].mxu0 }
 0x2e3   : > { %8276 = vst.msk [vmem:[%s12849_s22 + $0x70] sm:$0xff] %vm1497_vm2, %v6269_v41  ;;  %v6270_v55 = vadd.f32 %v9152_v9, %v12740_v34  ;;  %v6123_v36 = vpop.f32.mrb[39].mxu0  ;;  %7376 = vrot.lane.b32.xlu0 %v7304_v44, %s9866_s19 }
 0x2e4   : > { %8274 = vst.msk [vmem:[%s12849_s22 + $0x50] sm:$0xff] %vm1497_vm2, %v6267_v21  ;;  %v6268_v50 = vadd.f32 %v12740_v34, %v6123_v36  ;;  %v9303_v2 = vpop.f32.mrb[44].mxu1 }
 0x2e5   : > { %8277 = vst.msk [vmem:[%s12849_s22 + $0x78] sm:$0xff] %vm1497_vm2, %v6270_v55  ;;  %v7310_v12 = vadd.f32 %v9303_v2, %v12740_v34  ;;  %v7185_v29 = vpop.f32.mrb[45].mxu1  ;;  %7378 = vrot.lane.b32.xlu1 %v7305_v4, %s9866_s19 }
 0x2e6   : > { %8275 = vst.msk [vmem:[%s12849_s22 + $0x58] sm:$0xff] %vm1497_vm2, %v6268_v50  ;;  %v9304_v17 = vpop.f32.mrb[46].mxu1  ;;  %v7308_v46 = vadd.f32 %v12740_v34, %v7185_v29 }
 0x2e7   : > { %v7311_v25 = vadd.f32 %v9304_v17, %v12740_v34  ;;  %7388 = vrot.lane.b32.xlu0 %v7310_v12, %s9866_s19  ;;  %v7188_v8 = vpop.f32.mrb[47].mxu1 }
 0x2e8   : > { %v9155_v52 = vpop.f32.mrb[40].mxu0  ;;  %v7309_v60 = vadd.f32 %v13321_v19, %v7188_v8 }
 0x2e9   : > { %v6273_v6 = vadd.f32 %v9155_v52, %v12740_v34  ;;  %v6136_v57 = vpop.f32.mrb[41].mxu0  ;;  %7390 = vrot.lane.b32.xlu1 %v7311_v25, %s9866_s19 }
 0x2ea   : > { %v6271_v61 = vadd.f32 %v12740_v34, %v6136_v57  ;;  %v9156_v24 = vpop.f32.mrb[42].mxu0 }
 0x2eb   : > { %8280 = vst.msk [vmem:[%s12849_s22 + $0xb0] sm:$0xff] %vm1497_vm2, %v6273_v6  ;;  %v6274_v16 = vadd.f32 %v13321_v19, %v9156_v24  ;;  %v6139_v35 = vpop.f32.mrb[43].mxu0  ;;  %7384 = vrot.lane.b32.xlu0 %v7308_v46, %s9866_s19 }
 0x2ec   : > { %8278 = vst.msk [vmem:[%s12849_s22 + $0x90] sm:$0xff] %vm1497_vm2, %v6271_v61  ;;  %v6272_v20 = vadd.f32 %v13321_v19, %v6139_v35  ;;  %v9307_v34 = vpop.f32.mrb[48].mxu1 }
 0x2ed   : > { %8281 = vst.msk [vmem:[%s12849_s22 + $0xb8] sm:$0xff] %vm1497_vm2, %v6274_v16  ;;  %v7314_v11 = vadd.f32 %v13321_v19, %v9307_v34  ;;  %v7201_v54 = vpop.f32.mrb[49].mxu1  ;;  %7386 = vrot.lane.b32.xlu1 %v7309_v60, %s9866_s19 }
 0x2ee   : > { %8279 = vst.msk [vmem:[%s12849_s22 + $0x98] sm:$0xff] %vm1497_vm2, %v6272_v20  ;;  %v9308_v45 = vpop.f32.mrb[50].mxu1  ;;  %v7312_v7 = vadd.f32 %v13321_v19, %v7201_v54 }
 0x2ef   : > { %v7315_v43 = vadd.f32 %v13321_v19, %v9308_v45  ;;  %7396 = vrot.lane.b32.xlu0 %v7314_v11, %s9866_s19  ;;  %v7204_v0 = vpop.f32.mrb[51].mxu1 }
 0x2f0   : > { %v9159_v33 = vpop.f32.mrb[44].mxu0  ;;  %v7313_v22 = vadd.f32 %v13321_v19, %v7204_v0 }
 0x2f1   : > { %v6277_v28 = vadd.f32 %v13321_v19, %v9159_v33  ;;  %v6152_v53 = vpop.f32.mrb[45].mxu0  ;;  %7398 = vrot.lane.b32.xlu1 %v7315_v43, %s9866_s19 }
 0x2f2   : > { %v6275_v63 = vadd.f32 %v13321_v19, %v6152_v53  ;;  %v9160_v56 = vpop.f32.mrb[46].mxu0 }
 0x2f3   : > { %8284 = vst.msk [vmem:[%s12849_s22 + $0xf0] sm:$0xff] %vm1497_vm2, %v6277_v28  ;;  %v6278_v51 = vadd.f32 %v13321_v19, %v9160_v56  ;;  %v6155_v1 = vpop.f32.mrb[47].mxu0  ;;  %7392 = vrot.lane.b32.xlu0 %v7312_v7, %s9866_s19 }
 0x2f4   : > { %8282 = vst.msk [vmem:[%s12849_s22 + $0xd0] sm:$0xff] %vm1497_vm2, %v6275_v63  ;;  %v6276_v18 = vadd.f32 %v13321_v19, %v6155_v1  ;;  %v9311_v37 = vpop.f32.mrb[52].mxu1 }
 0x2f5   : > { %8285 = vst.msk [vmem:[%s12849_s22 + $0xf8] sm:$0xff] %vm1497_vm2, %v6278_v51  ;;  %v7318_v10 = vadd.f32 %v13321_v19, %v9311_v37  ;;  %v7217_v39 = vpop.f32.mrb[53].mxu1  ;;  %7394 = vrot.lane.b32.xlu1 %v7313_v22, %s9866_s19 }
 0x2f6   : > { %8283 = vst.msk [vmem:[%s12849_s22 + $0xd8] sm:$0xff] %vm1497_vm2, %v6276_v18  ;;  %v9312_v47 = vpop.f32.mrb[54].mxu1  ;;  %v7316_v42 = vadd.f32 %v13321_v19, %v7217_v39 }
 0x2f7   : > { %v7319_v26 = vadd.f32 %v13321_v19, %v9312_v47  ;;  %7404 = vrot.lane.b32.xlu0 %v7318_v10, %s9866_s19  ;;  %v7220_v15 = vpop.f32.mrb[55].mxu1 }
 0x2f8   : > { %v9163_v49 = vpop.f32.mrb[48].mxu0  ;;  %v7317_v31 = vadd.f32 %v13321_v19, %v7220_v15 }
 0x2f9   : > { %v6281_v32 = vadd.f32 %v13321_v19, %v9163_v49  ;;  %v6168_v38 = vpop.f32.mrb[49].mxu0  ;;  %7406 = vrot.lane.b32.xlu1 %v7319_v26, %s9866_s19 }
 0x2fa   : > { %v6279_v27 = vadd.f32 %v13321_v19, %v6168_v38  ;;  %v9164_v14 = vpop.f32.mrb[50].mxu0 }
 0x2fb   : > { %8288 = vst.msk [vmem:[%s12849_s22 + $0x130] sm:$0xff] %vm1497_vm2, %v6281_v32  ;;  %v6282_v30 = vadd.f32 %v13321_v19, %v9164_v14  ;;  %v6171_v13 = vpop.f32.mrb[51].mxu0  ;;  %7400 = vrot.lane.b32.xlu0 %v7316_v42, %s9866_s19 }
 0x2fc   : > { %8286 = vst.msk [vmem:[%s12849_s22 + $0x110] sm:$0xff] %vm1497_vm2, %v6279_v27  ;;  %v6280_v5 = vadd.f32 %v13321_v19, %v6171_v13  ;;  %v9315_v40 = vpop.f32.mrb[56].mxu1 }
 0x2fd   : > { %8289 = vst.msk [vmem:[%s12849_s22 + $0x138] sm:$0xff] %vm1497_vm2, %v6282_v30  ;;  %v7322_v59 = vadd.f32 %v13321_v19, %v9315_v40  ;;  %v7233_v23 = vpop.f32.mrb[57].mxu1  ;;  %7402 = vrot.lane.b32.xlu1 %v7317_v31, %s9866_s19 }
 0x2fe   : > { %8287 = vst.msk [vmem:[%s12849_s22 + $0x118] sm:$0xff] %vm1497_vm2, %v6280_v5  ;;  %v9316_v3 = vpop.f32.mrb[58].mxu1  ;;  %v7320_v55 = vadd.f32 %v13321_v19, %v7233_v23 }
 0x2ff   : > { %v7323_v58 = vadd.f32 %v13321_v19, %v9316_v3  ;;  %7412 = vrot.lane.b32.xlu0 %v7322_v59, %s9866_s19  ;;  %v7236_v41 = vpop.f32.mrb[59].mxu1 }
 0x300   : > { %v9167_v48 = vpop.f32.mrb[52].mxu0  ;;  %v7321_v2 = vadd.f32 %v13321_v19, %v7236_v41 }
 0x301   : > { %v6285_v62 = vadd.f32 %v13321_v19, %v9167_v48  ;;  %v6184_v21 = vpop.f32.mrb[53].mxu0  ;;  %7414 = vrot.lane.b32.xlu1 %v7323_v58, %s9866_s19 }
 0x302   : > { %v6283_v9 = vadd.f32 %v13321_v19, %v6184_v21  ;;  %v9168_v44 = vpop.f32.mrb[54].mxu0 }
 0x303   : > { %8292 = vst.msk [vmem:[%s12849_s22 + $0x170] sm:$0xff] %vm1497_vm2, %v6285_v62  ;;  %v6286_v36 = vadd.f32 %v13321_v19, %v9168_v44  ;;  %v6187_v50 = vpop.f32.mrb[55].mxu0  ;;  %7408 = vrot.lane.b32.xlu0 %v7320_v55, %s9866_s19 }
 0x304   : > { %8290 = vst.msk [vmem:[%s12849_s22 + $0x150] sm:$0xff] %vm1497_vm2, %v6283_v9  ;;  %v6284_v4 = vadd.f32 %v13321_v19, %v6187_v50  ;;  %v9319_v12 = vpop.f32.mrb[60].mxu1 }
 0x305   : > { %8293 = vst.msk [vmem:[%s12849_s22 + $0x178] sm:$0xff] %vm1497_vm2, %v6286_v36  ;;  %v7249_v29 = vpop.f32.mrb[61].mxu1  ;;  %7410 = vrot.lane.b32.xlu1 %v7321_v2, %s9866_s19  ;;  %v7326_v20 = vadd.f32 %v13321_v19, %v9319_v12 }
 0x306   : > { %8291 = vst.msk [vmem:[%s12849_s22 + $0x158] sm:$0xff] %vm1497_vm2, %v6284_v4  ;;  %v7324_v17 = vadd.f32 %v13321_v19, %v7249_v29  ;;  %v9320_v52 = vpop.f32.mrb[62].mxu1 }
 0x307   : > { %v7252_v8 = vpop.f32.mrb[63].mxu1  ;;  %v7327_v34 = vadd.f32 %v13321_v19, %v9320_v52 }
 0x308   : > { %v9171_v25 = vpop.f32.mrb[56].mxu0  ;;  %v7325_v61 = vadd.f32 %v13321_v19, %v7252_v8  ;;  %7416 = vrot.lane.b32.xlu0 %v7324_v17, %s9866_s19 }
 0x309   : > { %v6289_v6 = vadd.f32 %v13321_v19, %v9171_v25  ;;  %v6200_v57 = vpop.f32.mrb[57].mxu0 }
 0x30a   : > { %v6287_v24 = vadd.f32 %v13321_v19, %v6200_v57  ;;  %v9172_v46 = vpop.f32.mrb[58].mxu0  ;;  %7418 = vrot.lane.b32.xlu1 %v7325_v61, %s9866_s19 }
 0x30b   : > { %8296 = vst.msk [vmem:[%s12849_s22 + $0x1b0] sm:$0xff] %vm1497_vm2, %v6289_v6  ;;  %v6290_v16 = vadd.f32 %v13321_v19, %v9172_v46  ;;  %v6203_v35 = vpop.f32.mrb[59].mxu0 }
 0x30c   : > { %8294 = vst.msk [vmem:[%s12849_s22 + $0x190] sm:$0xff] %vm1497_vm2, %v6287_v24  ;;  %v6288_v60 = vadd.f32 %v13321_v19, %v6203_v35  ;;  %7420 = vrot.lane.b32.xlu0 %v7326_v20, %s9866_s19 }
 0x30d   : > { %8297 = vst.msk [vmem:[%s12849_s22 + $0x1b8] sm:$0xff] %vm1497_vm2, %v6290_v16 }
 0x30e   : > { %8295 = vst.msk [vmem:[%s12849_s22 + $0x198] sm:$0xff] %vm1497_vm2, %v6288_v60  ;;  %7422 = vrot.lane.b32.xlu1 %v7327_v34, %s9866_s19 }
 0x310   : > { %v9175_v11 = vpop.f32.mrb[60].mxu0 }
 0x311   : > { %v6293_v54 = vadd.f32 %v13321_v19, %v9175_v11  ;;  %v6216_v45 = vpop.f32.mrb[61].mxu0 }
 0x312   : > { %v6291_v33 = vadd.f32 %v13321_v19, %v6216_v45  ;;  %v9176_v43 = vpop.f32.mrb[62].mxu0 }
 0x313   : > { %8300 = vst.msk [vmem:[%s12849_s22 + $0x1f0] sm:$0xff] %vm1497_vm2, %v6293_v54  ;;  %v6294_v0 = vadd.f32 %v13321_v19, %v9176_v43  ;;  %v6219_v28 = vpop.f32.mrb[63].mxu0 }
 0x314   : > { %8298 = vst.msk [vmem:[%s12849_s22 + $0x1d0] sm:$0xff] %vm1497_vm2, %v6291_v33  ;;  %v6292_v53 = vadd.f32 %v13321_v19, %v6219_v28 }
 0x315   : > { %8301 = vst.msk [vmem:[%s12849_s22 + $0x1f8] sm:$0xff] %vm1497_vm2, %v6294_v0 }
 0x316   : > { %8299 = vst.msk [vmem:[%s12849_s22 + $0x1d8] sm:$0xff] %vm1497_vm2, %v6292_v53 }
 0x340   : > { %v7365_v63 = vpop.permute.xlu0 %7364 }
 0x341   : > { %8424 = vst.msk [vmem:[%s12849_s22 + $0x30] sm:$0xff] %vm3818_vm7, %v7365_v63 }
 0x342   : > { %v7367_v56 = vpop.permute.xlu1 %7366 }
 0x343   : > { %8425 = vst.msk [vmem:[%s12849_s22 + $0x38] sm:$0xff] %vm3818_vm7, %v7367_v56 }
 0x344   : > { %v7361_v7 = vpop.permute.xlu0 %7360 }
 0x345   : > { %8422 = vst.msk [vmem:[%s12849_s22 + $0x10] sm:$0xff] %vm3818_vm7, %v7361_v7 }
 0x346   : > { %v7363_v51 = vpop.permute.xlu1 %7362 }
 0x347   : > { %8423 = vst.msk [vmem:[%s12849_s22 + $0x18] sm:$0xff] %vm3818_vm7, %v7363_v51 }
 0x348   : > { %v7373_v19 = vpop.permute.xlu0 %7372 }
 0x349   : > { %8428 = vst.msk [vmem:[%s12849_s22 + $0x70] sm:$0xff] %vm3818_vm7, %v7373_v19 }
 0x34a   : > { %v7375_v1 = vpop.permute.xlu1 %7374 }
 0x34b   : > { %8429 = vst.msk [vmem:[%s12849_s22 + $0x78] sm:$0xff] %vm3818_vm7, %v7375_v1 }
 0x34c   : > { %v7369_v18 = vpop.permute.xlu0 %7368 }
 0x34d   : > { %8426 = vst.msk [vmem:[%s12849_s22 + $0x50] sm:$0xff] %vm3818_vm7, %v7369_v18 }
 0x34e   : > { %v7371_v22 = vpop.permute.xlu1 %7370 }
 0x34f   : > { %8427 = vst.msk [vmem:[%s12849_s22 + $0x58] sm:$0xff] %vm3818_vm7, %v7371_v22 }
 0x351   : > { %v7381_v37 = vpop.permute.xlu0 %7380 }
 0x352   : > { %8432 = vst.msk [vmem:[%s12849_s22 + $0xb0] sm:$0xff] %vm3818_vm7, %v7381_v37 }
 0x353   : > { %v7383_v10 = vpop.permute.xlu1 %7382 }
 0x354   : > { %8433 = vst.msk [vmem:[%s12849_s22 + $0xb8] sm:$0xff] %vm3818_vm7, %v7383_v10 }
 0x355   : > { %v7377_v39 = vpop.permute.xlu0 %7376 }
 0x356   : > { %8430 = vst.msk [vmem:[%s12849_s22 + $0x90] sm:$0xff] %vm3818_vm7, %v7377_v39 }
 0x357   : > { %v7379_v47 = vpop.permute.xlu1 %7378 }
 0x358   : > { %8431 = vst.msk [vmem:[%s12849_s22 + $0x98] sm:$0xff] %vm3818_vm7, %v7379_v47 }
 0x359   : > { %v7389_v49 = vpop.permute.xlu0 %7388 }
 0x35a   : > { %8436 = vst.msk [vmem:[%s12849_s22 + $0xf0] sm:$0xff] %vm3818_vm7, %v7389_v49 }
 0x35b   : > { %v7391_v26 = vpop.permute.xlu1 %7390 }
 0x35c   : > { %8437 = vst.msk [vmem:[%s12849_s22 + $0xf8] sm:$0xff] %vm3818_vm7, %v7391_v26 }
 0x35d   : > { %v7385_v15 = vpop.permute.xlu0 %7384 }
 0x35e   : > { %8434 = vst.msk [vmem:[%s12849_s22 + $0xd0] sm:$0xff] %vm3818_vm7, %v7385_v15 }
 0x35f   : > { %v7387_v32 = vpop.permute.xlu1 %7386 }
 0x360   : > { %8435 = vst.msk [vmem:[%s12849_s22 + $0xd8] sm:$0xff] %vm3818_vm7, %v7387_v32 }
 0x361   : > { %v7397_v38 = vpop.permute.xlu0 %7396 }
 0x362   : > { %8440 = vst.msk [vmem:[%s12849_s22 + $0x130] sm:$0xff] %vm3818_vm7, %v7397_v38 }
 0x363   : > { %v7399_v27 = vpop.permute.xlu1 %7398 }
 0x364   : > { %8441 = vst.msk [vmem:[%s12849_s22 + $0x138] sm:$0xff] %vm3818_vm7, %v7399_v27 }
 0x365   : > { %v7393_v14 = vpop.permute.xlu0 %7392 }
 0x366   : > { %8438 = vst.msk [vmem:[%s12849_s22 + $0x110] sm:$0xff] %vm3818_vm7, %v7393_v14 }
 0x367   : > { %v7395_v42 = vpop.permute.xlu1 %7394 }
 0x368   : > { %8439 = vst.msk [vmem:[%s12849_s22 + $0x118] sm:$0xff] %vm3818_vm7, %v7395_v42 }
 0x369   : > { %v7405_v30 = vpop.permute.xlu0 %7404 }
 0x36a   : > { %8444 = vst.msk [vmem:[%s12849_s22 + $0x170] sm:$0xff] %vm3818_vm7, %v7405_v30 }
 0x36b   : > { %v7407_v13 = vpop.permute.xlu1 %7406 }
 0x36c   : > { %8445 = vst.msk [vmem:[%s12849_s22 + $0x178] sm:$0xff] %vm3818_vm7, %v7407_v13 }
 0x36d   : > { %v7401_v5 = vpop.permute.xlu0 %7400 }
 0x36e   : > { %8442 = vst.msk [vmem:[%s12849_s22 + $0x150] sm:$0xff] %vm3818_vm7, %v7401_v5 }
 0x36f   : > { %v7403_v31 = vpop.permute.xlu1 %7402 }
 0x370   : > { %8443 = vst.msk [vmem:[%s12849_s22 + $0x158] sm:$0xff] %vm3818_vm7, %v7403_v31 }
 0x371   : > { %v7413_v40 = vpop.permute.xlu0 %7412 }
 0x372   : > { %8448 = vst.msk [vmem:[%s12849_s22 + $0x1b0] sm:$0xff] %vm3818_vm7, %v7413_v40 }
 0x373   : > { %v7415_v59 = vpop.permute.xlu1 %7414 }
 0x374   : > { %8449 = vst.msk [vmem:[%s12849_s22 + $0x1b8] sm:$0xff] %vm3818_vm7, %v7415_v59 }
 0x375   : > { %v7409_v23 = vpop.permute.xlu0 %7408 }
 0x376   : > { %8446 = vst.msk [vmem:[%s12849_s22 + $0x190] sm:$0xff] %vm3818_vm7, %v7409_v23 }
 0x377   : > { %v7411_v3 = vpop.permute.xlu1 %7410 }
 0x378   : > { %8447 = vst.msk [vmem:[%s12849_s22 + $0x198] sm:$0xff] %vm3818_vm7, %v7411_v3 }
 0x37a   : > { %v7417_v48 = vpop.permute.xlu0 %7416 }
 0x37b   : > { %8450 = vst.msk [vmem:[%s12849_s22 + $0x1d0] sm:$0xff] %vm3818_vm7, %v7417_v48 }
 0x37c   : > { %v7419_v58 = vpop.permute.xlu1 %7418 }
 0x37d   : > { %8451 = vst.msk [vmem:[%s12849_s22 + $0x1d8] sm:$0xff] %vm3818_vm7, %v7419_v58 }
 0x37e   : > { %v7421_v41 = vpop.permute.xlu0 %7420 }
 0x37f   : > { %8452 = vst.msk [vmem:[%s12849_s22 + $0x1f0] sm:$0xff] %vm3818_vm7, %v7421_v41 }
 0x380   : > { %v7423_v62 = vpop.permute.xlu1 %7422 }
 0x381   : > { %8453 = vst.msk [vmem:[%s12849_s22 + $0x1f8] sm:$0xff] %vm3818_vm7, %v7423_v62 }
 0x382 PF: > { %s13_s14 = sadd.s32 1, %s9864_s14   ;;  %s13895_s12 = smov %s9860_s13 }
 0x383   : > { %p10_p5 = scmp.ge.s32.totalorder %s13_s14, 4   ;;  %s13896_s13 = smov %s13898_s15 }
 0x385   :  { %12 = sbr.rel (!%p10_p5) target bundleno = 2 (0x2), region = 81 }

</bundles_post_ra>
